<compile_context>
chip_gen: v7x
topology: tpu7x:2x2x1
jax: 0.10.0
libtpu: 0.0.40
codegen_flags: <defaults>
</compile_context>

<pallas_src>
import functools

import jax
import jax.numpy as jnp
from jax import lax
from jax.experimental import pallas as pl
from jax.experimental.pallas import tpu as pltpu

KSIZE = 7
PAD = (KSIZE - 1) // 2      # 3
LANE = 128
SUBLANE = 8
C_CHUNK = 8                 # channels per reduction / gate step (one f32 sublane tile)


def _round_up(x, m):
    return (x + m - 1) // m * m


# -----------------------------------------------------------------------------
# Fused kernel: per grid step process NB images (lane-dense (NB, C, HW) block).
# -----------------------------------------------------------------------------
def _spatial_gate_kernel(w_ref, bn_ref, mask_ref, x_ref, o_ref, flat_ref, *, W, off0):
    NB, C, HW = x_ref.shape

    # ---- hoist all scalar (SMEM) reads out of the per-image loop (feedback) ----
    w_max = [[w_ref[kh * KSIZE + kw] for kw in range(KSIZE)] for kh in range(KSIZE)]
    w_mean = [[w_ref[KSIZE * KSIZE + kh * KSIZE + kw] for kw in range(KSIZE)]
              for kh in range(KSIZE)]
    bn_s = bn_ref[0]
    bn_b = bn_ref[1]
    masks = [mask_ref[d:d + 1, :] for d in range(KSIZE)]            # 7 x (1, HW)

    # Re-zero the conv scratch every grid step => no cross-step dependency, so the batch grid
    # axis can be "parallel" (megacore-splittable).  Only [off0, off0+HW) is rewritten per
    # image below, so the zero border survives the in-step image loop.
    flat_ref[...] = jnp.zeros_like(flat_ref)

    n_chunks = C // C_CHUNK
    rem = C - n_chunks * C_CHUNK

    for b in range(NB):
        # ---------- ChannelPool: running max / sum over C, lane-dense, chunked ----------
        if n_chunks <= 1:
            blk = x_ref[b].astype(jnp.float32)                      # (C, HW)
            mx = jnp.max(blk, axis=0, keepdims=True)
            sm = jnp.sum(blk, axis=0, keepdims=True)
        else:
            def red_body(i, carry):
                m, s = carry
                c0 = pl.multiple_of(i * C_CHUNK, C_CHUNK)
                blk = x_ref[b, pl.ds(c0, C_CHUNK), :].astype(jnp.float32)
                return (jnp.maximum(m, jnp.max(blk, axis=0, keepdims=True)),
                        s + jnp.sum(blk, axis=0, keepdims=True))
            mx0 = jnp.full((1, HW), -jnp.inf, dtype=jnp.float32)
            sm0 = jnp.zeros((1, HW), dtype=jnp.float32)
            mx, sm = lax.fori_loop(0, n_chunks, red_body, (mx0, sm0))
            if rem:
                blk = x_ref[b, n_chunks * C_CHUNK:C, :].astype(jnp.float32)
                mx = jnp.maximum(mx, jnp.max(blk, axis=0, keepdims=True))
                sm = sm + jnp.sum(blk, axis=0, keepdims=True)

        # ---------- place [max ; sum] into the zero-bordered flattened scratch ----------
        flat_ref[0:1, off0:off0 + HW] = mx
        flat_ref[1:2, off0:off0 + HW] = sm

        # ---------- 7x7 "same" conv via static windowed loads + column masks ----------
        # Tap (dh, dw) of output pixel p = h*W + w reads flat[off0 + p + dh*W + dw]; the
        # per-dw mask zeroes terms whose column w+dw wrapped into an adjacent row.
        conv = jnp.zeros((1, HW), dtype=jnp.float32)
        for dw in range(-PAD, PAD + 1):
            acc = jnp.zeros((1, HW), dtype=jnp.float32)
            for dh in range(-PAD, PAD + 1):
                start = off0 + dh * W + dw                          # static offset
                win = flat_ref[:, start:start + HW]                 # (2, HW): [max; sum]
                acc = acc + w_max[dh + PAD][dw + PAD] * win[0:1, :]
                acc = acc + w_mean[dh + PAD][dw + PAD] * win[1:2, :]
            conv = conv + masks[dw + PAD] * acc

        # ---------- folded inference-mode BatchNorm + sigmoid ----------
        # TODO(synk): PyTorch default is train-mode BN (batch statistics); eval-mode folded.
        scale = jax.nn.sigmoid(conv * bn_s + bn_b)                  # (1, HW) f32

        # ---------- gate: out = x * scale (lane-dense), chunked over C ----------
        if n_chunks <= 1:
            o_ref[b] = (x_ref[b].astype(jnp.float32) * scale).astype(o_ref.dtype)
        else:
            def gate_body(i, carry):
                c0 = pl.multiple_of(i * C_CHUNK, C_CHUNK)
                xb = x_ref[b, pl.ds(c0, C_CHUNK), :].astype(jnp.float32)
                o_ref[b, pl.ds(c0, C_CHUNK), :] = (xb * scale).astype(o_ref.dtype)
                return carry
            lax.fori_loop(0, n_chunks, gate_body, 0)
            if rem:
                xb = x_ref[b, n_chunks * C_CHUNK:C, :].astype(jnp.float32)
                o_ref[b, n_chunks * C_CHUNK:C, :] = (xb * scale).astype(o_ref.dtype)


# -----------------------------------------------------------------------------
# Wrapper.
# -----------------------------------------------------------------------------
def spatial_gate(x, conv_w, bn_gamma, bn_beta, bn_mean, bn_var, eps=1e-5):
    """x: (N, C, H, W); conv_w: (1, 2, 7, 7); BN params: (1,) each (eval-mode folded)."""
    N, C, H, W = x.shape
    HW = H * W

    # Flattened-conv geometry: the image lives at [off0, off0 + HW) of a zero-bordered row;
    # every tap window [off0 + dh*W + dw, ... + HW) must stay inside [0, L_wide).
    off0 = _round_up(PAD * (W + 1), LANE)
    L_wide = _round_up(off0 + HW + PAD * (W + 1), LANE)

    # Fold the ChannelPool mean's 1/C into the mean-branch taps; flatten taps for SMEM.
    w_max = conv_w[0, 0].reshape(-1)
    w_mean = (conv_w[0, 1] / C).reshape(-1)
    w_flat = jnp.concatenate([w_max, w_mean]).astype(jnp.float32)        # (98,)
    inv_std = bn_gamma / jnp.sqrt(bn_var + eps)
    bn = jnp.stack([inv_std[0], (bn_beta - bn_mean * inv_std)[0]]).astype(jnp.float32)

    # Column-validity masks for the flattened conv: mask_dw[p] = 1 iff 0 <= (p mod W)+dw < W.
    col = jnp.arange(HW, dtype=jnp.int32) % W
    masks = jnp.stack(
        [((col + dw >= 0) & (col + dw < W)).astype(jnp.float32)
         for dw in range(-PAD, PAD + 1)], axis=0)                        # (7, HW)

    x_flat = x.reshape(N, C, HW)                 # lane-dense HBM view (free reshape)

    # Pack a few images per grid step only when the per-image slab is tiny (amortize the
    # ~0.35us/step overhead); otherwise one image per step.  cdiv grid -> no divisor hunting.
    per_img = C * HW * x.dtype.itemsize
    NB = max(1, min(N, 8, (1 << 20) // max(per_img, 1)))
    grid_n = pl.cdiv(N, NB)

    # VMEM budget from the *padded* block footprint (in + out, double-buffered) + scratch.
    blk_bytes = NB * _round_up(C, SUBLANE) * _round_up(HW, LANE) * x.dtype.itemsize
    vmem_need = 4 * blk_bytes + (2 * L_wide + 2 * KSIZE * _round_up(HW, LANE)) * 4 + (2 << 20)
    vmem_limit = int(min(max(vmem_need, 16 << 20), 48 << 20))
    # TODO(synk): if a single image slab (4*per_img) ever exceeds ~48 MiB (v7x VMEM), fall back
    # to a two-pass (pool+conv, then gate) pipeline with the channel axis tiled on the grid.

    kernel = functools.partial(_spatial_gate_kernel, W=W, off0=off0)
    out_flat = pl.pallas_call(
        kernel,
        out_shape=jax.ShapeDtypeStruct((N, C, HW), x.dtype),
        grid_spec=pltpu.PrefetchScalarGridSpec(
            num_scalar_prefetch=0,
            grid=(grid_n,),
            in_specs=[
                pl.BlockSpec(memory_space=pltpu.MemorySpace.SMEM),       # 98 conv taps
                pl.BlockSpec(memory_space=pltpu.MemorySpace.SMEM),       # folded BN (scale, bias)
                pl.BlockSpec((KSIZE, HW), lambda n: (0, 0)),             # column-validity masks
                pl.BlockSpec((NB, C, HW), lambda n: (n, 0, 0)),          # x, lane-dense
            ],
            out_specs=pl.BlockSpec((NB, C, HW), lambda n: (n, 0, 0)),
            scratch_shapes=[pltpu.VMEM((2, L_wide), jnp.float32)],
        ),
        compiler_params=pltpu.CompilerParams(
            dimension_semantics=("parallel",),
            vmem_limit_bytes=vmem_limit,
        ),
    )(w_flat, bn, masks, x_flat)
    return out_flat.reshape(N, C, H, W)


# -----------------------------------------------------------------------------
# Pure-JAX reference (matches PyTorch eval-mode SpatialGate).
# -----------------------------------------------------------------------------
def spatial_gate_ref(x, conv_w, bn_gamma, bn_beta, bn_mean, bn_var, eps=1e-5):
    mx = jnp.max(x, axis=1, keepdims=True)
    mn = jnp.mean(x, axis=1, keepdims=True)
    pooled = jnp.concatenate([mx, mn], axis=1)                       # (N, 2, H, W)
    conv = jax.lax.conv_general_dilated(
        pooled, conv_w, window_strides=(1, 1), padding=[(PAD, PAD), (PAD, PAD)],
        dimension_numbers=("NCHW", "OIHW", "NCHW"))
    conv = (conv - bn_mean[None, :, None, None]) / jnp.sqrt(bn_var[None, :, None, None] + eps)
    conv = conv * bn_gamma[None, :, None, None] + bn_beta[None, :, None, None]
    return x * jax.nn.sigmoid(conv)


if __name__ == "__main__":
    key = jax.random.PRNGKey(0)
    kx, kw, kx2 = jax.random.split(key, 3)

    # deterministic synthetic parameters (Conv2d(2, 1, 7, bias=False) + BatchNorm2d(1))
    conv_w = 0.1 * jax.random.normal(kw, (1, 2, KSIZE, KSIZE), dtype=jnp.float32)
    bn_gamma = jnp.full((1,), 1.2, jnp.float32)
    bn_beta = jnp.full((1,), 0.1, jnp.float32)
    bn_mean = jnp.full((1,), 0.05, jnp.float32)
    bn_var = jnp.full((1,), 0.8, jnp.float32)

    # Main small config consistent with the module: (N=2, C=4, H=16, W=16).
    x = jax.random.normal(kx, (2, 4, 16, 16), dtype=jnp.float32)
    out = jax.block_until_ready(spatial_gate(x, conv_w, bn_gamma, bn_beta, bn_mean, bn_var))
    ref = spatial_gate_ref(x, conv_w, bn_gamma, bn_beta, bn_mean, bn_var)
    assert out.shape == x.shape and out.dtype == x.dtype
    assert jnp.allclose(out, ref, atol=1e-4, rtol=1e-4), "mismatch vs reference (C=4)"

    # Second small config exercising the chunked (fori_loop) reduction / gate path.
    x2 = jax.random.normal(kx2, (2, 32, 16, 16), dtype=jnp.float32)
    out2 = jax.block_until_ready(spatial_gate(x2, conv_w, bn_gamma, bn_beta, bn_mean, bn_var))
    ref2 = spatial_gate_ref(x2, conv_w, bn_gamma, bn_beta, bn_mean, bn_var)
    assert jnp.allclose(out2, ref2, atol=1e-4, rtol=1e-4), "mismatch vs reference (C=32)"

    print("KERNEL_OK")
</pallas_src>

<mosaic_0001>
module attributes {stable_mosaic.version = 11 : i64} {
  func.func @_spatial_gate_kernel(%arg0: i32, %arg1: memref<98xf32, #tpu.memory_space<smem>>, %arg2: memref<2xf32, #tpu.memory_space<smem>>, %arg3: memref<7x256xf32, #tpu.memory_space<vmem>>, %arg4: memref<2x4x256xf32, #tpu.memory_space<vmem>>, %arg5: memref<2x4x256xf32, #tpu.memory_space<vmem>>, %arg6: memref<2x512xf32, #tpu.memory_space<vmem>>) attributes {dimension_semantics = [#tpu.dimension_semantics<parallel>], iteration_bounds = array<i64: 1>, scalar_prefetch = 0 : i64, scratch_operands = 1 : i64, tpu.core_type = #tpu.core_type<tc>, window_params = [{transform_indices = @transform_0, window_bounds = array<i64: 98>}, {transform_indices = @transform_1, window_bounds = array<i64: 2>}, {pipeline_mode = #tpu.pipeline_mode<synchronous>, transform_indices = @transform_2, window_bounds = array<i64: 7, 256>}, {transform_indices = @transform_3, window_bounds = array<i64: 2, 4, 256>}, {transform_indices = @transform_4, window_bounds = array<i64: 2, 4, 256>}]} {
    %c0 = arith.constant 0 : index
    %0 = memref.load %arg1[%c0] : memref<98xf32, #tpu.memory_space<smem>>
    %c1 = arith.constant 1 : index
    %1 = memref.load %arg1[%c1] : memref<98xf32, #tpu.memory_space<smem>>
    %c2 = arith.constant 2 : index
    %2 = memref.load %arg1[%c2] : memref<98xf32, #tpu.memory_space<smem>>
    %c3 = arith.constant 3 : index
    %3 = memref.load %arg1[%c3] : memref<98xf32, #tpu.memory_space<smem>>
    %c4 = arith.constant 4 : index
    %4 = memref.load %arg1[%c4] : memref<98xf32, #tpu.memory_space<smem>>
    %c5 = arith.constant 5 : index
    %5 = memref.load %arg1[%c5] : memref<98xf32, #tpu.memory_space<smem>>
    %c6 = arith.constant 6 : index
    %6 = memref.load %arg1[%c6] : memref<98xf32, #tpu.memory_space<smem>>
    %c7 = arith.constant 7 : index
    %7 = memref.load %arg1[%c7] : memref<98xf32, #tpu.memory_space<smem>>
    %c8 = arith.constant 8 : index
    %8 = memref.load %arg1[%c8] : memref<98xf32, #tpu.memory_space<smem>>
    %c9 = arith.constant 9 : index
    %9 = memref.load %arg1[%c9] : memref<98xf32, #tpu.memory_space<smem>>
    %c10 = arith.constant 10 : index
    %10 = memref.load %arg1[%c10] : memref<98xf32, #tpu.memory_space<smem>>
    %c11 = arith.constant 11 : index
    %11 = memref.load %arg1[%c11] : memref<98xf32, #tpu.memory_space<smem>>
    %c12 = arith.constant 12 : index
    %12 = memref.load %arg1[%c12] : memref<98xf32, #tpu.memory_space<smem>>
    %c13 = arith.constant 13 : index
    %13 = memref.load %arg1[%c13] : memref<98xf32, #tpu.memory_space<smem>>
    %c14 = arith.constant 14 : index
    %14 = memref.load %arg1[%c14] : memref<98xf32, #tpu.memory_space<smem>>
    %c15 = arith.constant 15 : index
    %15 = memref.load %arg1[%c15] : memref<98xf32, #tpu.memory_space<smem>>
    %c16 = arith.constant 16 : index
    %16 = memref.load %arg1[%c16] : memref<98xf32, #tpu.memory_space<smem>>
    %c17 = arith.constant 17 : index
    %17 = memref.load %arg1[%c17] : memref<98xf32, #tpu.memory_space<smem>>
    %c18 = arith.constant 18 : index
    %18 = memref.load %arg1[%c18] : memref<98xf32, #tpu.memory_space<smem>>
    %c19 = arith.constant 19 : index
    %19 = memref.load %arg1[%c19] : memref<98xf32, #tpu.memory_space<smem>>
    %c20 = arith.constant 20 : index
    %20 = memref.load %arg1[%c20] : memref<98xf32, #tpu.memory_space<smem>>
    %c21 = arith.constant 21 : index
    %21 = memref.load %arg1[%c21] : memref<98xf32, #tpu.memory_space<smem>>
    %c22 = arith.constant 22 : index
    %22 = memref.load %arg1[%c22] : memref<98xf32, #tpu.memory_space<smem>>
    %c23 = arith.constant 23 : index
    %23 = memref.load %arg1[%c23] : memref<98xf32, #tpu.memory_space<smem>>
    %c24 = arith.constant 24 : index
    %24 = memref.load %arg1[%c24] : memref<98xf32, #tpu.memory_space<smem>>
    %c25 = arith.constant 25 : index
    %25 = memref.load %arg1[%c25] : memref<98xf32, #tpu.memory_space<smem>>
    %c26 = arith.constant 26 : index
    %26 = memref.load %arg1[%c26] : memref<98xf32, #tpu.memory_space<smem>>
    %c27 = arith.constant 27 : index
    %27 = memref.load %arg1[%c27] : memref<98xf32, #tpu.memory_space<smem>>
    %c28 = arith.constant 28 : index
    %28 = memref.load %arg1[%c28] : memref<98xf32, #tpu.memory_space<smem>>
    %c29 = arith.constant 29 : index
    %29 = memref.load %arg1[%c29] : memref<98xf32, #tpu.memory_space<smem>>
    %c30 = arith.constant 30 : index
    %30 = memref.load %arg1[%c30] : memref<98xf32, #tpu.memory_space<smem>>
    %c31 = arith.constant 31 : index
    %31 = memref.load %arg1[%c31] : memref<98xf32, #tpu.memory_space<smem>>
    %c32 = arith.constant 32 : index
    %32 = memref.load %arg1[%c32] : memref<98xf32, #tpu.memory_space<smem>>
    %c33 = arith.constant 33 : index
    %33 = memref.load %arg1[%c33] : memref<98xf32, #tpu.memory_space<smem>>
    %c34 = arith.constant 34 : index
    %34 = memref.load %arg1[%c34] : memref<98xf32, #tpu.memory_space<smem>>
    %c35 = arith.constant 35 : index
    %35 = memref.load %arg1[%c35] : memref<98xf32, #tpu.memory_space<smem>>
    %c36 = arith.constant 36 : index
    %36 = memref.load %arg1[%c36] : memref<98xf32, #tpu.memory_space<smem>>
    %c37 = arith.constant 37 : index
    %37 = memref.load %arg1[%c37] : memref<98xf32, #tpu.memory_space<smem>>
    %c38 = arith.constant 38 : index
    %38 = memref.load %arg1[%c38] : memref<98xf32, #tpu.memory_space<smem>>
    %c39 = arith.constant 39 : index
    %39 = memref.load %arg1[%c39] : memref<98xf32, #tpu.memory_space<smem>>
    %c40 = arith.constant 40 : index
    %40 = memref.load %arg1[%c40] : memref<98xf32, #tpu.memory_space<smem>>
    %c41 = arith.constant 41 : index
    %41 = memref.load %arg1[%c41] : memref<98xf32, #tpu.memory_space<smem>>
    %c42 = arith.constant 42 : index
    %42 = memref.load %arg1[%c42] : memref<98xf32, #tpu.memory_space<smem>>
    %c43 = arith.constant 43 : index
    %43 = memref.load %arg1[%c43] : memref<98xf32, #tpu.memory_space<smem>>
    %c44 = arith.constant 44 : index
    %44 = memref.load %arg1[%c44] : memref<98xf32, #tpu.memory_space<smem>>
    %c45 = arith.constant 45 : index
    %45 = memref.load %arg1[%c45] : memref<98xf32, #tpu.memory_space<smem>>
    %c46 = arith.constant 46 : index
    %46 = memref.load %arg1[%c46] : memref<98xf32, #tpu.memory_space<smem>>
    %c47 = arith.constant 47 : index
    %47 = memref.load %arg1[%c47] : memref<98xf32, #tpu.memory_space<smem>>
    %c48 = arith.constant 48 : index
    %48 = memref.load %arg1[%c48] : memref<98xf32, #tpu.memory_space<smem>>
    %c49 = arith.constant 49 : index
    %49 = memref.load %arg1[%c49] : memref<98xf32, #tpu.memory_space<smem>>
    %c50 = arith.constant 50 : index
    %50 = memref.load %arg1[%c50] : memref<98xf32, #tpu.memory_space<smem>>
    %c51 = arith.constant 51 : index
    %51 = memref.load %arg1[%c51] : memref<98xf32, #tpu.memory_space<smem>>
    %c52 = arith.constant 52 : index
    %52 = memref.load %arg1[%c52] : memref<98xf32, #tpu.memory_space<smem>>
    %c53 = arith.constant 53 : index
    %53 = memref.load %arg1[%c53] : memref<98xf32, #tpu.memory_space<smem>>
    %c54 = arith.constant 54 : index
    %54 = memref.load %arg1[%c54] : memref<98xf32, #tpu.memory_space<smem>>
    %c55 = arith.constant 55 : index
    %55 = memref.load %arg1[%c55] : memref<98xf32, #tpu.memory_space<smem>>
    %c56 = arith.constant 56 : index
    %56 = memref.load %arg1[%c56] : memref<98xf32, #tpu.memory_space<smem>>
    %c57 = arith.constant 57 : index
    %57 = memref.load %arg1[%c57] : memref<98xf32, #tpu.memory_space<smem>>
    %c58 = arith.constant 58 : index
    %58 = memref.load %arg1[%c58] : memref<98xf32, #tpu.memory_space<smem>>
    %c59 = arith.constant 59 : index
    %59 = memref.load %arg1[%c59] : memref<98xf32, #tpu.memory_space<smem>>
    %c60 = arith.constant 60 : index
    %60 = memref.load %arg1[%c60] : memref<98xf32, #tpu.memory_space<smem>>
    %c61 = arith.constant 61 : index
    %61 = memref.load %arg1[%c61] : memref<98xf32, #tpu.memory_space<smem>>
    %c62 = arith.constant 62 : index
    %62 = memref.load %arg1[%c62] : memref<98xf32, #tpu.memory_space<smem>>
    %c63 = arith.constant 63 : index
    %63 = memref.load %arg1[%c63] : memref<98xf32, #tpu.memory_space<smem>>
    %c64 = arith.constant 64 : index
    %64 = memref.load %arg1[%c64] : memref<98xf32, #tpu.memory_space<smem>>
    %c65 = arith.constant 65 : index
    %65 = memref.load %arg1[%c65] : memref<98xf32, #tpu.memory_space<smem>>
    %c66 = arith.constant 66 : index
    %66 = memref.load %arg1[%c66] : memref<98xf32, #tpu.memory_space<smem>>
    %c67 = arith.constant 67 : index
    %67 = memref.load %arg1[%c67] : memref<98xf32, #tpu.memory_space<smem>>
    %c68 = arith.constant 68 : index
    %68 = memref.load %arg1[%c68] : memref<98xf32, #tpu.memory_space<smem>>
    %c69 = arith.constant 69 : index
    %69 = memref.load %arg1[%c69] : memref<98xf32, #tpu.memory_space<smem>>
    %c70 = arith.constant 70 : index
    %70 = memref.load %arg1[%c70] : memref<98xf32, #tpu.memory_space<smem>>
    %c71 = arith.constant 71 : index
    %71 = memref.load %arg1[%c71] : memref<98xf32, #tpu.memory_space<smem>>
    %c72 = arith.constant 72 : index
    %72 = memref.load %arg1[%c72] : memref<98xf32, #tpu.memory_space<smem>>
    %c73 = arith.constant 73 : index
    %73 = memref.load %arg1[%c73] : memref<98xf32, #tpu.memory_space<smem>>
    %c74 = arith.constant 74 : index
    %74 = memref.load %arg1[%c74] : memref<98xf32, #tpu.memory_space<smem>>
    %c75 = arith.constant 75 : index
    %75 = memref.load %arg1[%c75] : memref<98xf32, #tpu.memory_space<smem>>
    %c76 = arith.constant 76 : index
    %76 = memref.load %arg1[%c76] : memref<98xf32, #tpu.memory_space<smem>>
    %c77 = arith.constant 77 : index
    %77 = memref.load %arg1[%c77] : memref<98xf32, #tpu.memory_space<smem>>
    %c78 = arith.constant 78 : index
    %78 = memref.load %arg1[%c78] : memref<98xf32, #tpu.memory_space<smem>>
    %c79 = arith.constant 79 : index
    %79 = memref.load %arg1[%c79] : memref<98xf32, #tpu.memory_space<smem>>
    %c80 = arith.constant 80 : index
    %80 = memref.load %arg1[%c80] : memref<98xf32, #tpu.memory_space<smem>>
    %c81 = arith.constant 81 : index
    %81 = memref.load %arg1[%c81] : memref<98xf32, #tpu.memory_space<smem>>
    %c82 = arith.constant 82 : index
    %82 = memref.load %arg1[%c82] : memref<98xf32, #tpu.memory_space<smem>>
    %c83 = arith.constant 83 : index
    %83 = memref.load %arg1[%c83] : memref<98xf32, #tpu.memory_space<smem>>
    %c84 = arith.constant 84 : index
    %84 = memref.load %arg1[%c84] : memref<98xf32, #tpu.memory_space<smem>>
    %c85 = arith.constant 85 : index
    %85 = memref.load %arg1[%c85] : memref<98xf32, #tpu.memory_space<smem>>
    %c86 = arith.constant 86 : index
    %86 = memref.load %arg1[%c86] : memref<98xf32, #tpu.memory_space<smem>>
    %c87 = arith.constant 87 : index
    %87 = memref.load %arg1[%c87] : memref<98xf32, #tpu.memory_space<smem>>
    %c88 = arith.constant 88 : index
    %88 = memref.load %arg1[%c88] : memref<98xf32, #tpu.memory_space<smem>>
    %c89 = arith.constant 89 : index
    %89 = memref.load %arg1[%c89] : memref<98xf32, #tpu.memory_space<smem>>
    %c90 = arith.constant 90 : index
    %90 = memref.load %arg1[%c90] : memref<98xf32, #tpu.memory_space<smem>>
    %c91 = arith.constant 91 : index
    %91 = memref.load %arg1[%c91] : memref<98xf32, #tpu.memory_space<smem>>
    %c92 = arith.constant 92 : index
    %92 = memref.load %arg1[%c92] : memref<98xf32, #tpu.memory_space<smem>>
    %c93 = arith.constant 93 : index
    %93 = memref.load %arg1[%c93] : memref<98xf32, #tpu.memory_space<smem>>
    %c94 = arith.constant 94 : index
    %94 = memref.load %arg1[%c94] : memref<98xf32, #tpu.memory_space<smem>>
    %c95 = arith.constant 95 : index
    %95 = memref.load %arg1[%c95] : memref<98xf32, #tpu.memory_space<smem>>
    %c96 = arith.constant 96 : index
    %96 = memref.load %arg1[%c96] : memref<98xf32, #tpu.memory_space<smem>>
    %c97 = arith.constant 97 : index
    %97 = memref.load %arg1[%c97] : memref<98xf32, #tpu.memory_space<smem>>
    %c0_0 = arith.constant 0 : index
    %98 = memref.load %arg2[%c0_0] : memref<2xf32, #tpu.memory_space<smem>>
    %c1_1 = arith.constant 1 : index
    %99 = memref.load %arg2[%c1_1] : memref<2xf32, #tpu.memory_space<smem>>
    %c0_2 = arith.constant 0 : index
    %c0_3 = arith.constant 0 : index
    %100 = vector.load %arg3[%c0_2, %c0_3] : memref<7x256xf32, #tpu.memory_space<vmem>>, vector<1x256xf32>
    %c1_4 = arith.constant 1 : index
    %c0_5 = arith.constant 0 : index
    %101 = vector.load %arg3[%c1_4, %c0_5] : memref<7x256xf32, #tpu.memory_space<vmem>>, vector<1x256xf32>
    %c2_6 = arith.constant 2 : index
    %c0_7 = arith.constant 0 : index
    %102 = vector.load %arg3[%c2_6, %c0_7] : memref<7x256xf32, #tpu.memory_space<vmem>>, vector<1x256xf32>
    %c3_8 = arith.constant 3 : index
    %c0_9 = arith.constant 0 : index
    %103 = vector.load %arg3[%c3_8, %c0_9] : memref<7x256xf32, #tpu.memory_space<vmem>>, vector<1x256xf32>
    %c4_10 = arith.constant 4 : index
    %c0_11 = arith.constant 0 : index
    %104 = vector.load %arg3[%c4_10, %c0_11] : memref<7x256xf32, #tpu.memory_space<vmem>>, vector<1x256xf32>
    %c5_12 = arith.constant 5 : index
    %c0_13 = arith.constant 0 : index
    %105 = vector.load %arg3[%c5_12, %c0_13] : memref<7x256xf32, #tpu.memory_space<vmem>>, vector<1x256xf32>
    %c6_14 = arith.constant 6 : index
    %c0_15 = arith.constant 0 : index
    %106 = vector.load %arg3[%c6_14, %c0_15] : memref<7x256xf32, #tpu.memory_space<vmem>>, vector<1x256xf32>
    %cst = arith.constant 0.000000e+00 : f32
    %107 = vector.broadcast %cst : f32 to vector<2x512xf32>
    %c0_16 = arith.constant 0 : index
    %c0_17 = arith.constant 0 : index
    %108 = vector.load %arg6[%c0_16, %c0_17] : memref<2x512xf32, #tpu.memory_space<vmem>>, vector<2x512xf32>
    tpu.vector_store %arg6[%c0_16, %c0_17], %107 {strides = array<i32>} : memref<2x512xf32, #tpu.memory_space<vmem>>, vector<2x512xf32>,
    %c0_18 = arith.constant 0 : index
    %c0_19 = arith.constant 0 : index
    %c0_20 = arith.constant 0 : index
    %109 = vector.load %arg4[%c0_18, %c0_19, %c0_20] : memref<2x4x256xf32, #tpu.memory_space<vmem>>, vector<1x4x256xf32>
    %110 = vector.shape_cast %109 : vector<1x4x256xf32> to vector<4x256xf32>
    %cst_21 = arith.constant dense<0xFF800000> : vector<256xf32>
    %111 = vector.multi_reduction <maximumf>, %110, %cst_21 [0] : vector<4x256xf32> to vector<256xf32>
    %112 = vector.shape_cast %111 : vector<256xf32> to vector<1x256xf32>
    %cst_22 = arith.constant dense<0.000000e+00> : vector<256xf32>
    %113 = vector.multi_reduction <add>, %110, %cst_22 [0] : vector<4x256xf32> to vector<256xf32>
    %114 = vector.shape_cast %113 : vector<256xf32> to vector<1x256xf32>
    %c0_23 = arith.constant 0 : index
    %c128 = arith.constant 128 : index
    %115 = vector.load %arg6[%c0_23, %c128] : memref<2x512xf32, #tpu.memory_space<vmem>>, vector<1x256xf32>
    tpu.vector_store %arg6[%c0_23, %c128], %112 {strides = array<i32>} : memref<2x512xf32, #tpu.memory_space<vmem>>, vector<1x256xf32>,
    %c1_24 = arith.constant 1 : index
    %c128_25 = arith.constant 128 : index
    %116 = vector.load %arg6[%c1_24, %c128_25] : memref<2x512xf32, #tpu.memory_space<vmem>>, vector<1x256xf32>
    tpu.vector_store %arg6[%c1_24, %c128_25], %114 {strides = array<i32>} : memref<2x512xf32, #tpu.memory_space<vmem>>, vector<1x256xf32>,
    %cst_26 = arith.constant 0.000000e+00 : f32
    %117 = vector.broadcast %cst_26 : f32 to vector<1x256xf32>
    %cst_27 = arith.constant 0.000000e+00 : f32
    %118 = vector.broadcast %cst_27 : f32 to vector<1x256xf32>
    %c0_28 = arith.constant 0 : index
    %c77_29 = arith.constant 77 : index
    %119 = vector.load %arg6[%c0_28, %c77_29] : memref<2x512xf32, #tpu.memory_space<vmem>>, vector<2x256xf32>
    %120 = vector.extract_strided_slice %119 {offsets = [0, 0], sizes = [1, 256], strides = [1, 1]} : vector<2x256xf32> to vector<1x256xf32>
    %121 = vector.broadcast %0 : f32 to vector<1x256xf32>
    %122 = arith.mulf %121, %120 : vector<1x256xf32>
    %123 = arith.addf %118, %122 : vector<1x256xf32>
    %124 = vector.extract_strided_slice %119 {offsets = [1, 0], sizes = [1, 256], strides = [1, 1]} : vector<2x256xf32> to vector<1x256xf32>
    %125 = vector.broadcast %49 : f32 to vector<1x256xf32>
    %126 = arith.mulf %125, %124 : vector<1x256xf32>
    %127 = arith.addf %123, %126 : vector<1x256xf32>
    %c0_30 = arith.constant 0 : index
    %c93_31 = arith.constant 93 : index
    %128 = vector.load %arg6[%c0_30, %c93_31] : memref<2x512xf32, #tpu.memory_space<vmem>>, vector<2x256xf32>
    %129 = vector.extract_strided_slice %128 {offsets = [0, 0], sizes = [1, 256], strides = [1, 1]} : vector<2x256xf32> to vector<1x256xf32>
    %130 = vector.broadcast %7 : f32 to vector<1x256xf32>
    %131 = arith.mulf %130, %129 : vector<1x256xf32>
    %132 = arith.addf %127, %131 : vector<1x256xf32>
    %133 = vector.extract_strided_slice %128 {offsets = [1, 0], sizes = [1, 256], strides = [1, 1]} : vector<2x256xf32> to vector<1x256xf32>
    %134 = vector.broadcast %56 : f32 to vector<1x256xf32>
    %135 = arith.mulf %134, %133 : vector<1x256xf32>
    %136 = arith.addf %132, %135 : vector<1x256xf32>
    %c0_32 = arith.constant 0 : index
    %c109 = arith.constant 109 : index
    %137 = vector.load %arg6[%c0_32, %c109] : memref<2x512xf32, #tpu.memory_space<vmem>>, vector<2x256xf32>
    %138 = vector.extract_strided_slice %137 {offsets = [0, 0], sizes = [1, 256], strides = [1, 1]} : vector<2x256xf32> to vector<1x256xf32>
    %139 = vector.broadcast %14 : f32 to vector<1x256xf32>
    %140 = arith.mulf %139, %138 : vector<1x256xf32>
    %141 = arith.addf %136, %140 : vector<1x256xf32>
    %142 = vector.extract_strided_slice %137 {offsets = [1, 0], sizes = [1, 256], strides = [1, 1]} : vector<2x256xf32> to vector<1x256xf32>
    %143 = vector.broadcast %63 : f32 to vector<1x256xf32>
    %144 = arith.mulf %143, %142 : vector<1x256xf32>
    %145 = arith.addf %141, %144 : vector<1x256xf32>
    %c0_33 = arith.constant 0 : index
    %c125 = arith.constant 125 : index
    %146 = vector.load %arg6[%c0_33, %c125] : memref<2x512xf32, #tpu.memory_space<vmem>>, vector<2x256xf32>
    %147 = vector.extract_strided_slice %146 {offsets = [0, 0], sizes = [1, 256], strides = [1, 1]} : vector<2x256xf32> to vector<1x256xf32>
    %148 = vector.broadcast %21 : f32 to vector<1x256xf32>
    %149 = arith.mulf %148, %147 : vector<1x256xf32>
    %150 = arith.addf %145, %149 : vector<1x256xf32>
    %151 = vector.extract_strided_slice %146 {offsets = [1, 0], sizes = [1, 256], strides = [1, 1]} : vector<2x256xf32> to vector<1x256xf32>
    %152 = vector.broadcast %70 : f32 to vector<1x256xf32>
    %153 = arith.mulf %152, %151 : vector<1x256xf32>
    %154 = arith.addf %150, %153 : vector<1x256xf32>
    %c0_34 = arith.constant 0 : index
    %c141 = arith.constant 141 : index
    %155 = vector.load %arg6[%c0_34, %c141] : memref<2x512xf32, #tpu.memory_space<vmem>>, vector<2x256xf32>
    %156 = vector.extract_strided_slice %155 {offsets = [0, 0], sizes = [1, 256], strides = [1, 1]} : vector<2x256xf32> to vector<1x256xf32>
    %157 = vector.broadcast %28 : f32 to vector<1x256xf32>
    %158 = arith.mulf %157, %156 : vector<1x256xf32>
    %159 = arith.addf %154, %158 : vector<1x256xf32>
    %160 = vector.extract_strided_slice %155 {offsets = [1, 0], sizes = [1, 256], strides = [1, 1]} : vector<2x256xf32> to vector<1x256xf32>
    %161 = vector.broadcast %77 : f32 to vector<1x256xf32>
    %162 = arith.mulf %161, %160 : vector<1x256xf32>
    %163 = arith.addf %159, %162 : vector<1x256xf32>
    %c0_35 = arith.constant 0 : index
    %c157 = arith.constant 157 : index
    %164 = vector.load %arg6[%c0_35, %c157] : memref<2x512xf32, #tpu.memory_space<vmem>>, vector<2x256xf32>
    %165 = vector.extract_strided_slice %164 {offsets = [0, 0], sizes = [1, 256], strides = [1, 1]} : vector<2x256xf32> to vector<1x256xf32>
    %166 = vector.broadcast %35 : f32 to vector<1x256xf32>
    %167 = arith.mulf %166, %165 : vector<1x256xf32>
    %168 = arith.addf %163, %167 : vector<1x256xf32>
    %169 = vector.extract_strided_slice %164 {offsets = [1, 0], sizes = [1, 256], strides = [1, 1]} : vector<2x256xf32> to vector<1x256xf32>
    %170 = vector.broadcast %84 : f32 to vector<1x256xf32>
    %171 = arith.mulf %170, %169 : vector<1x256xf32>
    %172 = arith.addf %168, %171 : vector<1x256xf32>
    %c0_36 = arith.constant 0 : index
    %c173 = arith.constant 173 : index
    %173 = vector.load %arg6[%c0_36, %c173] : memref<2x512xf32, #tpu.memory_space<vmem>>, vector<2x256xf32>
    %174 = vector.extract_strided_slice %173 {offsets = [0, 0], sizes = [1, 256], strides = [1, 1]} : vector<2x256xf32> to vector<1x256xf32>
    %175 = vector.broadcast %42 : f32 to vector<1x256xf32>
    %176 = arith.mulf %175, %174 : vector<1x256xf32>
    %177 = arith.addf %172, %176 : vector<1x256xf32>
    %178 = vector.extract_strided_slice %173 {offsets = [1, 0], sizes = [1, 256], strides = [1, 1]} : vector<2x256xf32> to vector<1x256xf32>
    %179 = vector.broadcast %91 : f32 to vector<1x256xf32>
    %180 = arith.mulf %179, %178 : vector<1x256xf32>
    %181 = arith.addf %177, %180 : vector<1x256xf32>
    %182 = arith.mulf %100, %181 : vector<1x256xf32>
    %183 = arith.addf %117, %182 : vector<1x256xf32>
    %cst_37 = arith.constant 0.000000e+00 : f32
    %184 = vector.broadcast %cst_37 : f32 to vector<1x256xf32>
    %c0_38 = arith.constant 0 : index
    %c78_39 = arith.constant 78 : index
    %185 = vector.load %arg6[%c0_38, %c78_39] : memref<2x512xf32, #tpu.memory_space<vmem>>, vector<2x256xf32>
    %186 = vector.extract_strided_slice %185 {offsets = [0, 0], sizes = [1, 256], strides = [1, 1]} : vector<2x256xf32> to vector<1x256xf32>
    %187 = vector.broadcast %1 : f32 to vector<1x256xf32>
    %188 = arith.mulf %187, %186 : vector<1x256xf32>
    %189 = arith.addf %184, %188 : vector<1x256xf32>
    %190 = vector.extract_strided_slice %185 {offsets = [1, 0], sizes = [1, 256], strides = [1, 1]} : vector<2x256xf32> to vector<1x256xf32>
    %191 = vector.broadcast %50 : f32 to vector<1x256xf32>
    %192 = arith.mulf %191, %190 : vector<1x256xf32>
    %193 = arith.addf %189, %192 : vector<1x256xf32>
    %c0_40 = arith.constant 0 : index
    %c94_41 = arith.constant 94 : index
    %194 = vector.load %arg6[%c0_40, %c94_41] : memref<2x512xf32, #tpu.memory_space<vmem>>, vector<2x256xf32>
    %195 = vector.extract_strided_slice %194 {offsets = [0, 0], sizes = [1, 256], strides = [1, 1]} : vector<2x256xf32> to vector<1x256xf32>
    %196 = vector.broadcast %8 : f32 to vector<1x256xf32>
    %197 = arith.mulf %196, %195 : vector<1x256xf32>
    %198 = arith.addf %193, %197 : vector<1x256xf32>
    %199 = vector.extract_strided_slice %194 {offsets = [1, 0], sizes = [1, 256], strides = [1, 1]} : vector<2x256xf32> to vector<1x256xf32>
    %200 = vector.broadcast %57 : f32 to vector<1x256xf32>
    %201 = arith.mulf %200, %199 : vector<1x256xf32>
    %202 = arith.addf %198, %201 : vector<1x256xf32>
    %c0_42 = arith.constant 0 : index
    %c110 = arith.constant 110 : index
    %203 = vector.load %arg6[%c0_42, %c110] : memref<2x512xf32, #tpu.memory_space<vmem>>, vector<2x256xf32>
    %204 = vector.extract_strided_slice %203 {offsets = [0, 0], sizes = [1, 256], strides = [1, 1]} : vector<2x256xf32> to vector<1x256xf32>
    %205 = vector.broadcast %15 : f32 to vector<1x256xf32>
    %206 = arith.mulf %205, %204 : vector<1x256xf32>
    %207 = arith.addf %202, %206 : vector<1x256xf32>
    %208 = vector.extract_strided_slice %203 {offsets = [1, 0], sizes = [1, 256], strides = [1, 1]} : vector<2x256xf32> to vector<1x256xf32>
    %209 = vector.broadcast %64 : f32 to vector<1x256xf32>
    %210 = arith.mulf %209, %208 : vector<1x256xf32>
    %211 = arith.addf %207, %210 : vector<1x256xf32>
    %c0_43 = arith.constant 0 : index
    %c126 = arith.constant 126 : index
    %212 = vector.load %arg6[%c0_43, %c126] : memref<2x512xf32, #tpu.memory_space<vmem>>, vector<2x256xf32>
    %213 = vector.extract_strided_slice %212 {offsets = [0, 0], sizes = [1, 256], strides = [1, 1]} : vector<2x256xf32> to vector<1x256xf32>
    %214 = vector.broadcast %22 : f32 to vector<1x256xf32>
    %215 = arith.mulf %214, %213 : vector<1x256xf32>
    %216 = arith.addf %211, %215 : vector<1x256xf32>
    %217 = vector.extract_strided_slice %212 {offsets = [1, 0], sizes = [1, 256], strides = [1, 1]} : vector<2x256xf32> to vector<1x256xf32>
    %218 = vector.broadcast %71 : f32 to vector<1x256xf32>
    %219 = arith.mulf %218, %217 : vector<1x256xf32>
    %220 = arith.addf %216, %219 : vector<1x256xf32>
    %c0_44 = arith.constant 0 : index
    %c142 = arith.constant 142 : index
    %221 = vector.load %arg6[%c0_44, %c142] : memref<2x512xf32, #tpu.memory_space<vmem>>, vector<2x256xf32>
    %222 = vector.extract_strided_slice %221 {offsets = [0, 0], sizes = [1, 256], strides = [1, 1]} : vector<2x256xf32> to vector<1x256xf32>
    %223 = vector.broadcast %29 : f32 to vector<1x256xf32>
    %224 = arith.mulf %223, %222 : vector<1x256xf32>
    %225 = arith.addf %220, %224 : vector<1x256xf32>
    %226 = vector.extract_strided_slice %221 {offsets = [1, 0], sizes = [1, 256], strides = [1, 1]} : vector<2x256xf32> to vector<1x256xf32>
    %227 = vector.broadcast %78 : f32 to vector<1x256xf32>
    %228 = arith.mulf %227, %226 : vector<1x256xf32>
    %229 = arith.addf %225, %228 : vector<1x256xf32>
    %c0_45 = arith.constant 0 : index
    %c158 = arith.constant 158 : index
    %230 = vector.load %arg6[%c0_45, %c158] : memref<2x512xf32, #tpu.memory_space<vmem>>, vector<2x256xf32>
    %231 = vector.extract_strided_slice %230 {offsets = [0, 0], sizes = [1, 256], strides = [1, 1]} : vector<2x256xf32> to vector<1x256xf32>
    %232 = vector.broadcast %36 : f32 to vector<1x256xf32>
    %233 = arith.mulf %232, %231 : vector<1x256xf32>
    %234 = arith.addf %229, %233 : vector<1x256xf32>
    %235 = vector.extract_strided_slice %230 {offsets = [1, 0], sizes = [1, 256], strides = [1, 1]} : vector<2x256xf32> to vector<1x256xf32>
    %236 = vector.broadcast %85 : f32 to vector<1x256xf32>
    %237 = arith.mulf %236, %235 : vector<1x256xf32>
    %238 = arith.addf %234, %237 : vector<1x256xf32>
    %c0_46 = arith.constant 0 : index
    %c174 = arith.constant 174 : index
    %239 = vector.load %arg6[%c0_46, %c174] : memref<2x512xf32, #tpu.memory_space<vmem>>, vector<2x256xf32>
    %240 = vector.extract_strided_slice %239 {offsets = [0, 0], sizes = [1, 256], strides = [1, 1]} : vector<2x256xf32> to vector<1x256xf32>
    %241 = vector.broadcast %43 : f32 to vector<1x256xf32>
    %242 = arith.mulf %241, %240 : vector<1x256xf32>
    %243 = arith.addf %238, %242 : vector<1x256xf32>
    %244 = vector.extract_strided_slice %239 {offsets = [1, 0], sizes = [1, 256], strides = [1, 1]} : vector<2x256xf32> to vector<1x256xf32>
    %245 = vector.broadcast %92 : f32 to vector<1x256xf32>
    %246 = arith.mulf %245, %244 : vector<1x256xf32>
    %247 = arith.addf %243, %246 : vector<1x256xf32>
    %248 = arith.mulf %101, %247 : vector<1x256xf32>
    %249 = arith.addf %183, %248 : vector<1x256xf32>
    %cst_47 = arith.constant 0.000000e+00 : f32
    %250 = vector.broadcast %cst_47 : f32 to vector<1x256xf32>
    %c0_48 = arith.constant 0 : index
    %c79_49 = arith.constant 79 : index
    %251 = vector.load %arg6[%c0_48, %c79_49] : memref<2x512xf32, #tpu.memory_space<vmem>>, vector<2x256xf32>
    %252 = vector.extract_strided_slice %251 {offsets = [0, 0], sizes = [1, 256], strides = [1, 1]} : vector<2x256xf32> to vector<1x256xf32>
    %253 = vector.broadcast %2 : f32 to vector<1x256xf32>
    %254 = arith.mulf %253, %252 : vector<1x256xf32>
    %255 = arith.addf %250, %254 : vector<1x256xf32>
    %256 = vector.extract_strided_slice %251 {offsets = [1, 0], sizes = [1, 256], strides = [1, 1]} : vector<2x256xf32> to vector<1x256xf32>
    %257 = vector.broadcast %51 : f32 to vector<1x256xf32>
    %258 = arith.mulf %257, %256 : vector<1x256xf32>
    %259 = arith.addf %255, %258 : vector<1x256xf32>
    %c0_50 = arith.constant 0 : index
    %c95_51 = arith.constant 95 : index
    %260 = vector.load %arg6[%c0_50, %c95_51] : memref<2x512xf32, #tpu.memory_space<vmem>>, vector<2x256xf32>
    %261 = vector.extract_strided_slice %260 {offsets = [0, 0], sizes = [1, 256], strides = [1, 1]} : vector<2x256xf32> to vector<1x256xf32>
    %262 = vector.broadcast %9 : f32 to vector<1x256xf32>
    %263 = arith.mulf %262, %261 : vector<1x256xf32>
    %264 = arith.addf %259, %263 : vector<1x256xf32>
    %265 = vector.extract_strided_slice %260 {offsets = [1, 0], sizes = [1, 256], strides = [1, 1]} : vector<2x256xf32> to vector<1x256xf32>
    %266 = vector.broadcast %58 : f32 to vector<1x256xf32>
    %267 = arith.mulf %266, %265 : vector<1x256xf32>
    %268 = arith.addf %264, %267 : vector<1x256xf32>
    %c0_52 = arith.constant 0 : index
    %c111 = arith.constant 111 : index
    %269 = vector.load %arg6[%c0_52, %c111] : memref<2x512xf32, #tpu.memory_space<vmem>>, vector<2x256xf32>
    %270 = vector.extract_strided_slice %269 {offsets = [0, 0], sizes = [1, 256], strides = [1, 1]} : vector<2x256xf32> to vector<1x256xf32>
    %271 = vector.broadcast %16 : f32 to vector<1x256xf32>
    %272 = arith.mulf %271, %270 : vector<1x256xf32>
    %273 = arith.addf %268, %272 : vector<1x256xf32>
    %274 = vector.extract_strided_slice %269 {offsets = [1, 0], sizes = [1, 256], strides = [1, 1]} : vector<2x256xf32> to vector<1x256xf32>
    %275 = vector.broadcast %65 : f32 to vector<1x256xf32>
    %276 = arith.mulf %275, %274 : vector<1x256xf32>
    %277 = arith.addf %273, %276 : vector<1x256xf32>
    %c0_53 = arith.constant 0 : index
    %c127 = arith.constant 127 : index
    %278 = vector.load %arg6[%c0_53, %c127] : memref<2x512xf32, #tpu.memory_space<vmem>>, vector<2x256xf32>
    %279 = vector.extract_strided_slice %278 {offsets = [0, 0], sizes = [1, 256], strides = [1, 1]} : vector<2x256xf32> to vector<1x256xf32>
    %280 = vector.broadcast %23 : f32 to vector<1x256xf32>
    %281 = arith.mulf %280, %279 : vector<1x256xf32>
    %282 = arith.addf %277, %281 : vector<1x256xf32>
    %283 = vector.extract_strided_slice %278 {offsets = [1, 0], sizes = [1, 256], strides = [1, 1]} : vector<2x256xf32> to vector<1x256xf32>
    %284 = vector.broadcast %72 : f32 to vector<1x256xf32>
    %285 = arith.mulf %284, %283 : vector<1x256xf32>
    %286 = arith.addf %282, %285 : vector<1x256xf32>
    %c0_54 = arith.constant 0 : index
    %c143 = arith.constant 143 : index
    %287 = vector.load %arg6[%c0_54, %c143] : memref<2x512xf32, #tpu.memory_space<vmem>>, vector<2x256xf32>
    %288 = vector.extract_strided_slice %287 {offsets = [0, 0], sizes = [1, 256], strides = [1, 1]} : vector<2x256xf32> to vector<1x256xf32>
    %289 = vector.broadcast %30 : f32 to vector<1x256xf32>
    %290 = arith.mulf %289, %288 : vector<1x256xf32>
    %291 = arith.addf %286, %290 : vector<1x256xf32>
    %292 = vector.extract_strided_slice %287 {offsets = [1, 0], sizes = [1, 256], strides = [1, 1]} : vector<2x256xf32> to vector<1x256xf32>
    %293 = vector.broadcast %79 : f32 to vector<1x256xf32>
    %294 = arith.mulf %293, %292 : vector<1x256xf32>
    %295 = arith.addf %291, %294 : vector<1x256xf32>
    %c0_55 = arith.constant 0 : index
    %c159 = arith.constant 159 : index
    %296 = vector.load %arg6[%c0_55, %c159] : memref<2x512xf32, #tpu.memory_space<vmem>>, vector<2x256xf32>
    %297 = vector.extract_strided_slice %296 {offsets = [0, 0], sizes = [1, 256], strides = [1, 1]} : vector<2x256xf32> to vector<1x256xf32>
    %298 = vector.broadcast %37 : f32 to vector<1x256xf32>
    %299 = arith.mulf %298, %297 : vector<1x256xf32>
    %300 = arith.addf %295, %299 : vector<1x256xf32>
    %301 = vector.extract_strided_slice %296 {offsets = [1, 0], sizes = [1, 256], strides = [1, 1]} : vector<2x256xf32> to vector<1x256xf32>
    %302 = vector.broadcast %86 : f32 to vector<1x256xf32>
    %303 = arith.mulf %302, %301 : vector<1x256xf32>
    %304 = arith.addf %300, %303 : vector<1x256xf32>
    %c0_56 = arith.constant 0 : index
    %c175 = arith.constant 175 : index
    %305 = vector.load %arg6[%c0_56, %c175] : memref<2x512xf32, #tpu.memory_space<vmem>>, vector<2x256xf32>
    %306 = vector.extract_strided_slice %305 {offsets = [0, 0], sizes = [1, 256], strides = [1, 1]} : vector<2x256xf32> to vector<1x256xf32>
    %307 = vector.broadcast %44 : f32 to vector<1x256xf32>
    %308 = arith.mulf %307, %306 : vector<1x256xf32>
    %309 = arith.addf %304, %308 : vector<1x256xf32>
    %310 = vector.extract_strided_slice %305 {offsets = [1, 0], sizes = [1, 256], strides = [1, 1]} : vector<2x256xf32> to vector<1x256xf32>
    %311 = vector.broadcast %93 : f32 to vector<1x256xf32>
    %312 = arith.mulf %311, %310 : vector<1x256xf32>
    %313 = arith.addf %309, %312 : vector<1x256xf32>
    %314 = arith.mulf %102, %313 : vector<1x256xf32>
    %315 = arith.addf %249, %314 : vector<1x256xf32>
    %cst_57 = arith.constant 0.000000e+00 : f32
    %316 = vector.broadcast %cst_57 : f32 to vector<1x256xf32>
    %c0_58 = arith.constant 0 : index
    %c80_59 = arith.constant 80 : index
    %317 = vector.load %arg6[%c0_58, %c80_59] : memref<2x512xf32, #tpu.memory_space<vmem>>, vector<2x256xf32>
    %318 = vector.extract_strided_slice %317 {offsets = [0, 0], sizes = [1, 256], strides = [1, 1]} : vector<2x256xf32> to vector<1x256xf32>
    %319 = vector.broadcast %3 : f32 to vector<1x256xf32>
    %320 = arith.mulf %319, %318 : vector<1x256xf32>
    %321 = arith.addf %316, %320 : vector<1x256xf32>
    %322 = vector.extract_strided_slice %317 {offsets = [1, 0], sizes = [1, 256], strides = [1, 1]} : vector<2x256xf32> to vector<1x256xf32>
    %323 = vector.broadcast %52 : f32 to vector<1x256xf32>
    %324 = arith.mulf %323, %322 : vector<1x256xf32>
    %325 = arith.addf %321, %324 : vector<1x256xf32>
    %c0_60 = arith.constant 0 : index
    %c96_61 = arith.constant 96 : index
    %326 = vector.load %arg6[%c0_60, %c96_61] : memref<2x512xf32, #tpu.memory_space<vmem>>, vector<2x256xf32>
    %327 = vector.extract_strided_slice %326 {offsets = [0, 0], sizes = [1, 256], strides = [1, 1]} : vector<2x256xf32> to vector<1x256xf32>
    %328 = vector.broadcast %10 : f32 to vector<1x256xf32>
    %329 = arith.mulf %328, %327 : vector<1x256xf32>
    %330 = arith.addf %325, %329 : vector<1x256xf32>
    %331 = vector.extract_strided_slice %326 {offsets = [1, 0], sizes = [1, 256], strides = [1, 1]} : vector<2x256xf32> to vector<1x256xf32>
    %332 = vector.broadcast %59 : f32 to vector<1x256xf32>
    %333 = arith.mulf %332, %331 : vector<1x256xf32>
    %334 = arith.addf %330, %333 : vector<1x256xf32>
    %c0_62 = arith.constant 0 : index
    %c112 = arith.constant 112 : index
    %335 = vector.load %arg6[%c0_62, %c112] : memref<2x512xf32, #tpu.memory_space<vmem>>, vector<2x256xf32>
    %336 = vector.extract_strided_slice %335 {offsets = [0, 0], sizes = [1, 256], strides = [1, 1]} : vector<2x256xf32> to vector<1x256xf32>
    %337 = vector.broadcast %17 : f32 to vector<1x256xf32>
    %338 = arith.mulf %337, %336 : vector<1x256xf32>
    %339 = arith.addf %334, %338 : vector<1x256xf32>
    %340 = vector.extract_strided_slice %335 {offsets = [1, 0], sizes = [1, 256], strides = [1, 1]} : vector<2x256xf32> to vector<1x256xf32>
    %341 = vector.broadcast %66 : f32 to vector<1x256xf32>
    %342 = arith.mulf %341, %340 : vector<1x256xf32>
    %343 = arith.addf %339, %342 : vector<1x256xf32>
    %c0_63 = arith.constant 0 : index
    %c128_64 = arith.constant 128 : index
    %344 = vector.load %arg6[%c0_63, %c128_64] : memref<2x512xf32, #tpu.memory_space<vmem>>, vector<2x256xf32>
    %345 = vector.extract_strided_slice %344 {offsets = [0, 0], sizes = [1, 256], strides = [1, 1]} : vector<2x256xf32> to vector<1x256xf32>
    %346 = vector.broadcast %24 : f32 to vector<1x256xf32>
    %347 = arith.mulf %346, %345 : vector<1x256xf32>
    %348 = arith.addf %343, %347 : vector<1x256xf32>
    %349 = vector.extract_strided_slice %344 {offsets = [1, 0], sizes = [1, 256], strides = [1, 1]} : vector<2x256xf32> to vector<1x256xf32>
    %350 = vector.broadcast %73 : f32 to vector<1x256xf32>
    %351 = arith.mulf %350, %349 : vector<1x256xf32>
    %352 = arith.addf %348, %351 : vector<1x256xf32>
    %c0_65 = arith.constant 0 : index
    %c144 = arith.constant 144 : index
    %353 = vector.load %arg6[%c0_65, %c144] : memref<2x512xf32, #tpu.memory_space<vmem>>, vector<2x256xf32>
    %354 = vector.extract_strided_slice %353 {offsets = [0, 0], sizes = [1, 256], strides = [1, 1]} : vector<2x256xf32> to vector<1x256xf32>
    %355 = vector.broadcast %31 : f32 to vector<1x256xf32>
    %356 = arith.mulf %355, %354 : vector<1x256xf32>
    %357 = arith.addf %352, %356 : vector<1x256xf32>
    %358 = vector.extract_strided_slice %353 {offsets = [1, 0], sizes = [1, 256], strides = [1, 1]} : vector<2x256xf32> to vector<1x256xf32>
    %359 = vector.broadcast %80 : f32 to vector<1x256xf32>
    %360 = arith.mulf %359, %358 : vector<1x256xf32>
    %361 = arith.addf %357, %360 : vector<1x256xf32>
    %c0_66 = arith.constant 0 : index
    %c160 = arith.constant 160 : index
    %362 = vector.load %arg6[%c0_66, %c160] : memref<2x512xf32, #tpu.memory_space<vmem>>, vector<2x256xf32>
    %363 = vector.extract_strided_slice %362 {offsets = [0, 0], sizes = [1, 256], strides = [1, 1]} : vector<2x256xf32> to vector<1x256xf32>
    %364 = vector.broadcast %38 : f32 to vector<1x256xf32>
    %365 = arith.mulf %364, %363 : vector<1x256xf32>
    %366 = arith.addf %361, %365 : vector<1x256xf32>
    %367 = vector.extract_strided_slice %362 {offsets = [1, 0], sizes = [1, 256], strides = [1, 1]} : vector<2x256xf32> to vector<1x256xf32>
    %368 = vector.broadcast %87 : f32 to vector<1x256xf32>
    %369 = arith.mulf %368, %367 : vector<1x256xf32>
    %370 = arith.addf %366, %369 : vector<1x256xf32>
    %c0_67 = arith.constant 0 : index
    %c176 = arith.constant 176 : index
    %371 = vector.load %arg6[%c0_67, %c176] : memref<2x512xf32, #tpu.memory_space<vmem>>, vector<2x256xf32>
    %372 = vector.extract_strided_slice %371 {offsets = [0, 0], sizes = [1, 256], strides = [1, 1]} : vector<2x256xf32> to vector<1x256xf32>
    %373 = vector.broadcast %45 : f32 to vector<1x256xf32>
    %374 = arith.mulf %373, %372 : vector<1x256xf32>
    %375 = arith.addf %370, %374 : vector<1x256xf32>
    %376 = vector.extract_strided_slice %371 {offsets = [1, 0], sizes = [1, 256], strides = [1, 1]} : vector<2x256xf32> to vector<1x256xf32>
    %377 = vector.broadcast %94 : f32 to vector<1x256xf32>
    %378 = arith.mulf %377, %376 : vector<1x256xf32>
    %379 = arith.addf %375, %378 : vector<1x256xf32>
    %380 = arith.mulf %103, %379 : vector<1x256xf32>
    %381 = arith.addf %315, %380 : vector<1x256xf32>
    %cst_68 = arith.constant 0.000000e+00 : f32
    %382 = vector.broadcast %cst_68 : f32 to vector<1x256xf32>
    %c0_69 = arith.constant 0 : index
    %c81_70 = arith.constant 81 : index
    %383 = vector.load %arg6[%c0_69, %c81_70] : memref<2x512xf32, #tpu.memory_space<vmem>>, vector<2x256xf32>
    %384 = vector.extract_strided_slice %383 {offsets = [0, 0], sizes = [1, 256], strides = [1, 1]} : vector<2x256xf32> to vector<1x256xf32>
    %385 = vector.broadcast %4 : f32 to vector<1x256xf32>
    %386 = arith.mulf %385, %384 : vector<1x256xf32>
    %387 = arith.addf %382, %386 : vector<1x256xf32>
    %388 = vector.extract_strided_slice %383 {offsets = [1, 0], sizes = [1, 256], strides = [1, 1]} : vector<2x256xf32> to vector<1x256xf32>
    %389 = vector.broadcast %53 : f32 to vector<1x256xf32>
    %390 = arith.mulf %389, %388 : vector<1x256xf32>
    %391 = arith.addf %387, %390 : vector<1x256xf32>
    %c0_71 = arith.constant 0 : index
    %c97_72 = arith.constant 97 : index
    %392 = vector.load %arg6[%c0_71, %c97_72] : memref<2x512xf32, #tpu.memory_space<vmem>>, vector<2x256xf32>
    %393 = vector.extract_strided_slice %392 {offsets = [0, 0], sizes = [1, 256], strides = [1, 1]} : vector<2x256xf32> to vector<1x256xf32>
    %394 = vector.broadcast %11 : f32 to vector<1x256xf32>
    %395 = arith.mulf %394, %393 : vector<1x256xf32>
    %396 = arith.addf %391, %395 : vector<1x256xf32>
    %397 = vector.extract_strided_slice %392 {offsets = [1, 0], sizes = [1, 256], strides = [1, 1]} : vector<2x256xf32> to vector<1x256xf32>
    %398 = vector.broadcast %60 : f32 to vector<1x256xf32>
    %399 = arith.mulf %398, %397 : vector<1x256xf32>
    %400 = arith.addf %396, %399 : vector<1x256xf32>
    %c0_73 = arith.constant 0 : index
    %c113 = arith.constant 113 : index
    %401 = vector.load %arg6[%c0_73, %c113] : memref<2x512xf32, #tpu.memory_space<vmem>>, vector<2x256xf32>
    %402 = vector.extract_strided_slice %401 {offsets = [0, 0], sizes = [1, 256], strides = [1, 1]} : vector<2x256xf32> to vector<1x256xf32>
    %403 = vector.broadcast %18 : f32 to vector<1x256xf32>
    %404 = arith.mulf %403, %402 : vector<1x256xf32>
    %405 = arith.addf %400, %404 : vector<1x256xf32>
    %406 = vector.extract_strided_slice %401 {offsets = [1, 0], sizes = [1, 256], strides = [1, 1]} : vector<2x256xf32> to vector<1x256xf32>
    %407 = vector.broadcast %67 : f32 to vector<1x256xf32>
    %408 = arith.mulf %407, %406 : vector<1x256xf32>
    %409 = arith.addf %405, %408 : vector<1x256xf32>
    %c0_74 = arith.constant 0 : index
    %c129 = arith.constant 129 : index
    %410 = vector.load %arg6[%c0_74, %c129] : memref<2x512xf32, #tpu.memory_space<vmem>>, vector<2x256xf32>
    %411 = vector.extract_strided_slice %410 {offsets = [0, 0], sizes = [1, 256], strides = [1, 1]} : vector<2x256xf32> to vector<1x256xf32>
    %412 = vector.broadcast %25 : f32 to vector<1x256xf32>
    %413 = arith.mulf %412, %411 : vector<1x256xf32>
    %414 = arith.addf %409, %413 : vector<1x256xf32>
    %415 = vector.extract_strided_slice %410 {offsets = [1, 0], sizes = [1, 256], strides = [1, 1]} : vector<2x256xf32> to vector<1x256xf32>
    %416 = vector.broadcast %74 : f32 to vector<1x256xf32>
    %417 = arith.mulf %416, %415 : vector<1x256xf32>
    %418 = arith.addf %414, %417 : vector<1x256xf32>
    %c0_75 = arith.constant 0 : index
    %c145 = arith.constant 145 : index
    %419 = vector.load %arg6[%c0_75, %c145] : memref<2x512xf32, #tpu.memory_space<vmem>>, vector<2x256xf32>
    %420 = vector.extract_strided_slice %419 {offsets = [0, 0], sizes = [1, 256], strides = [1, 1]} : vector<2x256xf32> to vector<1x256xf32>
    %421 = vector.broadcast %32 : f32 to vector<1x256xf32>
    %422 = arith.mulf %421, %420 : vector<1x256xf32>
    %423 = arith.addf %418, %422 : vector<1x256xf32>
    %424 = vector.extract_strided_slice %419 {offsets = [1, 0], sizes = [1, 256], strides = [1, 1]} : vector<2x256xf32> to vector<1x256xf32>
    %425 = vector.broadcast %81 : f32 to vector<1x256xf32>
    %426 = arith.mulf %425, %424 : vector<1x256xf32>
    %427 = arith.addf %423, %426 : vector<1x256xf32>
    %c0_76 = arith.constant 0 : index
    %c161 = arith.constant 161 : index
    %428 = vector.load %arg6[%c0_76, %c161] : memref<2x512xf32, #tpu.memory_space<vmem>>, vector<2x256xf32>
    %429 = vector.extract_strided_slice %428 {offsets = [0, 0], sizes = [1, 256], strides = [1, 1]} : vector<2x256xf32> to vector<1x256xf32>
    %430 = vector.broadcast %39 : f32 to vector<1x256xf32>
    %431 = arith.mulf %430, %429 : vector<1x256xf32>
    %432 = arith.addf %427, %431 : vector<1x256xf32>
    %433 = vector.extract_strided_slice %428 {offsets = [1, 0], sizes = [1, 256], strides = [1, 1]} : vector<2x256xf32> to vector<1x256xf32>
    %434 = vector.broadcast %88 : f32 to vector<1x256xf32>
    %435 = arith.mulf %434, %433 : vector<1x256xf32>
    %436 = arith.addf %432, %435 : vector<1x256xf32>
    %c0_77 = arith.constant 0 : index
    %c177 = arith.constant 177 : index
    %437 = vector.load %arg6[%c0_77, %c177] : memref<2x512xf32, #tpu.memory_space<vmem>>, vector<2x256xf32>
    %438 = vector.extract_strided_slice %437 {offsets = [0, 0], sizes = [1, 256], strides = [1, 1]} : vector<2x256xf32> to vector<1x256xf32>
    %439 = vector.broadcast %46 : f32 to vector<1x256xf32>
    %440 = arith.mulf %439, %438 : vector<1x256xf32>
    %441 = arith.addf %436, %440 : vector<1x256xf32>
    %442 = vector.extract_strided_slice %437 {offsets = [1, 0], sizes = [1, 256], strides = [1, 1]} : vector<2x256xf32> to vector<1x256xf32>
    %443 = vector.broadcast %95 : f32 to vector<1x256xf32>
    %444 = arith.mulf %443, %442 : vector<1x256xf32>
    %445 = arith.addf %441, %444 : vector<1x256xf32>
    %446 = arith.mulf %104, %445 : vector<1x256xf32>
    %447 = arith.addf %381, %446 : vector<1x256xf32>
    %cst_78 = arith.constant 0.000000e+00 : f32
    %448 = vector.broadcast %cst_78 : f32 to vector<1x256xf32>
    %c0_79 = arith.constant 0 : index
    %c82_80 = arith.constant 82 : index
    %449 = vector.load %arg6[%c0_79, %c82_80] : memref<2x512xf32, #tpu.memory_space<vmem>>, vector<2x256xf32>
    %450 = vector.extract_strided_slice %449 {offsets = [0, 0], sizes = [1, 256], strides = [1, 1]} : vector<2x256xf32> to vector<1x256xf32>
    %451 = vector.broadcast %5 : f32 to vector<1x256xf32>
    %452 = arith.mulf %451, %450 : vector<1x256xf32>
    %453 = arith.addf %448, %452 : vector<1x256xf32>
    %454 = vector.extract_strided_slice %449 {offsets = [1, 0], sizes = [1, 256], strides = [1, 1]} : vector<2x256xf32> to vector<1x256xf32>
    %455 = vector.broadcast %54 : f32 to vector<1x256xf32>
    %456 = arith.mulf %455, %454 : vector<1x256xf32>
    %457 = arith.addf %453, %456 : vector<1x256xf32>
    %c0_81 = arith.constant 0 : index
    %c98 = arith.constant 98 : index
    %458 = vector.load %arg6[%c0_81, %c98] : memref<2x512xf32, #tpu.memory_space<vmem>>, vector<2x256xf32>
    %459 = vector.extract_strided_slice %458 {offsets = [0, 0], sizes = [1, 256], strides = [1, 1]} : vector<2x256xf32> to vector<1x256xf32>
    %460 = vector.broadcast %12 : f32 to vector<1x256xf32>
    %461 = arith.mulf %460, %459 : vector<1x256xf32>
    %462 = arith.addf %457, %461 : vector<1x256xf32>
    %463 = vector.extract_strided_slice %458 {offsets = [1, 0], sizes = [1, 256], strides = [1, 1]} : vector<2x256xf32> to vector<1x256xf32>
    %464 = vector.broadcast %61 : f32 to vector<1x256xf32>
    %465 = arith.mulf %464, %463 : vector<1x256xf32>
    %466 = arith.addf %462, %465 : vector<1x256xf32>
    %c0_82 = arith.constant 0 : index
    %c114 = arith.constant 114 : index
    %467 = vector.load %arg6[%c0_82, %c114] : memref<2x512xf32, #tpu.memory_space<vmem>>, vector<2x256xf32>
    %468 = vector.extract_strided_slice %467 {offsets = [0, 0], sizes = [1, 256], strides = [1, 1]} : vector<2x256xf32> to vector<1x256xf32>
    %469 = vector.broadcast %19 : f32 to vector<1x256xf32>
    %470 = arith.mulf %469, %468 : vector<1x256xf32>
    %471 = arith.addf %466, %470 : vector<1x256xf32>
    %472 = vector.extract_strided_slice %467 {offsets = [1, 0], sizes = [1, 256], strides = [1, 1]} : vector<2x256xf32> to vector<1x256xf32>
    %473 = vector.broadcast %68 : f32 to vector<1x256xf32>
    %474 = arith.mulf %473, %472 : vector<1x256xf32>
    %475 = arith.addf %471, %474 : vector<1x256xf32>
    %c0_83 = arith.constant 0 : index
    %c130 = arith.constant 130 : index
    %476 = vector.load %arg6[%c0_83, %c130] : memref<2x512xf32, #tpu.memory_space<vmem>>, vector<2x256xf32>
    %477 = vector.extract_strided_slice %476 {offsets = [0, 0], sizes = [1, 256], strides = [1, 1]} : vector<2x256xf32> to vector<1x256xf32>
    %478 = vector.broadcast %26 : f32 to vector<1x256xf32>
    %479 = arith.mulf %478, %477 : vector<1x256xf32>
    %480 = arith.addf %475, %479 : vector<1x256xf32>
    %481 = vector.extract_strided_slice %476 {offsets = [1, 0], sizes = [1, 256], strides = [1, 1]} : vector<2x256xf32> to vector<1x256xf32>
    %482 = vector.broadcast %75 : f32 to vector<1x256xf32>
    %483 = arith.mulf %482, %481 : vector<1x256xf32>
    %484 = arith.addf %480, %483 : vector<1x256xf32>
    %c0_84 = arith.constant 0 : index
    %c146 = arith.constant 146 : index
    %485 = vector.load %arg6[%c0_84, %c146] : memref<2x512xf32, #tpu.memory_space<vmem>>, vector<2x256xf32>
    %486 = vector.extract_strided_slice %485 {offsets = [0, 0], sizes = [1, 256], strides = [1, 1]} : vector<2x256xf32> to vector<1x256xf32>
    %487 = vector.broadcast %33 : f32 to vector<1x256xf32>
    %488 = arith.mulf %487, %486 : vector<1x256xf32>
    %489 = arith.addf %484, %488 : vector<1x256xf32>
    %490 = vector.extract_strided_slice %485 {offsets = [1, 0], sizes = [1, 256], strides = [1, 1]} : vector<2x256xf32> to vector<1x256xf32>
    %491 = vector.broadcast %82 : f32 to vector<1x256xf32>
    %492 = arith.mulf %491, %490 : vector<1x256xf32>
    %493 = arith.addf %489, %492 : vector<1x256xf32>
    %c0_85 = arith.constant 0 : index
    %c162 = arith.constant 162 : index
    %494 = vector.load %arg6[%c0_85, %c162] : memref<2x512xf32, #tpu.memory_space<vmem>>, vector<2x256xf32>
    %495 = vector.extract_strided_slice %494 {offsets = [0, 0], sizes = [1, 256], strides = [1, 1]} : vector<2x256xf32> to vector<1x256xf32>
    %496 = vector.broadcast %40 : f32 to vector<1x256xf32>
    %497 = arith.mulf %496, %495 : vector<1x256xf32>
    %498 = arith.addf %493, %497 : vector<1x256xf32>
    %499 = vector.extract_strided_slice %494 {offsets = [1, 0], sizes = [1, 256], strides = [1, 1]} : vector<2x256xf32> to vector<1x256xf32>
    %500 = vector.broadcast %89 : f32 to vector<1x256xf32>
    %501 = arith.mulf %500, %499 : vector<1x256xf32>
    %502 = arith.addf %498, %501 : vector<1x256xf32>
    %c0_86 = arith.constant 0 : index
    %c178 = arith.constant 178 : index
    %503 = vector.load %arg6[%c0_86, %c178] : memref<2x512xf32, #tpu.memory_space<vmem>>, vector<2x256xf32>
    %504 = vector.extract_strided_slice %503 {offsets = [0, 0], sizes = [1, 256], strides = [1, 1]} : vector<2x256xf32> to vector<1x256xf32>
    %505 = vector.broadcast %47 : f32 to vector<1x256xf32>
    %506 = arith.mulf %505, %504 : vector<1x256xf32>
    %507 = arith.addf %502, %506 : vector<1x256xf32>
    %508 = vector.extract_strided_slice %503 {offsets = [1, 0], sizes = [1, 256], strides = [1, 1]} : vector<2x256xf32> to vector<1x256xf32>
    %509 = vector.broadcast %96 : f32 to vector<1x256xf32>
    %510 = arith.mulf %509, %508 : vector<1x256xf32>
    %511 = arith.addf %507, %510 : vector<1x256xf32>
    %512 = arith.mulf %105, %511 : vector<1x256xf32>
    %513 = arith.addf %447, %512 : vector<1x256xf32>
    %cst_87 = arith.constant 0.000000e+00 : f32
    %514 = vector.broadcast %cst_87 : f32 to vector<1x256xf32>
    %c0_88 = arith.constant 0 : index
    %c83_89 = arith.constant 83 : index
    %515 = vector.load %arg6[%c0_88, %c83_89] : memref<2x512xf32, #tpu.memory_space<vmem>>, vector<2x256xf32>
    %516 = vector.extract_strided_slice %515 {offsets = [0, 0], sizes = [1, 256], strides = [1, 1]} : vector<2x256xf32> to vector<1x256xf32>
    %517 = vector.broadcast %6 : f32 to vector<1x256xf32>
    %518 = arith.mulf %517, %516 : vector<1x256xf32>
    %519 = arith.addf %514, %518 : vector<1x256xf32>
    %520 = vector.extract_strided_slice %515 {offsets = [1, 0], sizes = [1, 256], strides = [1, 1]} : vector<2x256xf32> to vector<1x256xf32>
    %521 = vector.broadcast %55 : f32 to vector<1x256xf32>
    %522 = arith.mulf %521, %520 : vector<1x256xf32>
    %523 = arith.addf %519, %522 : vector<1x256xf32>
    %c0_90 = arith.constant 0 : index
    %c99 = arith.constant 99 : index
    %524 = vector.load %arg6[%c0_90, %c99] : memref<2x512xf32, #tpu.memory_space<vmem>>, vector<2x256xf32>
    %525 = vector.extract_strided_slice %524 {offsets = [0, 0], sizes = [1, 256], strides = [1, 1]} : vector<2x256xf32> to vector<1x256xf32>
    %526 = vector.broadcast %13 : f32 to vector<1x256xf32>
    %527 = arith.mulf %526, %525 : vector<1x256xf32>
    %528 = arith.addf %523, %527 : vector<1x256xf32>
    %529 = vector.extract_strided_slice %524 {offsets = [1, 0], sizes = [1, 256], strides = [1, 1]} : vector<2x256xf32> to vector<1x256xf32>
    %530 = vector.broadcast %62 : f32 to vector<1x256xf32>
    %531 = arith.mulf %530, %529 : vector<1x256xf32>
    %532 = arith.addf %528, %531 : vector<1x256xf32>
    %c0_91 = arith.constant 0 : index
    %c115 = arith.constant 115 : index
    %533 = vector.load %arg6[%c0_91, %c115] : memref<2x512xf32, #tpu.memory_space<vmem>>, vector<2x256xf32>
    %534 = vector.extract_strided_slice %533 {offsets = [0, 0], sizes = [1, 256], strides = [1, 1]} : vector<2x256xf32> to vector<1x256xf32>
    %535 = vector.broadcast %20 : f32 to vector<1x256xf32>
    %536 = arith.mulf %535, %534 : vector<1x256xf32>
    %537 = arith.addf %532, %536 : vector<1x256xf32>
    %538 = vector.extract_strided_slice %533 {offsets = [1, 0], sizes = [1, 256], strides = [1, 1]} : vector<2x256xf32> to vector<1x256xf32>
    %539 = vector.broadcast %69 : f32 to vector<1x256xf32>
    %540 = arith.mulf %539, %538 : vector<1x256xf32>
    %541 = arith.addf %537, %540 : vector<1x256xf32>
    %c0_92 = arith.constant 0 : index
    %c131 = arith.constant 131 : index
    %542 = vector.load %arg6[%c0_92, %c131] : memref<2x512xf32, #tpu.memory_space<vmem>>, vector<2x256xf32>
    %543 = vector.extract_strided_slice %542 {offsets = [0, 0], sizes = [1, 256], strides = [1, 1]} : vector<2x256xf32> to vector<1x256xf32>
    %544 = vector.broadcast %27 : f32 to vector<1x256xf32>
    %545 = arith.mulf %544, %543 : vector<1x256xf32>
    %546 = arith.addf %541, %545 : vector<1x256xf32>
    %547 = vector.extract_strided_slice %542 {offsets = [1, 0], sizes = [1, 256], strides = [1, 1]} : vector<2x256xf32> to vector<1x256xf32>
    %548 = vector.broadcast %76 : f32 to vector<1x256xf32>
    %549 = arith.mulf %548, %547 : vector<1x256xf32>
    %550 = arith.addf %546, %549 : vector<1x256xf32>
    %c0_93 = arith.constant 0 : index
    %c147 = arith.constant 147 : index
    %551 = vector.load %arg6[%c0_93, %c147] : memref<2x512xf32, #tpu.memory_space<vmem>>, vector<2x256xf32>
    %552 = vector.extract_strided_slice %551 {offsets = [0, 0], sizes = [1, 256], strides = [1, 1]} : vector<2x256xf32> to vector<1x256xf32>
    %553 = vector.broadcast %34 : f32 to vector<1x256xf32>
    %554 = arith.mulf %553, %552 : vector<1x256xf32>
    %555 = arith.addf %550, %554 : vector<1x256xf32>
    %556 = vector.extract_strided_slice %551 {offsets = [1, 0], sizes = [1, 256], strides = [1, 1]} : vector<2x256xf32> to vector<1x256xf32>
    %557 = vector.broadcast %83 : f32 to vector<1x256xf32>
    %558 = arith.mulf %557, %556 : vector<1x256xf32>
    %559 = arith.addf %555, %558 : vector<1x256xf32>
    %c0_94 = arith.constant 0 : index
    %c163 = arith.constant 163 : index
    %560 = vector.load %arg6[%c0_94, %c163] : memref<2x512xf32, #tpu.memory_space<vmem>>, vector<2x256xf32>
    %561 = vector.extract_strided_slice %560 {offsets = [0, 0], sizes = [1, 256], strides = [1, 1]} : vector<2x256xf32> to vector<1x256xf32>
    %562 = vector.broadcast %41 : f32 to vector<1x256xf32>
    %563 = arith.mulf %562, %561 : vector<1x256xf32>
    %564 = arith.addf %559, %563 : vector<1x256xf32>
    %565 = vector.extract_strided_slice %560 {offsets = [1, 0], sizes = [1, 256], strides = [1, 1]} : vector<2x256xf32> to vector<1x256xf32>
    %566 = vector.broadcast %90 : f32 to vector<1x256xf32>
    %567 = arith.mulf %566, %565 : vector<1x256xf32>
    %568 = arith.addf %564, %567 : vector<1x256xf32>
    %c0_95 = arith.constant 0 : index
    %c179 = arith.constant 179 : index
    %569 = vector.load %arg6[%c0_95, %c179] : memref<2x512xf32, #tpu.memory_space<vmem>>, vector<2x256xf32>
    %570 = vector.extract_strided_slice %569 {offsets = [0, 0], sizes = [1, 256], strides = [1, 1]} : vector<2x256xf32> to vector<1x256xf32>
    %571 = vector.broadcast %48 : f32 to vector<1x256xf32>
    %572 = arith.mulf %571, %570 : vector<1x256xf32>
    %573 = arith.addf %568, %572 : vector<1x256xf32>
    %574 = vector.extract_strided_slice %569 {offsets = [1, 0], sizes = [1, 256], strides = [1, 1]} : vector<2x256xf32> to vector<1x256xf32>
    %575 = vector.broadcast %97 : f32 to vector<1x256xf32>
    %576 = arith.mulf %575, %574 : vector<1x256xf32>
    %577 = arith.addf %573, %576 : vector<1x256xf32>
    %578 = arith.mulf %106, %577 : vector<1x256xf32>
    %579 = arith.addf %513, %578 : vector<1x256xf32>
    %580 = vector.broadcast %98 : f32 to vector<1x256xf32>
    %581 = arith.mulf %579, %580 : vector<1x256xf32>
    %582 = vector.broadcast %99 : f32 to vector<1x256xf32>
    %583 = arith.addf %581, %582 : vector<1x256xf32>
    %584 = arith.negf %583 : vector<1x256xf32>
    %585 = math.exp %584 : vector<1x256xf32>
    %cst_96 = arith.constant 1.000000e+00 : f32
    %586 = vector.broadcast %cst_96 : f32 to vector<1x256xf32>
    %587 = arith.addf %586, %585 : vector<1x256xf32>
    %588 = arith.divf %586, %587 : vector<1x256xf32>
    %c0_97 = arith.constant 0 : index
    %c0_98 = arith.constant 0 : index
    %c0_99 = arith.constant 0 : index
    %589 = vector.load %arg4[%c0_97, %c0_98, %c0_99] : memref<2x4x256xf32, #tpu.memory_space<vmem>>, vector<1x4x256xf32>
    %590 = vector.shape_cast %589 : vector<1x4x256xf32> to vector<4x256xf32>
    %591 = vector.broadcast %588 : vector<1x256xf32> to vector<4x256xf32>
    %592 = arith.mulf %590, %591 : vector<4x256xf32>
    %c0_100 = arith.constant 0 : index
    %c0_101 = arith.constant 0 : index
    %c0_102 = arith.constant 0 : index
    %593 = vector.load %arg5[%c0_100, %c0_101, %c0_102] : memref<2x4x256xf32, #tpu.memory_space<vmem>>, vector<1x4x256xf32>
    %594 = vector.shape_cast %593 : vector<1x4x256xf32> to vector<4x256xf32>
    %595 = vector.shape_cast %592 : vector<4x256xf32> to vector<1x4x256xf32>
    tpu.vector_store %arg5[%c0_100, %c0_101, %c0_102], %595 {strides = array<i32>} : memref<2x4x256xf32, #tpu.memory_space<vmem>>, vector<1x4x256xf32>,
    %c1_103 = arith.constant 1 : index
    %c0_104 = arith.constant 0 : index
    %c0_105 = arith.constant 0 : index
    %596 = vector.load %arg4[%c1_103, %c0_104, %c0_105] : memref<2x4x256xf32, #tpu.memory_space<vmem>>, vector<1x4x256xf32>
    %597 = vector.shape_cast %596 : vector<1x4x256xf32> to vector<4x256xf32>
    %cst_106 = arith.constant dense<0xFF800000> : vector<256xf32>
    %598 = vector.multi_reduction <maximumf>, %597, %cst_106 [0] : vector<4x256xf32> to vector<256xf32>
    %599 = vector.shape_cast %598 : vector<256xf32> to vector<1x256xf32>
    %cst_107 = arith.constant dense<0.000000e+00> : vector<256xf32>
    %600 = vector.multi_reduction <add>, %597, %cst_107 [0] : vector<4x256xf32> to vector<256xf32>
    %601 = vector.shape_cast %600 : vector<256xf32> to vector<1x256xf32>
    %c0_108 = arith.constant 0 : index
    %c128_109 = arith.constant 128 : index
    %602 = vector.load %arg6[%c0_108, %c128_109] : memref<2x512xf32, #tpu.memory_space<vmem>>, vector<1x256xf32>
    tpu.vector_store %arg6[%c0_108, %c128_109], %599 {strides = array<i32>} : memref<2x512xf32, #tpu.memory_space<vmem>>, vector<1x256xf32>,
    %c1_110 = arith.constant 1 : index
    %c128_111 = arith.constant 128 : index
    %603 = vector.load %arg6[%c1_110, %c128_111] : memref<2x512xf32, #tpu.memory_space<vmem>>, vector<1x256xf32>
    tpu.vector_store %arg6[%c1_110, %c128_111], %601 {strides = array<i32>} : memref<2x512xf32, #tpu.memory_space<vmem>>, vector<1x256xf32>,
    %cst_112 = arith.constant 0.000000e+00 : f32
    %604 = vector.broadcast %cst_112 : f32 to vector<1x256xf32>
    %cst_113 = arith.constant 0.000000e+00 : f32
    %605 = vector.broadcast %cst_113 : f32 to vector<1x256xf32>
    %c0_114 = arith.constant 0 : index
    %c77_115 = arith.constant 77 : index
    %606 = vector.load %arg6[%c0_114, %c77_115] : memref<2x512xf32, #tpu.memory_space<vmem>>, vector<2x256xf32>
    %607 = vector.extract_strided_slice %606 {offsets = [0, 0], sizes = [1, 256], strides = [1, 1]} : vector<2x256xf32> to vector<1x256xf32>
    %608 = vector.broadcast %0 : f32 to vector<1x256xf32>
    %609 = arith.mulf %608, %607 : vector<1x256xf32>
    %610 = arith.addf %605, %609 : vector<1x256xf32>
    %611 = vector.extract_strided_slice %606 {offsets = [1, 0], sizes = [1, 256], strides = [1, 1]} : vector<2x256xf32> to vector<1x256xf32>
    %612 = vector.broadcast %49 : f32 to vector<1x256xf32>
    %613 = arith.mulf %612, %611 : vector<1x256xf32>
    %614 = arith.addf %610, %613 : vector<1x256xf32>
    %c0_116 = arith.constant 0 : index
    %c93_117 = arith.constant 93 : index
    %615 = vector.load %arg6[%c0_116, %c93_117] : memref<2x512xf32, #tpu.memory_space<vmem>>, vector<2x256xf32>
    %616 = vector.extract_strided_slice %615 {offsets = [0, 0], sizes = [1, 256], strides = [1, 1]} : vector<2x256xf32> to vector<1x256xf32>
    %617 = vector.broadcast %7 : f32 to vector<1x256xf32>
    %618 = arith.mulf %617, %616 : vector<1x256xf32>
    %619 = arith.addf %614, %618 : vector<1x256xf32>
    %620 = vector.extract_strided_slice %615 {offsets = [1, 0], sizes = [1, 256], strides = [1, 1]} : vector<2x256xf32> to vector<1x256xf32>
    %621 = vector.broadcast %56 : f32 to vector<1x256xf32>
    %622 = arith.mulf %621, %620 : vector<1x256xf32>
    %623 = arith.addf %619, %622 : vector<1x256xf32>
    %c0_118 = arith.constant 0 : index
    %c109_119 = arith.constant 109 : index
    %624 = vector.load %arg6[%c0_118, %c109_119] : memref<2x512xf32, #tpu.memory_space<vmem>>, vector<2x256xf32>
    %625 = vector.extract_strided_slice %624 {offsets = [0, 0], sizes = [1, 256], strides = [1, 1]} : vector<2x256xf32> to vector<1x256xf32>
    %626 = vector.broadcast %14 : f32 to vector<1x256xf32>
    %627 = arith.mulf %626, %625 : vector<1x256xf32>
    %628 = arith.addf %623, %627 : vector<1x256xf32>
    %629 = vector.extract_strided_slice %624 {offsets = [1, 0], sizes = [1, 256], strides = [1, 1]} : vector<2x256xf32> to vector<1x256xf32>
    %630 = vector.broadcast %63 : f32 to vector<1x256xf32>
    %631 = arith.mulf %630, %629 : vector<1x256xf32>
    %632 = arith.addf %628, %631 : vector<1x256xf32>
    %c0_120 = arith.constant 0 : index
    %c125_121 = arith.constant 125 : index
    %633 = vector.load %arg6[%c0_120, %c125_121] : memref<2x512xf32, #tpu.memory_space<vmem>>, vector<2x256xf32>
    %634 = vector.extract_strided_slice %633 {offsets = [0, 0], sizes = [1, 256], strides = [1, 1]} : vector<2x256xf32> to vector<1x256xf32>
    %635 = vector.broadcast %21 : f32 to vector<1x256xf32>
    %636 = arith.mulf %635, %634 : vector<1x256xf32>
    %637 = arith.addf %632, %636 : vector<1x256xf32>
    %638 = vector.extract_strided_slice %633 {offsets = [1, 0], sizes = [1, 256], strides = [1, 1]} : vector<2x256xf32> to vector<1x256xf32>
    %639 = vector.broadcast %70 : f32 to vector<1x256xf32>
    %640 = arith.mulf %639, %638 : vector<1x256xf32>
    %641 = arith.addf %637, %640 : vector<1x256xf32>
    %c0_122 = arith.constant 0 : index
    %c141_123 = arith.constant 141 : index
    %642 = vector.load %arg6[%c0_122, %c141_123] : memref<2x512xf32, #tpu.memory_space<vmem>>, vector<2x256xf32>
    %643 = vector.extract_strided_slice %642 {offsets = [0, 0], sizes = [1, 256], strides = [1, 1]} : vector<2x256xf32> to vector<1x256xf32>
    %644 = vector.broadcast %28 : f32 to vector<1x256xf32>
    %645 = arith.mulf %644, %643 : vector<1x256xf32>
    %646 = arith.addf %641, %645 : vector<1x256xf32>
    %647 = vector.extract_strided_slice %642 {offsets = [1, 0], sizes = [1, 256], strides = [1, 1]} : vector<2x256xf32> to vector<1x256xf32>
    %648 = vector.broadcast %77 : f32 to vector<1x256xf32>
    %649 = arith.mulf %648, %647 : vector<1x256xf32>
    %650 = arith.addf %646, %649 : vector<1x256xf32>
    %c0_124 = arith.constant 0 : index
    %c157_125 = arith.constant 157 : index
    %651 = vector.load %arg6[%c0_124, %c157_125] : memref<2x512xf32, #tpu.memory_space<vmem>>, vector<2x256xf32>
    %652 = vector.extract_strided_slice %651 {offsets = [0, 0], sizes = [1, 256], strides = [1, 1]} : vector<2x256xf32> to vector<1x256xf32>
    %653 = vector.broadcast %35 : f32 to vector<1x256xf32>
    %654 = arith.mulf %653, %652 : vector<1x256xf32>
    %655 = arith.addf %650, %654 : vector<1x256xf32>
    %656 = vector.extract_strided_slice %651 {offsets = [1, 0], sizes = [1, 256], strides = [1, 1]} : vector<2x256xf32> to vector<1x256xf32>
    %657 = vector.broadcast %84 : f32 to vector<1x256xf32>
    %658 = arith.mulf %657, %656 : vector<1x256xf32>
    %659 = arith.addf %655, %658 : vector<1x256xf32>
    %c0_126 = arith.constant 0 : index
    %c173_127 = arith.constant 173 : index
    %660 = vector.load %arg6[%c0_126, %c173_127] : memref<2x512xf32, #tpu.memory_space<vmem>>, vector<2x256xf32>
    %661 = vector.extract_strided_slice %660 {offsets = [0, 0], sizes = [1, 256], strides = [1, 1]} : vector<2x256xf32> to vector<1x256xf32>
    %662 = vector.broadcast %42 : f32 to vector<1x256xf32>
    %663 = arith.mulf %662, %661 : vector<1x256xf32>
    %664 = arith.addf %659, %663 : vector<1x256xf32>
    %665 = vector.extract_strided_slice %660 {offsets = [1, 0], sizes = [1, 256], strides = [1, 1]} : vector<2x256xf32> to vector<1x256xf32>
    %666 = vector.broadcast %91 : f32 to vector<1x256xf32>
    %667 = arith.mulf %666, %665 : vector<1x256xf32>
    %668 = arith.addf %664, %667 : vector<1x256xf32>
    %669 = arith.mulf %100, %668 : vector<1x256xf32>
    %670 = arith.addf %604, %669 : vector<1x256xf32>
    %cst_128 = arith.constant 0.000000e+00 : f32
    %671 = vector.broadcast %cst_128 : f32 to vector<1x256xf32>
    %c0_129 = arith.constant 0 : index
    %c78_130 = arith.constant 78 : index
    %672 = vector.load %arg6[%c0_129, %c78_130] : memref<2x512xf32, #tpu.memory_space<vmem>>, vector<2x256xf32>
    %673 = vector.extract_strided_slice %672 {offsets = [0, 0], sizes = [1, 256], strides = [1, 1]} : vector<2x256xf32> to vector<1x256xf32>
    %674 = vector.broadcast %1 : f32 to vector<1x256xf32>
    %675 = arith.mulf %674, %673 : vector<1x256xf32>
    %676 = arith.addf %671, %675 : vector<1x256xf32>
    %677 = vector.extract_strided_slice %672 {offsets = [1, 0], sizes = [1, 256], strides = [1, 1]} : vector<2x256xf32> to vector<1x256xf32>
    %678 = vector.broadcast %50 : f32 to vector<1x256xf32>
    %679 = arith.mulf %678, %677 : vector<1x256xf32>
    %680 = arith.addf %676, %679 : vector<1x256xf32>
    %c0_131 = arith.constant 0 : index
    %c94_132 = arith.constant 94 : index
    %681 = vector.load %arg6[%c0_131, %c94_132] : memref<2x512xf32, #tpu.memory_space<vmem>>, vector<2x256xf32>
    %682 = vector.extract_strided_slice %681 {offsets = [0, 0], sizes = [1, 256], strides = [1, 1]} : vector<2x256xf32> to vector<1x256xf32>
    %683 = vector.broadcast %8 : f32 to vector<1x256xf32>
    %684 = arith.mulf %683, %682 : vector<1x256xf32>
    %685 = arith.addf %680, %684 : vector<1x256xf32>
    %686 = vector.extract_strided_slice %681 {offsets = [1, 0], sizes = [1, 256], strides = [1, 1]} : vector<2x256xf32> to vector<1x256xf32>
    %687 = vector.broadcast %57 : f32 to vector<1x256xf32>
    %688 = arith.mulf %687, %686 : vector<1x256xf32>
    %689 = arith.addf %685, %688 : vector<1x256xf32>
    %c0_133 = arith.constant 0 : index
    %c110_134 = arith.constant 110 : index
    %690 = vector.load %arg6[%c0_133, %c110_134] : memref<2x512xf32, #tpu.memory_space<vmem>>, vector<2x256xf32>
    %691 = vector.extract_strided_slice %690 {offsets = [0, 0], sizes = [1, 256], strides = [1, 1]} : vector<2x256xf32> to vector<1x256xf32>
    %692 = vector.broadcast %15 : f32 to vector<1x256xf32>
    %693 = arith.mulf %692, %691 : vector<1x256xf32>
    %694 = arith.addf %689, %693 : vector<1x256xf32>
    %695 = vector.extract_strided_slice %690 {offsets = [1, 0], sizes = [1, 256], strides = [1, 1]} : vector<2x256xf32> to vector<1x256xf32>
    %696 = vector.broadcast %64 : f32 to vector<1x256xf32>
    %697 = arith.mulf %696, %695 : vector<1x256xf32>
    %698 = arith.addf %694, %697 : vector<1x256xf32>
    %c0_135 = arith.constant 0 : index
    %c126_136 = arith.constant 126 : index
    %699 = vector.load %arg6[%c0_135, %c126_136] : memref<2x512xf32, #tpu.memory_space<vmem>>, vector<2x256xf32>
    %700 = vector.extract_strided_slice %699 {offsets = [0, 0], sizes = [1, 256], strides = [1, 1]} : vector<2x256xf32> to vector<1x256xf32>
    %701 = vector.broadcast %22 : f32 to vector<1x256xf32>
    %702 = arith.mulf %701, %700 : vector<1x256xf32>
    %703 = arith.addf %698, %702 : vector<1x256xf32>
    %704 = vector.extract_strided_slice %699 {offsets = [1, 0], sizes = [1, 256], strides = [1, 1]} : vector<2x256xf32> to vector<1x256xf32>
    %705 = vector.broadcast %71 : f32 to vector<1x256xf32>
    %706 = arith.mulf %705, %704 : vector<1x256xf32>
    %707 = arith.addf %703, %706 : vector<1x256xf32>
    %c0_137 = arith.constant 0 : index
    %c142_138 = arith.constant 142 : index
    %708 = vector.load %arg6[%c0_137, %c142_138] : memref<2x512xf32, #tpu.memory_space<vmem>>, vector<2x256xf32>
    %709 = vector.extract_strided_slice %708 {offsets = [0, 0], sizes = [1, 256], strides = [1, 1]} : vector<2x256xf32> to vector<1x256xf32>
    %710 = vector.broadcast %29 : f32 to vector<1x256xf32>
    %711 = arith.mulf %710, %709 : vector<1x256xf32>
    %712 = arith.addf %707, %711 : vector<1x256xf32>
    %713 = vector.extract_strided_slice %708 {offsets = [1, 0], sizes = [1, 256], strides = [1, 1]} : vector<2x256xf32> to vector<1x256xf32>
    %714 = vector.broadcast %78 : f32 to vector<1x256xf32>
    %715 = arith.mulf %714, %713 : vector<1x256xf32>
    %716 = arith.addf %712, %715 : vector<1x256xf32>
    %c0_139 = arith.constant 0 : index
    %c158_140 = arith.constant 158 : index
    %717 = vector.load %arg6[%c0_139, %c158_140] : memref<2x512xf32, #tpu.memory_space<vmem>>, vector<2x256xf32>
    %718 = vector.extract_strided_slice %717 {offsets = [0, 0], sizes = [1, 256], strides = [1, 1]} : vector<2x256xf32> to vector<1x256xf32>
    %719 = vector.broadcast %36 : f32 to vector<1x256xf32>
    %720 = arith.mulf %719, %718 : vector<1x256xf32>
    %721 = arith.addf %716, %720 : vector<1x256xf32>
    %722 = vector.extract_strided_slice %717 {offsets = [1, 0], sizes = [1, 256], strides = [1, 1]} : vector<2x256xf32> to vector<1x256xf32>
    %723 = vector.broadcast %85 : f32 to vector<1x256xf32>
    %724 = arith.mulf %723, %722 : vector<1x256xf32>
    %725 = arith.addf %721, %724 : vector<1x256xf32>
    %c0_141 = arith.constant 0 : index
    %c174_142 = arith.constant 174 : index
    %726 = vector.load %arg6[%c0_141, %c174_142] : memref<2x512xf32, #tpu.memory_space<vmem>>, vector<2x256xf32>
    %727 = vector.extract_strided_slice %726 {offsets = [0, 0], sizes = [1, 256], strides = [1, 1]} : vector<2x256xf32> to vector<1x256xf32>
    %728 = vector.broadcast %43 : f32 to vector<1x256xf32>
    %729 = arith.mulf %728, %727 : vector<1x256xf32>
    %730 = arith.addf %725, %729 : vector<1x256xf32>
    %731 = vector.extract_strided_slice %726 {offsets = [1, 0], sizes = [1, 256], strides = [1, 1]} : vector<2x256xf32> to vector<1x256xf32>
    %732 = vector.broadcast %92 : f32 to vector<1x256xf32>
    %733 = arith.mulf %732, %731 : vector<1x256xf32>
    %734 = arith.addf %730, %733 : vector<1x256xf32>
    %735 = arith.mulf %101, %734 : vector<1x256xf32>
    %736 = arith.addf %670, %735 : vector<1x256xf32>
    %cst_143 = arith.constant 0.000000e+00 : f32
    %737 = vector.broadcast %cst_143 : f32 to vector<1x256xf32>
    %c0_144 = arith.constant 0 : index
    %c79_145 = arith.constant 79 : index
    %738 = vector.load %arg6[%c0_144, %c79_145] : memref<2x512xf32, #tpu.memory_space<vmem>>, vector<2x256xf32>
    %739 = vector.extract_strided_slice %738 {offsets = [0, 0], sizes = [1, 256], strides = [1, 1]} : vector<2x256xf32> to vector<1x256xf32>
    %740 = vector.broadcast %2 : f32 to vector<1x256xf32>
    %741 = arith.mulf %740, %739 : vector<1x256xf32>
    %742 = arith.addf %737, %741 : vector<1x256xf32>
    %743 = vector.extract_strided_slice %738 {offsets = [1, 0], sizes = [1, 256], strides = [1, 1]} : vector<2x256xf32> to vector<1x256xf32>
    %744 = vector.broadcast %51 : f32 to vector<1x256xf32>
    %745 = arith.mulf %744, %743 : vector<1x256xf32>
    %746 = arith.addf %742, %745 : vector<1x256xf32>
    %c0_146 = arith.constant 0 : index
    %c95_147 = arith.constant 95 : index
    %747 = vector.load %arg6[%c0_146, %c95_147] : memref<2x512xf32, #tpu.memory_space<vmem>>, vector<2x256xf32>
    %748 = vector.extract_strided_slice %747 {offsets = [0, 0], sizes = [1, 256], strides = [1, 1]} : vector<2x256xf32> to vector<1x256xf32>
    %749 = vector.broadcast %9 : f32 to vector<1x256xf32>
    %750 = arith.mulf %749, %748 : vector<1x256xf32>
    %751 = arith.addf %746, %750 : vector<1x256xf32>
    %752 = vector.extract_strided_slice %747 {offsets = [1, 0], sizes = [1, 256], strides = [1, 1]} : vector<2x256xf32> to vector<1x256xf32>
    %753 = vector.broadcast %58 : f32 to vector<1x256xf32>
    %754 = arith.mulf %753, %752 : vector<1x256xf32>
    %755 = arith.addf %751, %754 : vector<1x256xf32>
    %c0_148 = arith.constant 0 : index
    %c111_149 = arith.constant 111 : index
    %756 = vector.load %arg6[%c0_148, %c111_149] : memref<2x512xf32, #tpu.memory_space<vmem>>, vector<2x256xf32>
    %757 = vector.extract_strided_slice %756 {offsets = [0, 0], sizes = [1, 256], strides = [1, 1]} : vector<2x256xf32> to vector<1x256xf32>
    %758 = vector.broadcast %16 : f32 to vector<1x256xf32>
    %759 = arith.mulf %758, %757 : vector<1x256xf32>
    %760 = arith.addf %755, %759 : vector<1x256xf32>
    %761 = vector.extract_strided_slice %756 {offsets = [1, 0], sizes = [1, 256], strides = [1, 1]} : vector<2x256xf32> to vector<1x256xf32>
    %762 = vector.broadcast %65 : f32 to vector<1x256xf32>
    %763 = arith.mulf %762, %761 : vector<1x256xf32>
    %764 = arith.addf %760, %763 : vector<1x256xf32>
    %c0_150 = arith.constant 0 : index
    %c127_151 = arith.constant 127 : index
    %765 = vector.load %arg6[%c0_150, %c127_151] : memref<2x512xf32, #tpu.memory_space<vmem>>, vector<2x256xf32>
    %766 = vector.extract_strided_slice %765 {offsets = [0, 0], sizes = [1, 256], strides = [1, 1]} : vector<2x256xf32> to vector<1x256xf32>
    %767 = vector.broadcast %23 : f32 to vector<1x256xf32>
    %768 = arith.mulf %767, %766 : vector<1x256xf32>
    %769 = arith.addf %764, %768 : vector<1x256xf32>
    %770 = vector.extract_strided_slice %765 {offsets = [1, 0], sizes = [1, 256], strides = [1, 1]} : vector<2x256xf32> to vector<1x256xf32>
    %771 = vector.broadcast %72 : f32 to vector<1x256xf32>
    %772 = arith.mulf %771, %770 : vector<1x256xf32>
    %773 = arith.addf %769, %772 : vector<1x256xf32>
    %c0_152 = arith.constant 0 : index
    %c143_153 = arith.constant 143 : index
    %774 = vector.load %arg6[%c0_152, %c143_153] : memref<2x512xf32, #tpu.memory_space<vmem>>, vector<2x256xf32>
    %775 = vector.extract_strided_slice %774 {offsets = [0, 0], sizes = [1, 256], strides = [1, 1]} : vector<2x256xf32> to vector<1x256xf32>
    %776 = vector.broadcast %30 : f32 to vector<1x256xf32>
    %777 = arith.mulf %776, %775 : vector<1x256xf32>
    %778 = arith.addf %773, %777 : vector<1x256xf32>
    %779 = vector.extract_strided_slice %774 {offsets = [1, 0], sizes = [1, 256], strides = [1, 1]} : vector<2x256xf32> to vector<1x256xf32>
    %780 = vector.broadcast %79 : f32 to vector<1x256xf32>
    %781 = arith.mulf %780, %779 : vector<1x256xf32>
    %782 = arith.addf %778, %781 : vector<1x256xf32>
    %c0_154 = arith.constant 0 : index
    %c159_155 = arith.constant 159 : index
    %783 = vector.load %arg6[%c0_154, %c159_155] : memref<2x512xf32, #tpu.memory_space<vmem>>, vector<2x256xf32>
    %784 = vector.extract_strided_slice %783 {offsets = [0, 0], sizes = [1, 256], strides = [1, 1]} : vector<2x256xf32> to vector<1x256xf32>
    %785 = vector.broadcast %37 : f32 to vector<1x256xf32>
    %786 = arith.mulf %785, %784 : vector<1x256xf32>
    %787 = arith.addf %782, %786 : vector<1x256xf32>
    %788 = vector.extract_strided_slice %783 {offsets = [1, 0], sizes = [1, 256], strides = [1, 1]} : vector<2x256xf32> to vector<1x256xf32>
    %789 = vector.broadcast %86 : f32 to vector<1x256xf32>
    %790 = arith.mulf %789, %788 : vector<1x256xf32>
    %791 = arith.addf %787, %790 : vector<1x256xf32>
    %c0_156 = arith.constant 0 : index
    %c175_157 = arith.constant 175 : index
    %792 = vector.load %arg6[%c0_156, %c175_157] : memref<2x512xf32, #tpu.memory_space<vmem>>, vector<2x256xf32>
    %793 = vector.extract_strided_slice %792 {offsets = [0, 0], sizes = [1, 256], strides = [1, 1]} : vector<2x256xf32> to vector<1x256xf32>
    %794 = vector.broadcast %44 : f32 to vector<1x256xf32>
    %795 = arith.mulf %794, %793 : vector<1x256xf32>
    %796 = arith.addf %791, %795 : vector<1x256xf32>
    %797 = vector.extract_strided_slice %792 {offsets = [1, 0], sizes = [1, 256], strides = [1, 1]} : vector<2x256xf32> to vector<1x256xf32>
    %798 = vector.broadcast %93 : f32 to vector<1x256xf32>
    %799 = arith.mulf %798, %797 : vector<1x256xf32>
    %800 = arith.addf %796, %799 : vector<1x256xf32>
    %801 = arith.mulf %102, %800 : vector<1x256xf32>
    %802 = arith.addf %736, %801 : vector<1x256xf32>
    %cst_158 = arith.constant 0.000000e+00 : f32
    %803 = vector.broadcast %cst_158 : f32 to vector<1x256xf32>
    %c0_159 = arith.constant 0 : index
    %c80_160 = arith.constant 80 : index
    %804 = vector.load %arg6[%c0_159, %c80_160] : memref<2x512xf32, #tpu.memory_space<vmem>>, vector<2x256xf32>
    %805 = vector.extract_strided_slice %804 {offsets = [0, 0], sizes = [1, 256], strides = [1, 1]} : vector<2x256xf32> to vector<1x256xf32>
    %806 = vector.broadcast %3 : f32 to vector<1x256xf32>
    %807 = arith.mulf %806, %805 : vector<1x256xf32>
    %808 = arith.addf %803, %807 : vector<1x256xf32>
    %809 = vector.extract_strided_slice %804 {offsets = [1, 0], sizes = [1, 256], strides = [1, 1]} : vector<2x256xf32> to vector<1x256xf32>
    %810 = vector.broadcast %52 : f32 to vector<1x256xf32>
    %811 = arith.mulf %810, %809 : vector<1x256xf32>
    %812 = arith.addf %808, %811 : vector<1x256xf32>
    %c0_161 = arith.constant 0 : index
    %c96_162 = arith.constant 96 : index
    %813 = vector.load %arg6[%c0_161, %c96_162] : memref<2x512xf32, #tpu.memory_space<vmem>>, vector<2x256xf32>
    %814 = vector.extract_strided_slice %813 {offsets = [0, 0], sizes = [1, 256], strides = [1, 1]} : vector<2x256xf32> to vector<1x256xf32>
    %815 = vector.broadcast %10 : f32 to vector<1x256xf32>
    %816 = arith.mulf %815, %814 : vector<1x256xf32>
    %817 = arith.addf %812, %816 : vector<1x256xf32>
    %818 = vector.extract_strided_slice %813 {offsets = [1, 0], sizes = [1, 256], strides = [1, 1]} : vector<2x256xf32> to vector<1x256xf32>
    %819 = vector.broadcast %59 : f32 to vector<1x256xf32>
    %820 = arith.mulf %819, %818 : vector<1x256xf32>
    %821 = arith.addf %817, %820 : vector<1x256xf32>
    %c0_163 = arith.constant 0 : index
    %c112_164 = arith.constant 112 : index
    %822 = vector.load %arg6[%c0_163, %c112_164] : memref<2x512xf32, #tpu.memory_space<vmem>>, vector<2x256xf32>
    %823 = vector.extract_strided_slice %822 {offsets = [0, 0], sizes = [1, 256], strides = [1, 1]} : vector<2x256xf32> to vector<1x256xf32>
    %824 = vector.broadcast %17 : f32 to vector<1x256xf32>
    %825 = arith.mulf %824, %823 : vector<1x256xf32>
    %826 = arith.addf %821, %825 : vector<1x256xf32>
    %827 = vector.extract_strided_slice %822 {offsets = [1, 0], sizes = [1, 256], strides = [1, 1]} : vector<2x256xf32> to vector<1x256xf32>
    %828 = vector.broadcast %66 : f32 to vector<1x256xf32>
    %829 = arith.mulf %828, %827 : vector<1x256xf32>
    %830 = arith.addf %826, %829 : vector<1x256xf32>
    %c0_165 = arith.constant 0 : index
    %c128_166 = arith.constant 128 : index
    %831 = vector.load %arg6[%c0_165, %c128_166] : memref<2x512xf32, #tpu.memory_space<vmem>>, vector<2x256xf32>
    %832 = vector.extract_strided_slice %831 {offsets = [0, 0], sizes = [1, 256], strides = [1, 1]} : vector<2x256xf32> to vector<1x256xf32>
    %833 = vector.broadcast %24 : f32 to vector<1x256xf32>
    %834 = arith.mulf %833, %832 : vector<1x256xf32>
    %835 = arith.addf %830, %834 : vector<1x256xf32>
    %836 = vector.extract_strided_slice %831 {offsets = [1, 0], sizes = [1, 256], strides = [1, 1]} : vector<2x256xf32> to vector<1x256xf32>
    %837 = vector.broadcast %73 : f32 to vector<1x256xf32>
    %838 = arith.mulf %837, %836 : vector<1x256xf32>
    %839 = arith.addf %835, %838 : vector<1x256xf32>
    %c0_167 = arith.constant 0 : index
    %c144_168 = arith.constant 144 : index
    %840 = vector.load %arg6[%c0_167, %c144_168] : memref<2x512xf32, #tpu.memory_space<vmem>>, vector<2x256xf32>
    %841 = vector.extract_strided_slice %840 {offsets = [0, 0], sizes = [1, 256], strides = [1, 1]} : vector<2x256xf32> to vector<1x256xf32>
    %842 = vector.broadcast %31 : f32 to vector<1x256xf32>
    %843 = arith.mulf %842, %841 : vector<1x256xf32>
    %844 = arith.addf %839, %843 : vector<1x256xf32>
    %845 = vector.extract_strided_slice %840 {offsets = [1, 0], sizes = [1, 256], strides = [1, 1]} : vector<2x256xf32> to vector<1x256xf32>
    %846 = vector.broadcast %80 : f32 to vector<1x256xf32>
    %847 = arith.mulf %846, %845 : vector<1x256xf32>
    %848 = arith.addf %844, %847 : vector<1x256xf32>
    %c0_169 = arith.constant 0 : index
    %c160_170 = arith.constant 160 : index
    %849 = vector.load %arg6[%c0_169, %c160_170] : memref<2x512xf32, #tpu.memory_space<vmem>>, vector<2x256xf32>
    %850 = vector.extract_strided_slice %849 {offsets = [0, 0], sizes = [1, 256], strides = [1, 1]} : vector<2x256xf32> to vector<1x256xf32>
    %851 = vector.broadcast %38 : f32 to vector<1x256xf32>
    %852 = arith.mulf %851, %850 : vector<1x256xf32>
    %853 = arith.addf %848, %852 : vector<1x256xf32>
    %854 = vector.extract_strided_slice %849 {offsets = [1, 0], sizes = [1, 256], strides = [1, 1]} : vector<2x256xf32> to vector<1x256xf32>
    %855 = vector.broadcast %87 : f32 to vector<1x256xf32>
    %856 = arith.mulf %855, %854 : vector<1x256xf32>
    %857 = arith.addf %853, %856 : vector<1x256xf32>
    %c0_171 = arith.constant 0 : index
    %c176_172 = arith.constant 176 : index
    %858 = vector.load %arg6[%c0_171, %c176_172] : memref<2x512xf32, #tpu.memory_space<vmem>>, vector<2x256xf32>
    %859 = vector.extract_strided_slice %858 {offsets = [0, 0], sizes = [1, 256], strides = [1, 1]} : vector<2x256xf32> to vector<1x256xf32>
    %860 = vector.broadcast %45 : f32 to vector<1x256xf32>
    %861 = arith.mulf %860, %859 : vector<1x256xf32>
    %862 = arith.addf %857, %861 : vector<1x256xf32>
    %863 = vector.extract_strided_slice %858 {offsets = [1, 0], sizes = [1, 256], strides = [1, 1]} : vector<2x256xf32> to vector<1x256xf32>
    %864 = vector.broadcast %94 : f32 to vector<1x256xf32>
    %865 = arith.mulf %864, %863 : vector<1x256xf32>
    %866 = arith.addf %862, %865 : vector<1x256xf32>
    %867 = arith.mulf %103, %866 : vector<1x256xf32>
    %868 = arith.addf %802, %867 : vector<1x256xf32>
    %cst_173 = arith.constant 0.000000e+00 : f32
    %869 = vector.broadcast %cst_173 : f32 to vector<1x256xf32>
    %c0_174 = arith.constant 0 : index
    %c81_175 = arith.constant 81 : index
    %870 = vector.load %arg6[%c0_174, %c81_175] : memref<2x512xf32, #tpu.memory_space<vmem>>, vector<2x256xf32>
    %871 = vector.extract_strided_slice %870 {offsets = [0, 0], sizes = [1, 256], strides = [1, 1]} : vector<2x256xf32> to vector<1x256xf32>
    %872 = vector.broadcast %4 : f32 to vector<1x256xf32>
    %873 = arith.mulf %872, %871 : vector<1x256xf32>
    %874 = arith.addf %869, %873 : vector<1x256xf32>
    %875 = vector.extract_strided_slice %870 {offsets = [1, 0], sizes = [1, 256], strides = [1, 1]} : vector<2x256xf32> to vector<1x256xf32>
    %876 = vector.broadcast %53 : f32 to vector<1x256xf32>
    %877 = arith.mulf %876, %875 : vector<1x256xf32>
    %878 = arith.addf %874, %877 : vector<1x256xf32>
    %c0_176 = arith.constant 0 : index
    %c97_177 = arith.constant 97 : index
    %879 = vector.load %arg6[%c0_176, %c97_177] : memref<2x512xf32, #tpu.memory_space<vmem>>, vector<2x256xf32>
    %880 = vector.extract_strided_slice %879 {offsets = [0, 0], sizes = [1, 256], strides = [1, 1]} : vector<2x256xf32> to vector<1x256xf32>
    %881 = vector.broadcast %11 : f32 to vector<1x256xf32>
    %882 = arith.mulf %881, %880 : vector<1x256xf32>
    %883 = arith.addf %878, %882 : vector<1x256xf32>
    %884 = vector.extract_strided_slice %879 {offsets = [1, 0], sizes = [1, 256], strides = [1, 1]} : vector<2x256xf32> to vector<1x256xf32>
    %885 = vector.broadcast %60 : f32 to vector<1x256xf32>
    %886 = arith.mulf %885, %884 : vector<1x256xf32>
    %887 = arith.addf %883, %886 : vector<1x256xf32>
    %c0_178 = arith.constant 0 : index
    %c113_179 = arith.constant 113 : index
    %888 = vector.load %arg6[%c0_178, %c113_179] : memref<2x512xf32, #tpu.memory_space<vmem>>, vector<2x256xf32>
    %889 = vector.extract_strided_slice %888 {offsets = [0, 0], sizes = [1, 256], strides = [1, 1]} : vector<2x256xf32> to vector<1x256xf32>
    %890 = vector.broadcast %18 : f32 to vector<1x256xf32>
    %891 = arith.mulf %890, %889 : vector<1x256xf32>
    %892 = arith.addf %887, %891 : vector<1x256xf32>
    %893 = vector.extract_strided_slice %888 {offsets = [1, 0], sizes = [1, 256], strides = [1, 1]} : vector<2x256xf32> to vector<1x256xf32>
    %894 = vector.broadcast %67 : f32 to vector<1x256xf32>
    %895 = arith.mulf %894, %893 : vector<1x256xf32>
    %896 = arith.addf %892, %895 : vector<1x256xf32>
    %c0_180 = arith.constant 0 : index
    %c129_181 = arith.constant 129 : index
    %897 = vector.load %arg6[%c0_180, %c129_181] : memref<2x512xf32, #tpu.memory_space<vmem>>, vector<2x256xf32>
    %898 = vector.extract_strided_slice %897 {offsets = [0, 0], sizes = [1, 256], strides = [1, 1]} : vector<2x256xf32> to vector<1x256xf32>
    %899 = vector.broadcast %25 : f32 to vector<1x256xf32>
    %900 = arith.mulf %899, %898 : vector<1x256xf32>
    %901 = arith.addf %896, %900 : vector<1x256xf32>
    %902 = vector.extract_strided_slice %897 {offsets = [1, 0], sizes = [1, 256], strides = [1, 1]} : vector<2x256xf32> to vector<1x256xf32>
    %903 = vector.broadcast %74 : f32 to vector<1x256xf32>
    %904 = arith.mulf %903, %902 : vector<1x256xf32>
    %905 = arith.addf %901, %904 : vector<1x256xf32>
    %c0_182 = arith.constant 0 : index
    %c145_183 = arith.constant 145 : index
    %906 = vector.load %arg6[%c0_182, %c145_183] : memref<2x512xf32, #tpu.memory_space<vmem>>, vector<2x256xf32>
    %907 = vector.extract_strided_slice %906 {offsets = [0, 0], sizes = [1, 256], strides = [1, 1]} : vector<2x256xf32> to vector<1x256xf32>
    %908 = vector.broadcast %32 : f32 to vector<1x256xf32>
    %909 = arith.mulf %908, %907 : vector<1x256xf32>
    %910 = arith.addf %905, %909 : vector<1x256xf32>
    %911 = vector.extract_strided_slice %906 {offsets = [1, 0], sizes = [1, 256], strides = [1, 1]} : vector<2x256xf32> to vector<1x256xf32>
    %912 = vector.broadcast %81 : f32 to vector<1x256xf32>
    %913 = arith.mulf %912, %911 : vector<1x256xf32>
    %914 = arith.addf %910, %913 : vector<1x256xf32>
    %c0_184 = arith.constant 0 : index
    %c161_185 = arith.constant 161 : index
    %915 = vector.load %arg6[%c0_184, %c161_185] : memref<2x512xf32, #tpu.memory_space<vmem>>, vector<2x256xf32>
    %916 = vector.extract_strided_slice %915 {offsets = [0, 0], sizes = [1, 256], strides = [1, 1]} : vector<2x256xf32> to vector<1x256xf32>
    %917 = vector.broadcast %39 : f32 to vector<1x256xf32>
    %918 = arith.mulf %917, %916 : vector<1x256xf32>
    %919 = arith.addf %914, %918 : vector<1x256xf32>
    %920 = vector.extract_strided_slice %915 {offsets = [1, 0], sizes = [1, 256], strides = [1, 1]} : vector<2x256xf32> to vector<1x256xf32>
    %921 = vector.broadcast %88 : f32 to vector<1x256xf32>
    %922 = arith.mulf %921, %920 : vector<1x256xf32>
    %923 = arith.addf %919, %922 : vector<1x256xf32>
    %c0_186 = arith.constant 0 : index
    %c177_187 = arith.constant 177 : index
    %924 = vector.load %arg6[%c0_186, %c177_187] : memref<2x512xf32, #tpu.memory_space<vmem>>, vector<2x256xf32>
    %925 = vector.extract_strided_slice %924 {offsets = [0, 0], sizes = [1, 256], strides = [1, 1]} : vector<2x256xf32> to vector<1x256xf32>
    %926 = vector.broadcast %46 : f32 to vector<1x256xf32>
    %927 = arith.mulf %926, %925 : vector<1x256xf32>
    %928 = arith.addf %923, %927 : vector<1x256xf32>
    %929 = vector.extract_strided_slice %924 {offsets = [1, 0], sizes = [1, 256], strides = [1, 1]} : vector<2x256xf32> to vector<1x256xf32>
    %930 = vector.broadcast %95 : f32 to vector<1x256xf32>
    %931 = arith.mulf %930, %929 : vector<1x256xf32>
    %932 = arith.addf %928, %931 : vector<1x256xf32>
    %933 = arith.mulf %104, %932 : vector<1x256xf32>
    %934 = arith.addf %868, %933 : vector<1x256xf32>
    %cst_188 = arith.constant 0.000000e+00 : f32
    %935 = vector.broadcast %cst_188 : f32 to vector<1x256xf32>
    %c0_189 = arith.constant 0 : index
    %c82_190 = arith.constant 82 : index
    %936 = vector.load %arg6[%c0_189, %c82_190] : memref<2x512xf32, #tpu.memory_space<vmem>>, vector<2x256xf32>
    %937 = vector.extract_strided_slice %936 {offsets = [0, 0], sizes = [1, 256], strides = [1, 1]} : vector<2x256xf32> to vector<1x256xf32>
    %938 = vector.broadcast %5 : f32 to vector<1x256xf32>
    %939 = arith.mulf %938, %937 : vector<1x256xf32>
    %940 = arith.addf %935, %939 : vector<1x256xf32>
    %941 = vector.extract_strided_slice %936 {offsets = [1, 0], sizes = [1, 256], strides = [1, 1]} : vector<2x256xf32> to vector<1x256xf32>
    %942 = vector.broadcast %54 : f32 to vector<1x256xf32>
    %943 = arith.mulf %942, %941 : vector<1x256xf32>
    %944 = arith.addf %940, %943 : vector<1x256xf32>
    %c0_191 = arith.constant 0 : index
    %c98_192 = arith.constant 98 : index
    %945 = vector.load %arg6[%c0_191, %c98_192] : memref<2x512xf32, #tpu.memory_space<vmem>>, vector<2x256xf32>
    %946 = vector.extract_strided_slice %945 {offsets = [0, 0], sizes = [1, 256], strides = [1, 1]} : vector<2x256xf32> to vector<1x256xf32>
    %947 = vector.broadcast %12 : f32 to vector<1x256xf32>
    %948 = arith.mulf %947, %946 : vector<1x256xf32>
    %949 = arith.addf %944, %948 : vector<1x256xf32>
    %950 = vector.extract_strided_slice %945 {offsets = [1, 0], sizes = [1, 256], strides = [1, 1]} : vector<2x256xf32> to vector<1x256xf32>
    %951 = vector.broadcast %61 : f32 to vector<1x256xf32>
    %952 = arith.mulf %951, %950 : vector<1x256xf32>
    %953 = arith.addf %949, %952 : vector<1x256xf32>
    %c0_193 = arith.constant 0 : index
    %c114_194 = arith.constant 114 : index
    %954 = vector.load %arg6[%c0_193, %c114_194] : memref<2x512xf32, #tpu.memory_space<vmem>>, vector<2x256xf32>
    %955 = vector.extract_strided_slice %954 {offsets = [0, 0], sizes = [1, 256], strides = [1, 1]} : vector<2x256xf32> to vector<1x256xf32>
    %956 = vector.broadcast %19 : f32 to vector<1x256xf32>
    %957 = arith.mulf %956, %955 : vector<1x256xf32>
    %958 = arith.addf %953, %957 : vector<1x256xf32>
    %959 = vector.extract_strided_slice %954 {offsets = [1, 0], sizes = [1, 256], strides = [1, 1]} : vector<2x256xf32> to vector<1x256xf32>
    %960 = vector.broadcast %68 : f32 to vector<1x256xf32>
    %961 = arith.mulf %960, %959 : vector<1x256xf32>
    %962 = arith.addf %958, %961 : vector<1x256xf32>
    %c0_195 = arith.constant 0 : index
    %c130_196 = arith.constant 130 : index
    %963 = vector.load %arg6[%c0_195, %c130_196] : memref<2x512xf32, #tpu.memory_space<vmem>>, vector<2x256xf32>
    %964 = vector.extract_strided_slice %963 {offsets = [0, 0], sizes = [1, 256], strides = [1, 1]} : vector<2x256xf32> to vector<1x256xf32>
    %965 = vector.broadcast %26 : f32 to vector<1x256xf32>
    %966 = arith.mulf %965, %964 : vector<1x256xf32>
    %967 = arith.addf %962, %966 : vector<1x256xf32>
    %968 = vector.extract_strided_slice %963 {offsets = [1, 0], sizes = [1, 256], strides = [1, 1]} : vector<2x256xf32> to vector<1x256xf32>
    %969 = vector.broadcast %75 : f32 to vector<1x256xf32>
    %970 = arith.mulf %969, %968 : vector<1x256xf32>
    %971 = arith.addf %967, %970 : vector<1x256xf32>
    %c0_197 = arith.constant 0 : index
    %c146_198 = arith.constant 146 : index
    %972 = vector.load %arg6[%c0_197, %c146_198] : memref<2x512xf32, #tpu.memory_space<vmem>>, vector<2x256xf32>
    %973 = vector.extract_strided_slice %972 {offsets = [0, 0], sizes = [1, 256], strides = [1, 1]} : vector<2x256xf32> to vector<1x256xf32>
    %974 = vector.broadcast %33 : f32 to vector<1x256xf32>
    %975 = arith.mulf %974, %973 : vector<1x256xf32>
    %976 = arith.addf %971, %975 : vector<1x256xf32>
    %977 = vector.extract_strided_slice %972 {offsets = [1, 0], sizes = [1, 256], strides = [1, 1]} : vector<2x256xf32> to vector<1x256xf32>
    %978 = vector.broadcast %82 : f32 to vector<1x256xf32>
    %979 = arith.mulf %978, %977 : vector<1x256xf32>
    %980 = arith.addf %976, %979 : vector<1x256xf32>
    %c0_199 = arith.constant 0 : index
    %c162_200 = arith.constant 162 : index
    %981 = vector.load %arg6[%c0_199, %c162_200] : memref<2x512xf32, #tpu.memory_space<vmem>>, vector<2x256xf32>
    %982 = vector.extract_strided_slice %981 {offsets = [0, 0], sizes = [1, 256], strides = [1, 1]} : vector<2x256xf32> to vector<1x256xf32>
    %983 = vector.broadcast %40 : f32 to vector<1x256xf32>
    %984 = arith.mulf %983, %982 : vector<1x256xf32>
    %985 = arith.addf %980, %984 : vector<1x256xf32>
    %986 = vector.extract_strided_slice %981 {offsets = [1, 0], sizes = [1, 256], strides = [1, 1]} : vector<2x256xf32> to vector<1x256xf32>
    %987 = vector.broadcast %89 : f32 to vector<1x256xf32>
    %988 = arith.mulf %987, %986 : vector<1x256xf32>
    %989 = arith.addf %985, %988 : vector<1x256xf32>
    %c0_201 = arith.constant 0 : index
    %c178_202 = arith.constant 178 : index
    %990 = vector.load %arg6[%c0_201, %c178_202] : memref<2x512xf32, #tpu.memory_space<vmem>>, vector<2x256xf32>
    %991 = vector.extract_strided_slice %990 {offsets = [0, 0], sizes = [1, 256], strides = [1, 1]} : vector<2x256xf32> to vector<1x256xf32>
    %992 = vector.broadcast %47 : f32 to vector<1x256xf32>
    %993 = arith.mulf %992, %991 : vector<1x256xf32>
    %994 = arith.addf %989, %993 : vector<1x256xf32>
    %995 = vector.extract_strided_slice %990 {offsets = [1, 0], sizes = [1, 256], strides = [1, 1]} : vector<2x256xf32> to vector<1x256xf32>
    %996 = vector.broadcast %96 : f32 to vector<1x256xf32>
    %997 = arith.mulf %996, %995 : vector<1x256xf32>
    %998 = arith.addf %994, %997 : vector<1x256xf32>
    %999 = arith.mulf %105, %998 : vector<1x256xf32>
    %1000 = arith.addf %934, %999 : vector<1x256xf32>
    %cst_203 = arith.constant 0.000000e+00 : f32
    %1001 = vector.broadcast %cst_203 : f32 to vector<1x256xf32>
    %c0_204 = arith.constant 0 : index
    %c83_205 = arith.constant 83 : index
    %1002 = vector.load %arg6[%c0_204, %c83_205] : memref<2x512xf32, #tpu.memory_space<vmem>>, vector<2x256xf32>
    %1003 = vector.extract_strided_slice %1002 {offsets = [0, 0], sizes = [1, 256], strides = [1, 1]} : vector<2x256xf32> to vector<1x256xf32>
    %1004 = vector.broadcast %6 : f32 to vector<1x256xf32>
    %1005 = arith.mulf %1004, %1003 : vector<1x256xf32>
    %1006 = arith.addf %1001, %1005 : vector<1x256xf32>
    %1007 = vector.extract_strided_slice %1002 {offsets = [1, 0], sizes = [1, 256], strides = [1, 1]} : vector<2x256xf32> to vector<1x256xf32>
    %1008 = vector.broadcast %55 : f32 to vector<1x256xf32>
    %1009 = arith.mulf %1008, %1007 : vector<1x256xf32>
    %1010 = arith.addf %1006, %1009 : vector<1x256xf32>
    %c0_206 = arith.constant 0 : index
    %c99_207 = arith.constant 99 : index
    %1011 = vector.load %arg6[%c0_206, %c99_207] : memref<2x512xf32, #tpu.memory_space<vmem>>, vector<2x256xf32>
    %1012 = vector.extract_strided_slice %1011 {offsets = [0, 0], sizes = [1, 256], strides = [1, 1]} : vector<2x256xf32> to vector<1x256xf32>
    %1013 = vector.broadcast %13 : f32 to vector<1x256xf32>
    %1014 = arith.mulf %1013, %1012 : vector<1x256xf32>
    %1015 = arith.addf %1010, %1014 : vector<1x256xf32>
    %1016 = vector.extract_strided_slice %1011 {offsets = [1, 0], sizes = [1, 256], strides = [1, 1]} : vector<2x256xf32> to vector<1x256xf32>
    %1017 = vector.broadcast %62 : f32 to vector<1x256xf32>
    %1018 = arith.mulf %1017, %1016 : vector<1x256xf32>
    %1019 = arith.addf %1015, %1018 : vector<1x256xf32>
    %c0_208 = arith.constant 0 : index
    %c115_209 = arith.constant 115 : index
    %1020 = vector.load %arg6[%c0_208, %c115_209] : memref<2x512xf32, #tpu.memory_space<vmem>>, vector<2x256xf32>
    %1021 = vector.extract_strided_slice %1020 {offsets = [0, 0], sizes = [1, 256], strides = [1, 1]} : vector<2x256xf32> to vector<1x256xf32>
    %1022 = vector.broadcast %20 : f32 to vector<1x256xf32>
    %1023 = arith.mulf %1022, %1021 : vector<1x256xf32>
    %1024 = arith.addf %1019, %1023 : vector<1x256xf32>
    %1025 = vector.extract_strided_slice %1020 {offsets = [1, 0], sizes = [1, 256], strides = [1, 1]} : vector<2x256xf32> to vector<1x256xf32>
    %1026 = vector.broadcast %69 : f32 to vector<1x256xf32>
    %1027 = arith.mulf %1026, %1025 : vector<1x256xf32>
    %1028 = arith.addf %1024, %1027 : vector<1x256xf32>
    %c0_210 = arith.constant 0 : index
    %c131_211 = arith.constant 131 : index
    %1029 = vector.load %arg6[%c0_210, %c131_211] : memref<2x512xf32, #tpu.memory_space<vmem>>, vector<2x256xf32>
    %1030 = vector.extract_strided_slice %1029 {offsets = [0, 0], sizes = [1, 256], strides = [1, 1]} : vector<2x256xf32> to vector<1x256xf32>
    %1031 = vector.broadcast %27 : f32 to vector<1x256xf32>
    %1032 = arith.mulf %1031, %1030 : vector<1x256xf32>
    %1033 = arith.addf %1028, %1032 : vector<1x256xf32>
    %1034 = vector.extract_strided_slice %1029 {offsets = [1, 0], sizes = [1, 256], strides = [1, 1]} : vector<2x256xf32> to vector<1x256xf32>
    %1035 = vector.broadcast %76 : f32 to vector<1x256xf32>
    %1036 = arith.mulf %1035, %1034 : vector<1x256xf32>
    %1037 = arith.addf %1033, %1036 : vector<1x256xf32>
    %c0_212 = arith.constant 0 : index
    %c147_213 = arith.constant 147 : index
    %1038 = vector.load %arg6[%c0_212, %c147_213] : memref<2x512xf32, #tpu.memory_space<vmem>>, vector<2x256xf32>
    %1039 = vector.extract_strided_slice %1038 {offsets = [0, 0], sizes = [1, 256], strides = [1, 1]} : vector<2x256xf32> to vector<1x256xf32>
    %1040 = vector.broadcast %34 : f32 to vector<1x256xf32>
    %1041 = arith.mulf %1040, %1039 : vector<1x256xf32>
    %1042 = arith.addf %1037, %1041 : vector<1x256xf32>
    %1043 = vector.extract_strided_slice %1038 {offsets = [1, 0], sizes = [1, 256], strides = [1, 1]} : vector<2x256xf32> to vector<1x256xf32>
    %1044 = vector.broadcast %83 : f32 to vector<1x256xf32>
    %1045 = arith.mulf %1044, %1043 : vector<1x256xf32>
    %1046 = arith.addf %1042, %1045 : vector<1x256xf32>
    %c0_214 = arith.constant 0 : index
    %c163_215 = arith.constant 163 : index
    %1047 = vector.load %arg6[%c0_214, %c163_215] : memref<2x512xf32, #tpu.memory_space<vmem>>, vector<2x256xf32>
    %1048 = vector.extract_strided_slice %1047 {offsets = [0, 0], sizes = [1, 256], strides = [1, 1]} : vector<2x256xf32> to vector<1x256xf32>
    %1049 = vector.broadcast %41 : f32 to vector<1x256xf32>
    %1050 = arith.mulf %1049, %1048 : vector<1x256xf32>
    %1051 = arith.addf %1046, %1050 : vector<1x256xf32>
    %1052 = vector.extract_strided_slice %1047 {offsets = [1, 0], sizes = [1, 256], strides = [1, 1]} : vector<2x256xf32> to vector<1x256xf32>
    %1053 = vector.broadcast %90 : f32 to vector<1x256xf32>
    %1054 = arith.mulf %1053, %1052 : vector<1x256xf32>
    %1055 = arith.addf %1051, %1054 : vector<1x256xf32>
    %c0_216 = arith.constant 0 : index
    %c179_217 = arith.constant 179 : index
    %1056 = vector.load %arg6[%c0_216, %c179_217] : memref<2x512xf32, #tpu.memory_space<vmem>>, vector<2x256xf32>
    %1057 = vector.extract_strided_slice %1056 {offsets = [0, 0], sizes = [1, 256], strides = [1, 1]} : vector<2x256xf32> to vector<1x256xf32>
    %1058 = vector.broadcast %48 : f32 to vector<1x256xf32>
    %1059 = arith.mulf %1058, %1057 : vector<1x256xf32>
    %1060 = arith.addf %1055, %1059 : vector<1x256xf32>
    %1061 = vector.extract_strided_slice %1056 {offsets = [1, 0], sizes = [1, 256], strides = [1, 1]} : vector<2x256xf32> to vector<1x256xf32>
    %1062 = vector.broadcast %97 : f32 to vector<1x256xf32>
    %1063 = arith.mulf %1062, %1061 : vector<1x256xf32>
    %1064 = arith.addf %1060, %1063 : vector<1x256xf32>
    %1065 = arith.mulf %106, %1064 : vector<1x256xf32>
    %1066 = arith.addf %1000, %1065 : vector<1x256xf32>
    %1067 = vector.broadcast %98 : f32 to vector<1x256xf32>
    %1068 = arith.mulf %1066, %1067 : vector<1x256xf32>
    %1069 = vector.broadcast %99 : f32 to vector<1x256xf32>
    %1070 = arith.addf %1068, %1069 : vector<1x256xf32>
    %1071 = arith.negf %1070 : vector<1x256xf32>
    %1072 = math.exp %1071 : vector<1x256xf32>
    %cst_218 = arith.constant 1.000000e+00 : f32
    %1073 = vector.broadcast %cst_218 : f32 to vector<1x256xf32>
    %1074 = arith.addf %1073, %1072 : vector<1x256xf32>
    %1075 = arith.divf %1073, %1074 : vector<1x256xf32>
    %c1_219 = arith.constant 1 : index
    %c0_220 = arith.constant 0 : index
    %c0_221 = arith.constant 0 : index
    %1076 = vector.load %arg4[%c1_219, %c0_220, %c0_221] : memref<2x4x256xf32, #tpu.memory_space<vmem>>, vector<1x4x256xf32>
    %1077 = vector.shape_cast %1076 : vector<1x4x256xf32> to vector<4x256xf32>
    %1078 = vector.broadcast %1075 : vector<1x256xf32> to vector<4x256xf32>
    %1079 = arith.mulf %1077, %1078 : vector<4x256xf32>
    %c1_222 = arith.constant 1 : index
    %c0_223 = arith.constant 0 : index
    %c0_224 = arith.constant 0 : index
    %1080 = vector.load %arg5[%c1_222, %c0_223, %c0_224] : memref<2x4x256xf32, #tpu.memory_space<vmem>>, vector<1x4x256xf32>
    %1081 = vector.shape_cast %1080 : vector<1x4x256xf32> to vector<4x256xf32>
    %1082 = vector.shape_cast %1079 : vector<4x256xf32> to vector<1x4x256xf32>
    tpu.vector_store %arg5[%c1_222, %c0_223, %c0_224], %1082 {strides = array<i32>} : memref<2x4x256xf32, #tpu.memory_space<vmem>>, vector<1x4x256xf32>,
    return
  }
  func.func @transform_0(%arg0: i32) -> i32 {
    %c0_i32 = arith.constant 0 : i32
    %c0_i32_0 = arith.constant 0 : i32
    return %c0_i32 : i32
  }
  func.func @transform_1(%arg0: i32) -> i32 {
    %c0_i32 = arith.constant 0 : i32
    %c0_i32_0 = arith.constant 0 : i32
    return %c0_i32 : i32
  }
  func.func @transform_2(%arg0: i32) -> (i32, i32) {
    %c0_i32 = arith.constant 0 : i32
    %c0_i32_0 = arith.constant 0 : i32
    %c0_i32_1 = arith.constant 0 : i32
    return %c0_i32, %c0_i32_0 : i32, i32
  }
  func.func @transform_3(%arg0: i32) -> (i32, i32, i32) {
    %c0_i32 = arith.constant 0 : i32
    %c0_i32_0 = arith.constant 0 : i32
    %c0_i32_1 = arith.constant 0 : i32
    return %arg0, %c0_i32, %c0_i32_0 : i32, i32, i32
  }
  func.func @transform_4(%arg0: i32) -> (i32, i32, i32) {
    %c0_i32 = arith.constant 0 : i32
    %c0_i32_0 = arith.constant 0 : i32
    %c0_i32_1 = arith.constant 0 : i32
    return %arg0, %c0_i32, %c0_i32_0 : i32, i32, i32
  }
}

</mosaic_0001>

<bundles_post_ra>
// kernel: tpu_custom_call.1
= control target key start
LH: loop header
LB: loop body
LE: loop exit
PB: predicated region body
PF: predicated region fallthrough
CT: control target
= control target key end

     0   :  { %s4325_s0 = inlined_call_operand.hbm [shape: f32[98], index: 0, kind: input, shape index: {}]   ;;  %s4326_s1 = inlined_call_operand.vmem [shape: f32[2], index: 1, kind: input, shape index: {}]   ;;  %s4327_s2 = inlined_call_operand.hbm [shape: f32[7,256], index: 2, kind: input, shape index: {}]   ;;  %s4328_s3 = inlined_call_operand.hbm [shape: f32[2,4,256], index: 3, kind: input, shape index: {}]   ;;  %s4329_s4 = inlined_call_operand.hbm [shape: f32[2,4,256], index: 4, kind: output, shape index: {}]  }
   0x1   :  { %4458 = sst [smem:[#allocation77_spill]] %s4329_s4 }
   0x2   :  { %9 = vsyncpa [#allocation6], 0 }
   0x3   :  { %10 = vsyncpa [#allocation7], 0 }
   0x4   :  { %11 = vsyncpa [#allocation4], 0 }
   0x5   :  { %12 = vsyncpa [#allocation11], 0 }
   0x6   :  { %13 = vsyncpa [#allocation5], 0  ;;  %s28_s17 = sshll.u32 %s4326_s1, 4  ;;  %s2581_s20 = scalar_lea.hbm %s4325_s0, 16  ;;  %s29_s17 = int_to_ptr.vmem [resolvable:$true] %s28_s17 }
   0x7   :  { %p2582_p0 = scmp.ne.s32.totalorder %s4325_s0, %s2581_s20  ;;  %p2585_p1 = scmp.lt.u32.totalorder %s2581_s20, %s4325_s0 }
   0x9   :  { %p2587_p2 = pnand %p2585_p1, %p2582_p0 }
   0xb   :  { %2590 = shalt.err (!%p2587_p2)
}
   0xc   :  { %s2679_s25 = smov [#allocation3]   ;;  %s2591_s1 = scalar_lea.vmem %s29_s17, 16 }
   0xd   :  { %21 = dma.hbm_to_smem %s4325_s0, 16, %s2679_s25, [#allocation6]  }
   0xe   :  { %p2592_p3 = scmp.ne.s32.totalorder %s29_s17, %s2591_s1  ;;  %p2596_p4 = scmp.lt.s32.totalorder %s29_s17, %s29_s17 }
   0xf   :  { %p2597_p5 = scmp.lt.s32.totalorder %s2591_s1, %s2591_s1 }
  0x11   :  { %p2598_p6 = por %p2597_p5, %p2596_p4 }
  0x13   :  { %p2599_p7 = pnand %p2598_p6, %p2592_p3 }
  0x15   :  { %2602 = shalt.err (!%p2599_p7)
}
  0x16   :  { %s2680_s28 = smov [#allocation8]   ;;  %s2681_s29 = smov [#allocation9]  }
  0x17   :  { %31 = dma.vmem_to_smem %s29_s17, 16, %s2680_s28, [#allocation7]  }
  0x18   :  { %s38_s30 = sshll.u32 %s2681_s29, 4  ;;  %s2682_s5 = smov [#allocation10]   ;;  %s39_s30 = int_to_ptr.vmem [resolvable:$true] %s38_s30 }
  0x19   :  { %s47_s6 = sshll.u32 %s2682_s5, 4  ;;  %s2603_s0 = scalar_lea.hbm %s4327_s2, 256  ;;  %s2740_s6 = int_to_ptr.vmem [resolvable:$true] %s47_s6 }
  0x1a   :  { %p2604_p8 = scmp.ne.s32.totalorder %s4327_s2, %s2603_s0  ;;  %p2607_p9 = scmp.lt.u32.totalorder %s2603_s0, %s4327_s2 }
  0x1c   :  { %p2609_p10 = pnand %p2607_p9, %p2604_p8 }
  0x1e   :  { %2612 = shalt.err (!%p2609_p10)
}
  0x1f   :  { %s2613_s13 = scalar_lea.vmem %s39_s30, 256  ;;  %p2618_p12 = scmp.lt.s32.totalorder %s39_s30, %s39_s30 }
  0x20   :  { %p2614_p11 = scmp.ne.s32.totalorder %s39_s30, %s2613_s13  ;;  %p2619_p13 = scmp.lt.s32.totalorder %s2613_s13, %s2613_s13 }
  0x22   :  { %p2620_p0 = por %p2619_p13, %p2618_p12 }
  0x24   :  { %p2621_p1 = pnand %p2620_p0, %p2614_p11 }
  0x26   :  { %2624 = shalt.err (!%p2621_p1)
}
  0x27   :  { %41 = dma.hbm_to_vmem [thread:$0]  %s4327_s2, 256, %s39_s30, [#allocation4]  }
  0x28   :  { %s2625_s18 = scalar_lea.hbm %s4328_s3, 256 }
  0x29   :  { %p2626_p2 = scmp.ne.s32.totalorder %s4328_s3, %s2625_s18  ;;  %p2629_p3 = scmp.lt.u32.totalorder %s2625_s18, %s4328_s3 }
  0x2b   :  { %p2631_p4 = pnand %p2629_p3, %p2626_p2 }
  0x2d   :  { %2634 = shalt.err (!%p2631_p4)
}
  0x2e   :  { %s2635_s23 = scalar_lea.vmem %s2740_s6, 256  ;;  %p2640_p6 = scmp.lt.s32.totalorder %s2740_s6, %s2740_s6 }
  0x2f   :  { %p2636_p5 = scmp.ne.s32.totalorder %s2740_s6, %s2635_s23  ;;  %p2641_p7 = scmp.lt.s32.totalorder %s2635_s23, %s2635_s23 }
  0x31   :  { %p2642_p8 = por %p2641_p7, %p2640_p6 }
  0x33   :  { %p2643_p9 = pnand %p2642_p8, %p2636_p5 }
  0x35   :  { %2646 = shalt.err (!%p2643_p9)
}
  0x36   :  { %s4330_s2 = smov 128   ;;  %s4331_s24 = smov 8  }
  0x37   :  { %53 = dma.hbm_to_vmem [thread:$0]  %s4328_s3, 256, %s2740_s6, [#allocation11], %s4330_s2, %s4330_s2, %s4331_s24  }
  0x38   :  { %2669 = dma.done.wait [#allocation6], 16  }
  0x39   :  { %2670 = vsyncadd [#allocation6], 4294967280 }
  0x3a   :  { %2671 = dma.done.wait [#allocation7], 16  }
  0x3b   :  { %2672 = vsyncadd [#allocation7], 4294967280 }
  0x3c   :  { %2673 = dma.done.wait [#allocation4], 256  }
  0x3d   :  { %2674 = vsyncadd [#allocation4], 4294967040 }
  0x3e   :  { %2675 = dma.done.wait [#allocation11], 256  }
  0x3f   :  { %2676 = vsyncadd [#allocation11], 4294967040 }
  0x40   :  { %66 = sfence }
  0x41   :  { %v181_v0 = vld [vmem:[#allocation10] sm:$0xff]  ;;  %vm185_vm0 = vcmask 1043456   ;;  %v2685_v1 = vmov 0.0   ;;  %v1313_v5 = vld [vmem:[#allocation10 + $0x8] sm:$0xff]  ;;  %v220_v8 = vlaneseq  ;;  %v2686_v11 = vmov 1966171168  }
  0x42   :  { %180 = vst [vmem:[#allocation2] sm:$0xff] %v2685_v1  ;;  %v183_v2 = vcombine.high %v181_v0, %v181_v0  ;;  %v186_v3 = vsel %vm185_vm0, %v181_v0, -inf  ;;  %v200_v4 = vsel %vm185_vm0, %v181_v0, 0.0  ;;  %v218_v12 = vunpack.c.l.s4 %v2686_v11  ;;  %s2789_s3 = sld [smem:[#allocation3 + $0xe]]  ;;  %s2795_s27 = sld [smem:[#allocation3 + $0x7]] }
  0x43   :  { %v187_v6 = vrot.slane %v186_v3, 4  ;;  %v201_v7 = vrot.slane %v200_v4, 4  ;;  %v1315_v13 = vcombine.high %v1313_v5, %v1313_v5  ;;  %v1317_v18 = vsel %vm185_vm0, %v1313_v5, -inf  ;;  %s2799_s1 = sld [smem:[#allocation3 + $0x8]]  ;;  %s2801_s28 = sld [smem:[#allocation3 + $0x15]] }
  0x44   :  { %v193_v9 = vsel %vm185_vm0, %v183_v2, -inf  ;;  %v207_v10 = vsel %vm185_vm0, %v183_v2, 0.0  ;;  %v1331_v20 = vsel %vm185_vm0, %v1313_v5, 0.0  ;;  %v219_v25 = vunpack.c.0.s8 %v218_v12  ;;  %s2809_s29 = sld [smem:[#allocation3 + $0xf]]  ;;  %s2811_s30 = sld [smem:[#allocation3 + $0x1c]] }
  0x45   :  { %v188_v14 = vmax.f32 %v186_v3, %v187_v6  ;;  %v194_v15 = vrot.slane %v193_v9, 4  ;;  %v202_v16 = vadd.f32 %v201_v7, %v200_v4  ;;  %v208_v17 = vrot.slane %v207_v10, 4  ;;  %s2817_s5 = sld [smem:[#allocation3 + $0x16]]  ;;  %s2819_s6 = sld [smem:[#allocation3 + $0x23]] }
  0x46   :  { %v1324_v19 = vsel %vm185_vm0, %v1315_v13, -inf  ;;  %v2781_v26 = vshrl.u32 %v220_v8, 7  ;;  %v1318_v27 = vrot.slane %v1317_v18, 4  ;;  %v1332_v35 = vrot.slane %v1331_v20, 4  ;;  %s2821_s7 = sld [smem:[#allocation3 + $0x3f]]  ;;  %s4334_s8 = smov 96  }
  0x47   :  { %v189_v21 = vrot.slane %v188_v14, 2  ;;  %v195_v22 = vmax.f32 %v193_v9, %v194_v15  ;;  %v203_v23 = vrot.slane %v202_v16, 2  ;;  %v209_v24 = vadd.f32 %v208_v17, %v207_v10  ;;  %s4332_s0 = smov 112   ;;  %s2849_s9 = sld [smem:[#allocation3 + $0x2a]] }
  0x48   :  { %v1325_v28 = vrot.slane %v1324_v19, 4  ;;  %v1319_v33 = vmax.f32 %v1317_v18, %v1318_v27  ;;  %v1338_v36 = vsel %vm185_vm0, %v1315_v13, 0.0  ;;  %v1333_v43 = vadd.f32 %v1332_v35, %v1331_v20  ;;  %s2853_s10 = sld [smem:[#allocation3 + $0x46]]  ;;  %s2855_s11 = sld [smem:[#allocation3 + $0x38]] }
  0x49   :  { %v190_v29 = vmax.f32 %v188_v14, %v189_v21  ;;  %v196_v30 = vrot.slane %v195_v22, 2  ;;  %v204_v31 = vadd.f32 %v203_v23, %v202_v16  ;;  %v210_v32 = vrot.slane %v209_v24, 2  ;;  %4461 = sst [smem:[#allocation18_spill]] %s2801_s28  ;;  %s4338_s12 = smov 80  }
  0x4a   :  { %v1326_v34 = vmax.f32 %v1324_v19, %v1325_v28  ;;  %v1320_v41 = vrot.slane %v1319_v33, 2  ;;  %v1339_v44 = vrot.slane %v1338_v36, 4  ;;  %v1334_v51 = vrot.slane %v1333_v43, 2  ;;  %4462 = sst [smem:[#allocation19_spill]] %s2811_s30  ;;  %s2868_s13 = sld [smem:[#allocation3 + $0x4d]] }
  0x4b   :  { %v191_v37 = vrot.slane %v190_v29, 1  ;;  %v197_v38 = vmax.f32 %v195_v22, %v196_v30  ;;  %v205_v39 = vrot.slane %v204_v31, 1  ;;  %v211_v40 = vadd.f32 %v210_v32, %v209_v24  ;;  %4463 = sst [smem:[#allocation20_spill]] %s2819_s6  ;;  %s2870_s14 = sld [smem:[#allocation3 + $0x39]] }
  0x4c   :  { %v1327_v42 = vrot.slane %v1326_v34, 2  ;;  %v1321_v49 = vmax.f32 %v1319_v33, %v1320_v41  ;;  %v1340_v52 = vadd.f32 %v1339_v44, %v1338_v36  ;;  %v2785_v55 = vsub.s32 %v219_v25, %v2781_v26  ;;  %s4343_s15 = smov 64   ;;  %s2886_s16 = sld [smem:[#allocation3 + $0x54]] }
  0x4d   :  { %v192_v45 = vmax.f32 %v190_v29, %v191_v37  ;;  %v198_v46 = vrot.slane %v197_v38, 1  ;;  %v206_v47 = vadd.f32 %v205_v39, %v204_v31  ;;  %v212_v48 = vrot.slane %v211_v40, 1  ;;  %4464 = sst [smem:[#allocation21_spill]] %s2849_s9  ;;  %s2888_s17 = sld [smem:[#allocation3 + $0x40]] }
  0x4e   :  { %v1328_v50 = vmax.f32 %v1326_v34, %v1327_v42  ;;  %v1322_v56 = vrot.slane %v1321_v49, 1  ;;  %v1335_v58 = vadd.f32 %v1334_v51, %v1333_v43  ;;  %v1341_v59 = vrot.slane %v1340_v52, 2  ;;  %4465 = sst [smem:[#allocation22_spill]] %s2853_s10  ;;  %s4336_s18 = smov 48  }
  0x4f   :  { %v199_v53 = vmax.f32 %v197_v38, %v198_v46  ;;  %v213_v54 = vadd.f32 %v212_v48, %v211_v40  ;;  %vm2791_vm1 = vcmp.lt.s32.totalorder %v220_v8, 256  ;;  %v290_v15 = vstv %s2789_s3  ;;  %s2903_s19 = sld [smem:[#allocation3 + $0x5b]]  ;;  %s2905_s20 = sld [smem:[#allocation3 + $0x47]] }
  0x50   :  { %v1329_v57 = vrot.slane %v1328_v50, 1  ;;  %v1323_v62 = vmax.f32 %v1321_v49, %v1322_v56  ;;  %v1336_v0 = vrot.slane %v1335_v58, 1  ;;  %v1342_v1 = vadd.f32 %v1341_v59, %v1340_v52  ;;  %4466 = sst [smem:[#allocation23_spill]] %s2868_s13  ;;  %s4340_s21 = smov 32  }
  0x51   :  { %v216_v60 = vcombine.low %v192_v45, %v199_v53  ;;  %v240_v61 = vcombine.low %v206_v47, %v213_v54  ;;  %v269_v17 = vstv %s2795_s27  ;;  %v422_v21 = vstv %s2799_s1  ;;  %s2917_s22 = sld [smem:[#allocation3 + $0x4e]]  ;;  %s2929_s23 = sld [smem:[#allocation3 + $0x1d]] }
  0x52   :  { %v1330_v63 = vmax.f32 %v1328_v50, %v1329_v57  ;;  %v1337_v5 = vadd.f32 %v1336_v0, %v1335_v58  ;;  %v1343_v6 = vrot.slane %v1342_v1, 1  ;;  %v311_v22 = vstv %s2801_s28  ;;  %4467 = sst [smem:[#allocation24_spill]] %s2886_s16  ;;  %s2931_s25 = sld [smem:[#allocation3 + $0x55]] }
  0x53   :  { %v223_v2 = vrot.slane %v216_v60, %v2785_v55  ;;  %v247_v3 = vrot.slane %v240_v61, %v2785_v55  ;;  %v442_v28 = vstv %s2809_s29  ;;  %v333_v29 = vstv %s2811_s30  ;;  %4468 = sst [smem:[#allocation25_spill]] %s2888_s17  ;;  %s2942_s26 = sld [smem:[#allocation3 + $0x24]] }
  0x54   :  { %v1347_v7 = vcombine.low %v1323_v62, %v1330_v63  ;;  %v1344_v11 = vadd.f32 %v1343_v6, %v1342_v1  ;;  %v462_v32 = vstv %s2817_s5  ;;  %v4437_v33 = vstv %s2819_s6  ;;  %s2944_s2 = sld [smem:[#allocation3 + $0x5c]]  ;;  %s2953_s24 = sld [smem:[#allocation3 + $0x2b]] }
  0x55   :  { %v230_v9 = vrot.slane %v223_v2, %v2785_v55  ;;  %v254_v10 = vrot.slane %v247_v3, %v2785_v55  ;;  %v300_v34 = vstv %s2821_s7  ;;  %v4401_v38 = vstv %s2849_s9  ;;  %4469 = sst [smem:[#allocation26_spill]] %s2903_s19  ;;  %s4479_s4 = smov 48  }
  0x56   :  { %v1354_v8 = vrot.slane %v1347_v7, %v2785_v55  ;;  %v1366_v12 = vcombine.low %v1337_v5, %v1344_v11  ;;  %v321_v39 = vstv %s2853_s10  ;;  %v279_v40 = vstv %s2855_s11  ;;  %4470 = sst [smem:[#allocation27_spill]] %s2905_s20  ;;  %s4482_s9 = smov 32  }
  0x57   :  { %237 = vst.msk [vmem:[#allocation2 + $0x2] ss:$2 sm:$0x3] %vm2791_vm1, %v230_v9  ;;  %257 = vst.msk [vmem:[#allocation2 + $0x3] ss:$2 sm:$0x3] %vm2791_vm1, %v254_v10  ;;  %v4434_v45 = vstv %s2868_s13  ;;  %v431_v46 = vstv %s2870_s14  ;;  %v4413_v51 = vstv %s2886_s16  ;;  %v451_v52 = vstv %s2888_s17 }
  0x58   :  { %v1373_v13 = vrot.slane %v1366_v12, %v2785_v55  ;;  %v1361_v14 = vrot.slane %v1354_v8, %v2785_v55  ;;  %4471 = sst [smem:[#allocation28_spill]] %s2917_s22  ;;  %v4385_v58 = vstv %s2903_s19  ;;  %v471_v59 = vstv %s2905_s20  ;;  %s2997_s19 = sld [smem:[#allocation3 + $0x4f]] }
  0x59   :  { %4472 = sst [smem:[#allocation29_spill]] %s2929_s23  ;;  %v4449_v0 = vstv %s2917_s22  ;;  %v4442_v4 = vstv %s2929_s23  ;;  %v4425_v5 = vstv %s2931_s25  ;;  %v4415_v10 = vstv %s2942_s26  ;;  %s4485_s16 = smov 112  }
  0x5a   :  { %v1380_v16 = vrot.slane %v1373_v13, %v2785_v55  ;;  %4473 = sst [smem:[#allocation30_spill]] %s2931_s25  ;;  %v4407_v11 = vstv %s2944_s2  ;;  %s3025_s25 = sld [smem:[#allocation3 + $0x5d]]  ;;  %vm275_vm2 = vcmask 916480   ;;  %vm296_vm3 = vcmask 785408  }
  0x5b   :  { %4474 = sst [smem:[#allocation31_spill]] %s2942_s26  ;;  %s4488_s13 = smov 96   ;;  %vm317_vm4 = vcmask 654336   ;;  %vm339_vm5 = vcmask 523264   ;;  %vm360_vm6 = vcmask 392192   ;;  %vm381_vm7 = vcmask 261120  }
  0x5c   :  { %4475 = sst [smem:[#allocation32_spill]] %s2944_s2  ;;  %s3023_s26 = sld [smem:[#allocation3 + $0x25]]  ;;  %vm553_vm8 = vcmask 408576   ;;  %vm407_vm9 = vcmask 416768   ;;  %vm699_vm10 = vcmask 400384   ;;  %vm991_vm11 = vcmask 384000  }
  0x5d   :  { %4476 = sst [smem:[#allocation33_spill]] %s2953_s24  ;;  %s3009_s2 = sld [smem:[#allocation3 + $0x1e]]  ;;  %vm1137_vm12 = vcmask 375808   ;;  %vm1283_vm13 = vcmask 367616  }
  0x5e   :  { %v2823_v18 = vld [vmem:[#allocation2] sm:$0x3f]  ;;  %4481 = sst [smem:[#allocation37_spill]] %s2997_s19  ;;  %s3037_s6 = sld [smem:[#allocation3 + $0x2c]] }
  0x5f   :  { %v2825_v19 = vld [vmem:[#allocation2 + $0x2] sm:$0x3f]  ;;  %v291_v23 = vmul.f32 %v290_v15, %v2823_v18  ;;  %v270_v24 = vmul.f32 %v269_v17, %v2823_v18  ;;  %v423_v25 = vmul.f32 %v422_v21, %v2823_v18  ;;  %v312_v27 = vmul.f32 %v311_v22, %v2823_v18  ;;  %s3039_s23 = sld [smem:[#allocation3 + $0x3b]]  ;;  %s4491_s22 = smov 80  }
  0x60   :  { %v2827_v20 = vld [vmem:[#allocation2 + $0x2] sm:$0xf]  ;;  %v443_v30 = vmul.f32 %v442_v28, %v2823_v18  ;;  %v334_v31 = vmul.f32 %v333_v29, %v2825_v19  ;;  %v463_v35 = vmul.f32 %v462_v32, %v2823_v18  ;;  %v355_v36 = vmul.f32 %v4437_v33, %v2825_v19  ;;  %4487 = sst [smem:[#allocation41_spill]] %s3025_s25  ;;  %s4494_s10 = smov 64  }
  0x61   :  { %1363 = vst.msk [vmem:[#allocation2 + $0x2] ss:$2 sm:$0x3] %vm2791_vm1, %v1361_v14  ;;  %1382 = vst.msk [vmem:[#allocation2 + $0x3] ss:$2 sm:$0x3] %vm2791_vm1, %v1380_v16  ;;  %293 = vrot.lane.b32.xlu1 %v291_v23, %s4334_s8  ;;  %272 = vrot.lane.b32.xlu0 %v270_v24, %s4332_s0  ;;  %v301_v37 = vmul.f32 %v300_v34, %v2823_v18  ;;  %v376_v42 = vmul.f32 %v4401_v38, %v2825_v19  ;;  %v4410_v14 = vstv %s2953_s24 }
  0x62   :  { %v322_v43 = vmul.f32 %v321_v39, %v2823_v18  ;;  %v280_v44 = vmul.f32 %v279_v40, %v2823_v18  ;;  %v344_v49 = vmul.f32 %v4434_v45, %v2825_v19  ;;  %v432_v50 = vmul.f32 %v431_v46, %v2823_v18  ;;  %s3011_s24 = sld [smem:[#allocation3 + $0x56]]  ;;  %s3257_s17 = sld [smem:[#allocation3]] }
  0x63   :  { %v2446_v41 = vrot.slane %v301_v37, 9  ;;  %v365_v56 = vmul.f32 %v4413_v51, %v2825_v19  ;;  %v452_v57 = vmul.f32 %v451_v52, %v2823_v18  ;;  %v386_v62 = vmul.f32 %v4385_v58, %v2825_v19  ;;  %4483 = sst [smem:[#allocation38_spill]] %s3009_s2  ;;  %s3107_s30 = sld [smem:[#allocation3 + $0x26]] }
  0x64   :  { %v2447_v47 = vrot.slane %v322_v43, 9  ;;  %v2445_v48 = vrot.slane %v280_v44, 9  ;;  %v2448_v53 = vrot.slane %v344_v49, 9  ;;  %v2452_v54 = vrot.slane %v432_v50, 9  ;;  %4486 = sst [smem:[#allocation40_spill]] %s3023_s26  ;;  %s3294_s20 = sld [smem:[#allocation3 + $0x60]] }
  0x65   :  { %425 = vrot.lane.b32.xlu1 %v423_v25, %s4332_s0  ;;  %314 = vrot.lane.b32.xlu0 %v312_v27, %s4338_s12  ;;  %v2449_v60 = vrot.slane %v365_v56, 9  ;;  %v2453_v61 = vrot.slane %v452_v57, 9  ;;  %v472_v63 = vmul.f32 %v471_v59, %v2823_v18  ;;  %v2450_v1 = vrot.slane %v386_v62, 9  ;;  %4489 = sst [smem:[#allocation42_spill]] %s3037_s6  ;;  %s3109_s28 = sld [smem:[#allocation3 + $0x5e]] }
  0x66   :  { %v492_v3 = vmul.f32 %v4449_v0, %v2825_v19  ;;  %v483_v6 = vmul.f32 %v4442_v4, %v2825_v19  ;;  %v512_v9 = vmul.f32 %v4425_v5, %v2825_v19  ;;  %v503_v8 = vmul.f32 %v4415_v10, %v2825_v19  ;;  %4490 = sst [smem:[#allocation43_spill]] %s3039_s23  ;;  %s3427_s27 = sld [smem:[#allocation3 + $0x2]] }
  0x67   :  { %v2454_v2 = vrot.slane %v472_v63, 9  ;;  %v532_v13 = vmul.f32 %v4407_v11, %v2825_v19  ;;  %v523_v23 = vmul.f32 %v4410_v14, %v2825_v19  ;;  %v4408_v62 = vstv %s3023_s26  ;;  %s3081_s26 = sld [smem:[#allocation3 + $0x50]]  ;;  %s3486_s3 = sld [smem:[#allocation3 + $0x34]] }
  0x68   :  { %v2455_v7 = vrot.slane %v492_v3, 9  ;;  %v2456_v12 = vrot.slane %v512_v9, 9  ;;  %4484 = sst [smem:[#allocation39_spill]] %s3011_s24  ;;  %v4400_v56 = vstv %s3011_s24  ;;  %v4381_v63 = vstv %s3025_s25  ;;  %s3065_s24 = sld [smem:[#allocation3 + $0x11]] }
  0x69   :  { %445 = vrot.lane.b32.xlu1 %v443_v30, %s4334_s8  ;;  %336 = vrot.lane.b32.xlu0 %v334_v31, %s4343_s15  ;;  %v2457_v24 = vrot.slane %v532_v13, 9  ;;  %v678_v3 = vmul.f32 %v4381_v63, %v2825_v19  ;;  %s3079_s25 = sld [smem:[#allocation3 + $0x18]]  ;;  %4500 = sst [smem:[#allocation51_spill]] %s3107_s30 }
  0x6a   :  { %4519 = sst [smem:[#allocation70_spill]] %s3257_s17  ;;  %s4454_s1 = smov 50  }
  0x6b   :  { %v2464_v9 = vrot.slane %v678_v3, 9  ;;  %4501 = sst [smem:[#allocation52_spill]] %s3109_s28  ;;  %s4452_s29 = smov 51  }
  0x6c   :  { %4522 = sst [smem:[#allocation73_spill]] %s3294_s20  ;;  %s3513_s11 = sld [smem:[#allocation3 + $0x35]] }
  0x6d   :  { %465 = vrot.lane.b32.xlu1 %v463_v35, %s4338_s12  ;;  %357 = vrot.lane.b32.xlu0 %v355_v36, %s4336_s18  ;;  %4497 = sst [smem:[#allocation48_spill]] %s3081_s26  ;;  %s4453_s14 = smov 49  }
  0x6e   :  { %s4540_s7 = sld [smem:[#allocation28_spill]] }
  0x6f   :  { %4496 = sst [smem:[#allocation47_spill]] %s3079_s25 }
  0x71   :  { %305 = vrot.lane.b32.xlu1 %v2446_v41, %s4334_s8  ;;  %378 = vrot.lane.b32.xlu0 %v376_v42, %s4340_s21 }
  0x75   :  { %326 = vrot.lane.b32.xlu1 %v2447_v47, %s4338_s12  ;;  %284 = vrot.lane.b32.xlu0 %v2445_v48, %s4332_s0  ;;  %v4436_v48 = vstv %s2997_s19  ;;  %s3051_s19 = sld [smem:[#allocation3 + $0xa]] }
  0x79   :  { %348 = vrot.lane.b32.xlu1 %v2448_v53, %s4343_s15  ;;  %436 = vrot.lane.b32.xlu0 %v2452_v54, %s4332_s0  ;;  %s2955_s0 = sld [smem:[#allocation3 + $0x3a]]  ;;  %v638_v53 = vmul.f32 %v4436_v48, %v2825_v19  ;;  %v4422_v54 = vstv %s3009_s2  ;;  %s3067_s2 = sld [smem:[#allocation3 + $0x49]] }
  0x7b   :  { %v2462_v57 = vrot.slane %v638_v53, 9  ;;  %4492 = sst [smem:[#allocation44_spill]] %s3051_s19  ;;  %v714_v13 = vstv %s3051_s19  ;;  %s3273_s19 = sld [smem:[#allocation3 + $0x59]] }
  0x7d   :  { %369 = vrot.lane.b32.xlu1 %v2449_v60, %s4336_s18  ;;  %456 = vrot.lane.b32.xlu0 %v2453_v61, %s4334_s8  ;;  %s2967_s8 = sld [smem:[#allocation3 + $0x9]]  ;;  %v629_v60 = vmul.f32 %v4422_v54, %v2825_v19  ;;  %v658_v61 = vmul.f32 %v4400_v56, %v2825_v19 }
  0x7e   :  { %s2969_s18 = sld [smem:[#allocation3 + $0x41]] }
  0x7f   :  { %v577_v16 = vstv %s2955_s0  ;;  %4495 = sst [smem:[#allocation46_spill]] %s3067_s2 }
  0x80   :  { %v578_v25 = vmul.f32 %v577_v16, %v2823_v18 }
  0x81   :  { %390 = vrot.lane.b32.xlu1 %v2450_v1, %s4340_s21  ;;  %476 = vrot.lane.b32.xlu0 %v2454_v2, %s4338_s12  ;;  %s2981_s12 = sld [smem:[#allocation3 + $0x10]]  ;;  %v2463_v1 = vrot.slane %v658_v61, 9  ;;  %v649_v2 = vmul.f32 %v4408_v62, %v2825_v19  ;;  %4521 = sst [smem:[#allocation72_spill]] %s3273_s19 }
  0x82   :  { %s2983_s21 = sld [smem:[#allocation3 + $0x48]]  ;;  %v2459_v31 = vrot.slane %v578_v25, 9 }
  0x83   :  { %v568_v27 = vstv %s2967_s8  ;;  %s3492_s8 = sld [smem:[#allocation3 + $0x3]] }
  0x84   :  { %4477 = sst [smem:[#allocation34_spill]] %s2969_s18  ;;  %v597_v30 = vstv %s2969_s18  ;;  %v569_v35 = vmul.f32 %v568_v27, %v2823_v18  ;;  %s3123_s18 = sld [smem:[#allocation3 + $0x3c]] }
  0x85   :  { %485 = vrot.lane.b32.xlu1 %v483_v6, %s4343_s15  ;;  %496 = vrot.lane.b32.xlu0 %v2455_v7, %s4343_s15  ;;  %s2995_s15 = sld [smem:[#allocation3 + $0x17]]  ;;  %v598_v36 = vmul.f32 %v597_v30, %v2823_v18  ;;  %v4380_v6 = vstv %s3037_s6  ;;  %v723_v7 = vstv %s3039_s23 }
  0x86   :  { %s3093_s6 = sld [smem:[#allocation3 + $0x1f]] }
  0x87   :  { %v588_v37 = vstv %s2981_s12  ;;  %v2460_v42 = vrot.slane %v598_v36, 9  ;;  %v4445_v36 = vstv %s3067_s2  ;;  %s3121_s2 = sld [smem:[#allocation3 + $0x2d]]  ;;  %s3193_s23 = sld [smem:[#allocation3 + $0x5f]] }
  0x88   :  { %4478 = sst [smem:[#allocation35_spill]] %s2983_s21  ;;  %v617_v41 = vstv %s2983_s21  ;;  %v589_v43 = vmul.f32 %v588_v37, %v2823_v18  ;;  %s3095_s21 = sld [smem:[#allocation3 + $0x57]] }
  0x89   :  { %505 = vrot.lane.b32.xlu1 %v503_v8, %s4479_s4  ;;  %516 = vrot.lane.b32.xlu0 %v2456_v12, %s4479_s4  ;;  %v618_v44 = vmul.f32 %v617_v41, %v2823_v18  ;;  %v669_v8 = vmul.f32 %v4380_v6, %v2825_v19  ;;  %v724_v12 = vmul.f32 %v723_v7, %v2823_v18  ;;  %s4542_s12 = sld [smem:[#allocation46_spill]] }
  0x8a   :  { %4503 = sst [smem:[#allocation54_spill]] %s3123_s18 }
  0x8b   :  { %4480 = sst [smem:[#allocation36_spill]] %s2995_s15  ;;  %v4448_v47 = vstv %s2995_s15  ;;  %v2461_v49 = vrot.slane %v618_v44, 9  ;;  %v2466_v25 = vrot.slane %v724_v12, 9  ;;  %v765_v44 = vmul.f32 %v4445_v36, %v2827_v20 }
  0x8c   :  { %v609_v50 = vmul.f32 %v4448_v47, %v2823_v18  ;;  %s3053_s15 = sld [smem:[#allocation3 + $0x42]]  ;;  %4498 = sst [smem:[#allocation49_spill]] %s3093_s6  ;;  %v4414_v61 = vstv %s3093_s6 }
  0x8d   :  { %525 = vrot.lane.b32.xlu1 %v523_v23, %s4482_s9  ;;  %536 = vrot.lane.b32.xlu0 %v2457_v24, %s4482_s9  ;;  %v715_v24 = vmul.f32 %v714_v13, %v2823_v18  ;;  %4502 = sst [smem:[#allocation53_spill]] %s3121_s2  ;;  %s3151_s6 = sld [smem:[#allocation3 + $0x4a]]  ;;  %v4393_v58 = vstv %s3193_s23 }
  0x8e   :  { %4499 = sst [smem:[#allocation50_spill]] %s3095_s21  ;;  %s4541_s0 = sld [smem:[#allocation36_spill]] }
  0x8f   :  { %4512 = sst [smem:[#allocation63_spill]] %s3193_s23  ;;  %s3249_s23 = sld [smem:[#allocation3 + $0x1a]] }
  0x91   :  { %582 = vrot.lane.b32.xlu1 %v2459_v31, %s4485_s16  ;;  %571 = vrot.lane.b32.xlu0 %v569_v35, %s4485_s16  ;;  %v734_v35 = vstv %s3065_s24  ;;  %s2697_s24 = smov 46  }
  0x92   :  { %4493 = sst [smem:[#allocation45_spill]] %s3053_s15  ;;  %v743_v23 = vstv %s3053_s15  ;;  %s3239_s15 = sld [smem:[#allocation3 + $0x31]] }
  0x93   :  { %v744_v31 = vmul.f32 %v743_v23, %v2823_v18  ;;  %4506 = sst [smem:[#allocation57_spill]] %s3151_s6 }
  0x95   :  { %602 = vrot.lane.b32.xlu1 %v2460_v42, %s4488_s13  ;;  %591 = vrot.lane.b32.xlu0 %v589_v43, %s4488_s13  ;;  %v735_v42 = vmul.f32 %v734_v35, %v2823_v18  ;;  %v2467_v43 = vrot.slane %v744_v31, 9  ;;  %v4384_v31 = vstv %s3121_s2  ;;  %s3177_s2 = sld [smem:[#allocation3 + $0x20]] }
  0x98   :  { %4518 = sst [smem:[#allocation69_spill]] %s3239_s15 }
  0x99   :  { %622 = vrot.lane.b32.xlu1 %v2461_v49, %s4491_s22  ;;  %611 = vrot.lane.b32.xlu0 %v609_v50, %s4491_s22  ;;  %v4435_v49 = vstv %s3079_s25  ;;  %v4420_v50 = vstv %s3081_s26  ;;  %s3135_s26 = sld [smem:[#allocation3 + $0xb]] }
  0x9a   :  { %v756_v53 = vmul.f32 %v4435_v49, %v2827_v20  ;;  %v776_v20 = vmul.f32 %v4414_v61, %v2825_v19  ;;  %s3137_s25 = sld [smem:[#allocation3 + $0x43]] }
  0x9b   :  { %4509 = sst [smem:[#allocation60_spill]] %s3177_s2  ;;  %v4405_v6 = vstv %s3177_s2  ;;  %s3235_s2 = sld [smem:[#allocation3 + $0x4b]] }
  0x9d   :  { %642 = vrot.lane.b32.xlu1 %v2462_v57, %s4494_s10  ;;  %631 = vrot.lane.b32.xlu0 %v629_v60, %s4494_s10  ;;  %v2468_v57 = vrot.slane %v765_v44, 9  ;;  %v785_v60 = vmul.f32 %v4420_v50, %v2825_v19  ;;  %v4433_v50 = vstv %s3273_s19  ;;  %s3363_s19 = sld [smem:[#allocation3 + $0x14]] }
  0xa0   :  { %4504 = sst [smem:[#allocation55_spill]] %s3137_s25 }
  0xa1   :  { %662 = vrot.lane.b32.xlu1 %v2463_v1, %s4479_s4  ;;  %651 = vrot.lane.b32.xlu0 %v649_v2, %s4479_s4  ;;  %v4402_v1 = vstv %s3095_s21  ;;  %v2469_v2 = vrot.slane %v785_v60, 9  ;;  %s3149_s21 = sld [smem:[#allocation3 + $0x12]]  ;;  %v889_v60 = vstv %s3137_s25  ;;  %s3191_s25 = sld [smem:[#allocation3 + $0x27]] }
  0xa2   :  { %v805_v3 = vmul.f32 %v4402_v1, %v2825_v19  ;;  %4517 = sst [smem:[#allocation68_spill]] %s3235_s2  ;;  %v4416_v1 = vstv %s3235_s2  ;;  %s3317_s2 = sld [smem:[#allocation3 + $0x3e]] }
  0xa3   :  { %v1056_v62 = vmul.f32 %v4416_v1, %v2825_v19 }
  0xa5   :  { %682 = vrot.lane.b32.xlu1 %v2464_v9, %s4482_s9  ;;  %671 = vrot.lane.b32.xlu0 %v669_v8, %s4482_s9  ;;  %v4409_v9 = vstv %s3107_s30  ;;  %v4377_v8 = vstv %s3109_s28  ;;  %s3163_s28 = sld [smem:[#allocation3 + $0x19]]  ;;  %v2482_v1 = vrot.slane %v1056_v62, 9 }
  0xa6   :  { %v796_v12 = vmul.f32 %v4409_v9, %v2825_v19  ;;  %s3165_s30 = sld [smem:[#allocation3 + $0x51]]  ;;  %v4423_v9 = vstv %s3249_s23 }
  0xa7   :  { %4505 = sst [smem:[#allocation56_spill]] %s3149_s21  ;;  %v1047_v10 = vmul.f32 %v4423_v9, %v2825_v19 }
  0xa8   :  { %4511 = sst [smem:[#allocation62_spill]] %s3191_s25 }
  0xa9   :  { %717 = vrot.lane.b32.xlu1 %v715_v24, %s4485_s16  ;;  %728 = vrot.lane.b32.xlu0 %v2466_v25, %s4485_s16  ;;  %v2470_v24 = vrot.slane %v805_v3, 9  ;;  %v825_v25 = vmul.f32 %v4377_v8, %v2825_v19  ;;  %v890_v3 = vmul.f32 %v889_v60, %v2823_v18 }
  0xab   :  { %v2471_v44 = vrot.slane %v825_v25, 9  ;;  %4507 = sst [smem:[#allocation58_spill]] %s3163_s28  ;;  %v2474_v25 = vrot.slane %v890_v3, 9 }
  0xac   :  { %4508 = sst [smem:[#allocation59_spill]] %s3165_s30  ;;  %v4389_v8 = vstv %s3165_s30  ;;  %s3219_s30 = sld [smem:[#allocation3 + $0xc]] }
  0xad   :  { %737 = vrot.lane.b32.xlu1 %v735_v42, %s4488_s13  ;;  %748 = vrot.lane.b32.xlu0 %v2467_v43, %s4488_s13  ;;  %v869_v42 = vstv %s3123_s18  ;;  %v816_v43 = vmul.f32 %v4384_v31, %v2825_v19  ;;  %s3179_s18 = sld [smem:[#allocation3 + $0x58]]  ;;  %v930_v3 = vmul.f32 %v4389_v8, %v2825_v19  ;;  %v4394_v31 = vstv %s3191_s25  ;;  %s3251_s25 = sld [smem:[#allocation3 + $0x52]] }
  0xb1   :  { %758 = vrot.lane.b32.xlu1 %v756_v53, %s4491_s22  ;;  %769 = vrot.lane.b32.xlu0 %v2468_v57, %s4491_s22  ;;  %v870_v53 = vmul.f32 %v869_v42, %v2823_v18  ;;  %v860_v57 = vstv %s3135_s26  ;;  %s4543_s26 = sld [smem:[#allocation56_spill]] }
  0xb2   :  { %4515 = sst [smem:[#allocation66_spill]] %s3219_s30 }
  0xb3   :  { %4510 = sst [smem:[#allocation61_spill]] %s3179_s18  ;;  %v4388_v63 = vstv %s3179_s18  ;;  %v4424_v14 = vstv %s3251_s25 }
  0xb4   :  { %s3233_s18 = sld [smem:[#allocation3 + $0x13]] }
  0xb5   :  { %778 = vrot.lane.b32.xlu1 %v776_v20, %s4494_s10  ;;  %789 = vrot.lane.b32.xlu0 %v2469_v2, %s4494_s10  ;;  %v2473_v20 = vrot.slane %v870_v53, 9  ;;  %v861_v2 = vmul.f32 %v860_v57, %v2823_v18  ;;  %v4417_v53 = vstv %s3163_s28  ;;  %s3221_s28 = sld [smem:[#allocation3 + $0x44]] }
  0xb9   :  { %798 = vrot.lane.b32.xlu1 %v796_v12, %s4479_s4  ;;  %809 = vrot.lane.b32.xlu0 %v2470_v24, %s4479_s4  ;;  %v4444_v12 = vstv %s3149_s21  ;;  %v4430_v24 = vstv %s3151_s6  ;;  %s3205_s6 = sld [smem:[#allocation3 + $0x2e]]  ;;  %s3207_s21 = sld [smem:[#allocation3 + $0x3d]] }
  0xba   :  { %v4426_v38 = vstv %s3233_s18 }
  0xbb   :  { %4516 = sst [smem:[#allocation67_spill]] %s3221_s28 }
  0xbc   :  { %s4545_s5 = sld [smem:[#allocation67_spill]] }
  0xbd   :  { %818 = vrot.lane.b32.xlu1 %v816_v43, %s4482_s9  ;;  %829 = vrot.lane.b32.xlu0 %v2471_v44, %s4482_s9  ;;  %v881_v43 = vmul.f32 %v4444_v12, %v2823_v18  ;;  %v910_v44 = vmul.f32 %v4430_v24, %v2825_v19  ;;  %v4441_v24 = vstv %s3294_s20  ;;  %s3404_s20 = sld [smem:[#allocation3 + $0x33]] }
  0xbe   :  { %v1116_v33 = vmul.f32 %v4441_v24, %v2825_v19 }
  0xbf   :  { %4513 = sst [smem:[#allocation64_spill]] %s3205_s6  ;;  %v1015_v8 = vstv %s3207_s21 }
  0xc0   :  { %4514 = sst [smem:[#allocation65_spill]] %s3207_s21  ;;  %s3271_s21 = sld [smem:[#allocation3 + $0x21]] }
  0xc1   :  { %874 = vrot.lane.b32.xlu1 %v2473_v20, %s4485_s16  ;;  %863 = vrot.lane.b32.xlu0 %v861_v2, %s4485_s16  ;;  %v2475_v20 = vrot.slane %v910_v44, 9  ;;  %v901_v2 = vmul.f32 %v4417_v53, %v2825_v19  ;;  %v950_v44 = vmul.f32 %v4388_v63, %v2825_v19  ;;  %v4399_v63 = vstv %s3205_s6  ;;  %s3261_s6 = sld [smem:[#allocation3 + $0x32]] }
  0xc2   :  { %v1076_v53 = vmul.f32 %v4424_v14, %v2825_v19 }
  0xc5   :  { %894 = vrot.lane.b32.xlu1 %v2474_v25, %s4488_s13  ;;  %883 = vrot.lane.b32.xlu0 %v881_v43, %s4488_s13  ;;  %v2476_v25 = vrot.slane %v930_v3, 9  ;;  %v921_v43 = vmul.f32 %v4405_v6, %v2825_v19  ;;  %v970_v3 = vmul.f32 %v4393_v58, %v2825_v19  ;;  %v1006_v58 = vstv %s3219_s30  ;;  %s3280_s30 = sld [smem:[#allocation3 + $0x1]] }
  0xc6   :  { %v4419_v6 = vstv %s3239_s15  ;;  %s3313_s15 = sld [smem:[#allocation3 + $0x2f]] }
  0xc7   :  { %4520 = sst [smem:[#allocation71_spill]] %s3261_s6  ;;  %v4429_v61 = vstv %s3261_s6 }
  0xc8   :  { %v416_v9 = vmul.f32 %v4429_v61, %v2823_v18  ;;  %s3343_s6 = sld [smem:[#allocation3 + $0x45]] }
  0xc9   :  { %914 = vrot.lane.b32.xlu1 %v2475_v20, %s4491_s22  ;;  %903 = vrot.lane.b32.xlu0 %v901_v2, %s4491_s22  ;;  %v2477_v20 = vrot.slane %v950_v44, 9  ;;  %v941_v2 = vmul.f32 %v4394_v31, %v2825_v19  ;;  %v1016_v44 = vmul.f32 %v1015_v8, %v2823_v18  ;;  %v4443_v31 = vstv %s3221_s28  ;;  %s3292_s28 = sld [smem:[#allocation3 + $0x28]] }
  0xca   :  { %v1036_v56 = vmul.f32 %v4443_v31, %v2823_v18 }
  0xcb   :  { %v4440_v14 = vstv %s3280_s30 }
  0xcc   :  { %v2481_v11 = vrot.slane %v1036_v56, 9  ;;  %v4428_v56 = vstv %s3257_s17  ;;  %4523 = sst [smem:[#allocation74_spill]] %s3313_s15  ;;  %s3338_s17 = sld [smem:[#allocation3 + $0xd]]  ;;  %v4447_v48 = vstv %s3313_s15 }
  0xcd   :  { %934 = vrot.lane.b32.xlu1 %v2476_v25, %s4494_s10  ;;  %923 = vrot.lane.b32.xlu0 %v921_v43, %s4494_s10  ;;  %v2478_v25 = vrot.slane %v970_v3, 9  ;;  %v961_v43 = vmul.f32 %v4399_v63, %v2825_v19  ;;  %v1007_v3 = vmul.f32 %v1006_v58, %v2823_v18  ;;  %v2480_v63 = vrot.slane %v1016_v44, 9  ;;  %s3379_s15 = sld [smem:[#allocation3 + $0x1b]] }
  0xce   :  { %v1027_v44 = vmul.f32 %v4426_v38, %v2823_v18  ;;  %v260_v62 = vmul.f32 %v4428_v56, %v2823_v18  ;;  %v2483_v38 = vrot.slane %v1076_v53, 9  ;;  %v2451_v53 = vrot.slane %v416_v9, 9 }
  0xcf   :  { %v4439_v61 = vstv %s3292_s28  ;;  %v1107_v24 = vmul.f32 %v4447_v48, %v2825_v19 }
  0xd0   :  { %v1087_v45 = vmul.f32 %v4439_v61, %v2825_v19 }
  0xd1   :  { %954 = vrot.lane.b32.xlu1 %v2477_v20, %s4479_s4  ;;  %943 = vrot.lane.b32.xlu0 %v941_v2, %s4479_s4 }
  0xd2   :  { %v1152_v31 = vstv %s3338_s17  ;;  %s4562_s17 = sld [smem:[#allocation38_spill]] }
  0xd3   :  { %v3253_v20 = vpop.permute.xlu1 %293  ;;  %v3255_v2 = vpop.permute.xlu0 %272 }
  0xd4   :  { %v274_v56 = vrot.slane %v3255_v2, 2 }
  0xd5   :  { %974 = vrot.lane.b32.xlu1 %v2478_v25, %s4482_s9  ;;  %963 = vrot.lane.b32.xlu0 %v961_v43, %s4482_s9 }
  0xd7   :  { %v3275_v25 = vpop.permute.xlu1 %425  ;;  %v3277_v43 = vpop.permute.xlu0 %314 }
  0xd8   :  { %v427_v9 = vrot.slane %v3275_v25, 2 }
  0xd9   :  { %1009 = vrot.lane.b32.xlu1 %v1007_v3, %s4485_s16  ;;  %1020 = vrot.lane.b32.xlu0 %v2480_v63, %s4485_s16  ;;  %v263_v63 = vmul.f32 %v4419_v6, %v2823_v18  ;;  %v4432_v6 = vstv %s3271_s21 }
  0xda   :  { %v1067_v5 = vmul.f32 %v4432_v6, %v2825_v19  ;;  %v428_v12 = vsel %vm275_vm2, %v3275_v25, %v427_v9 }
  0xdb   :  { %v3296_v3 = vpop.permute.xlu1 %445  ;;  %v3298_v51 = vpop.permute.xlu0 %336  ;;  %v2444_v54 = vrot.slane %v263_v63, 9  ;;  %v1096_v63 = vmul.f32 %v4433_v50, %v2825_v19  ;;  %v413_v50 = vmul.f32 %v4440_v14, %v2823_v18 }
  0xdc   :  { %v447_v48 = vrot.slane %v3296_v3, 2 }
  0xdd   :  { %1029 = vrot.lane.b32.xlu1 %v1027_v44, %s4488_s13  ;;  %1040 = vrot.lane.b32.xlu0 %v2481_v11, %s4488_s13  ;;  %v268_v6 = vadd.f32 %v2444_v54, %v260_v62  ;;  %v2484_v49 = vrot.slane %v1096_v63, 9  ;;  %v276_v54 = vsel %vm275_vm2, %v3255_v2, %v274_v56  ;;  %v4450_v62 = vstv %s3317_s2 }
  0xde   :  { %v295_v63 = vrot.slane %v3253_v20, 2  ;;  %v421_v61 = vadd.f32 %v2451_v53, %v413_v50  ;;  %v2485_v2 = vrot.slane %v1116_v33, 9  ;;  %v1162_v56 = vmul.f32 %v4450_v62, %v2823_v18  ;;  %v3396_v62 = vld [vmem:[#allocation2] sm:$0x3f] }
  0xdf   :  { %v3319_v44 = vpop.permute.xlu1 %465  ;;  %v3321_v11 = vpop.permute.xlu0 %357  ;;  %v278_v4 = vadd.f32 %v276_v54, %v268_v6  ;;  %v1181_v53 = vstv %s3343_s6  ;;  %s4571_s6 = sld [smem:[#allocation31_spill]] }
  0xe0   :  { %v297_v54 = vsel %vm296_vm3, %v3253_v20, %v295_v63  ;;  %v430_v9 = vadd.f32 %v428_v12, %v421_v61  ;;  %v2487_v47 = vrot.slane %v1162_v56, 9  ;;  %v1172_v63 = vstv %s3363_s19  ;;  %s4579_s19 = sld [smem:[#allocation51_spill]] }
  0xe1   :  { %1049 = vrot.lane.b32.xlu1 %v1047_v10, %s4491_s22  ;;  %1060 = vrot.lane.b32.xlu0 %v2482_v1, %s4491_s22 }
  0xe3   :  { %v306_v10 = vpop.permute.xlu1 %305  ;;  %v3345_v1 = vpop.permute.xlu0 %378 }
  0xe4   :  { %v307_v36 = vrot.slane %v306_v10, 2 }
  0xe5   :  { %1069 = vrot.lane.b32.xlu1 %v1067_v5, %s4494_s10  ;;  %1080 = vrot.lane.b32.xlu0 %v2483_v38, %s4494_s10 }
  0xe7   :  { %v327_v38 = vpop.permute.xlu1 %326  ;;  %v285_v5 = vpop.permute.xlu0 %284 }
  0xe8   :  { %v286_v14 = vrot.slane %v285_v5, 2  ;;  %v328_v0 = vrot.slane %v327_v38, 2 }
  0xe9   :  { %1089 = vrot.lane.b32.xlu1 %v1087_v45, %s4479_s4  ;;  %1100 = vrot.lane.b32.xlu0 %v2484_v49, %s4479_s4  ;;  %v316_v45 = vrot.slane %v3277_v43, 2 }
  0xea   :  { %v287_v50 = vsel %vm275_vm2, %v285_v5, %v286_v14  ;;  %v1153_v14 = vmul.f32 %v1152_v31, %v2823_v18 }
  0xeb   :  { %v289_v6 = vadd.f32 %v287_v50, %v278_v4  ;;  %v349_v33 = vpop.permute.xlu1 %348  ;;  %v437_v49 = vpop.permute.xlu0 %436  ;;  %v1182_v4 = vmul.f32 %v1181_v53, %v2823_v18  ;;  %v308_v50 = vsel %vm296_vm3, %v306_v10, %v307_v36  ;;  %v318_v61 = vsel %vm317_vm4, %v3277_v43, %v316_v45 }
  0xec   :  { %v438_v25 = vrot.slane %v437_v49, 2  ;;  %v448_v36 = vsel %vm296_vm3, %v3296_v3, %v447_v48  ;;  %v338_v10 = vrot.slane %v3298_v51, 6  ;;  %v329_v48 = vsel %vm317_vm4, %v327_v38, %v328_v0 }
  0xed   :  { %v299_v5 = vadd.f32 %v297_v54, %v289_v6  ;;  %1109 = vrot.lane.b32.xlu1 %v1107_v24, %s4482_s9  ;;  %1120 = vrot.lane.b32.xlu0 %v2485_v2, %s4482_s9  ;;  %v467_v6 = vrot.slane %v3319_v44, 2  ;;  %v2488_v54 = vrot.slane %v1182_v4, 9  ;;  %v350_v3 = vrot.slane %v349_v33, 6 }
  0xee   :  { %v439_v20 = vsel %vm275_vm2, %v437_v49, %v438_v25  ;;  %v1173_v25 = vmul.f32 %v1172_v63, %v2823_v18  ;;  %v340_v4 = vsel %vm339_vm5, %v338_v10, %v3298_v51  ;;  %v359_v38 = vrot.slane %v3321_v11, 6 }
  0xef   :  { %v310_v12 = vadd.f32 %v308_v50, %v299_v5  ;;  %v441_v24 = vadd.f32 %v439_v20, %v430_v9  ;;  %v370_v2 = vpop.permute.xlu1 %369  ;;  %v457_v56 = vpop.permute.xlu0 %456  ;;  %v1192_v5 = vstv %s3379_s15  ;;  %v1392_v50 = vmul.f32 %v3396_v62, %v269_v17  ;;  %s4600_s15 = sld [smem:[#allocation71_spill]] }
  0xf0   :  { %v458_v49 = vrot.slane %v457_v56, 2  ;;  %v468_v0 = vsel %vm317_vm4, %v3319_v44, %v467_v6  ;;  %v351_v51 = vsel %vm339_vm5, %v350_v3, %v349_v33  ;;  %v371_v44 = vrot.slane %v370_v2, 6 }
  0xf1   :  { %v320_v43 = vadd.f32 %v318_v61, %v310_v12  ;;  %v450_v45 = vadd.f32 %v448_v36, %v441_v24  ;;  %1166 = vrot.lane.b32.xlu1 %v2487_v47, %s4485_s16  ;;  %1155 = vrot.lane.b32.xlu0 %v1153_v14, %s4485_s16  ;;  %v1400_v14 = vmul.f32 %v3396_v62, %v279_v40 }
  0xf2   :  { %v459_v9 = vsel %vm296_vm3, %v457_v56, %v458_v49  ;;  %v1193_v40 = vmul.f32 %v1192_v5, %v2825_v19  ;;  %v1532_v3 = vmul.f32 %v3396_v62, %v431_v46 }
  0xf3   :  { %v331_v20 = vadd.f32 %v329_v48, %v320_v43  ;;  %v461_v61 = vadd.f32 %v459_v9, %v450_v45  ;;  %v3417_v12 = vpop.permute.xlu1 %390  ;;  %v477_v47 = vpop.permute.xlu0 %476  ;;  %v1524_v43 = vmul.f32 %v3396_v62, %v422_v21  ;;  %v361_v45 = vsel %vm360_vm6, %v359_v38, %v3321_v11 }
  0xf4   :  { %v478_v24 = vrot.slane %v477_v47, 2  ;;  %v561_v48 = vstv %s3404_s20  ;;  %v2495_v33 = vrot.slane %v1400_v14, 9  ;;  %v380_v21 = vrot.slane %v3345_v1, 6  ;;  %s4596_s20 = sld [smem:[#allocation59_spill]] }
  0xf5   :  { %v342_v17 = vadd.f32 %v340_v4, %v331_v20  ;;  %v470_v56 = vadd.f32 %v468_v0, %v461_v61  ;;  %1186 = vrot.lane.b32.xlu1 %v2488_v54, %s4488_s13  ;;  %1175 = vrot.lane.b32.xlu0 %v1173_v25, %s4488_s13  ;;  %v372_v11 = vsel %vm360_vm6, %v371_v44, %v370_v2  ;;  %v392_v44 = vrot.slane %v3417_v12, 6 }
  0xf6   :  { %v479_v36 = vsel %vm317_vm4, %v477_v47, %v478_v24  ;;  %v1655_v2 = vmul.f32 %v3396_v62, %v568_v27 }
  0xf7   :  { %v353_v10 = vadd.f32 %v351_v51, %v342_v17  ;;  %v486_v6 = vpop.permute.xlu1 %485  ;;  %v497_v49 = vpop.permute.xlu0 %496  ;;  %v481_v20 = vadd.f32 %v479_v36, %v470_v56  ;;  %v558_v17 = vstv %s3427_s27  ;;  %v382_v51 = vsel %vm381_vm7, %v380_v21, %v3345_v1  ;;  %s4603_s27 = sld [smem:[#allocation53_spill]] }
  0xf8   :  { %v487_v54 = vrot.slane %v486_v6, 6  ;;  %v498_v25 = vrot.slane %v497_v49, 6  ;;  %v1410_v1 = vmul.f32 %v3396_v62, %v290_v15 }
  0xf9   :  { %v363_v9 = vadd.f32 %v361_v45, %v353_v10  ;;  %1394 = vrot.lane.b32.xlu1 %v1392_v50, %s4485_s16  ;;  %1195 = vrot.lane.b32.xlu0 %v1193_v40, %s4491_s22  ;;  %v562_v50 = vmul.f32 %v561_v48, %v2823_v18  ;;  %v2502_v40 = vrot.slane %v1532_v3, 9  ;;  %v393_v3 = vsel %vm381_vm7, %v392_v44, %v3417_v12 }
  0xfa   :  { %v488_v61 = vsel %vm339_vm5, %v487_v54, %v486_v6  ;;  %v499_v14 = vsel %vm339_vm5, %v498_v25, %v497_v49 }
  0xfb   :  { %v374_v47 = vadd.f32 %v372_v11, %v363_v9  ;;  %v490_v4 = vadd.f32 %v488_v61, %v481_v20  ;;  %v506_v0 = vpop.permute.xlu1 %505  ;;  %v517_v38 = vpop.permute.xlu0 %516  ;;  %v2458_v54 = vrot.slane %v562_v50, 9 }
  0xfc   :  { %v507_v24 = vrot.slane %v506_v0, 6  ;;  %v518_v46 = vrot.slane %v517_v38, 6 }
  0xfd   :  { %v501_v56 = vadd.f32 %v499_v14, %v490_v4  ;;  %1404 = vrot.lane.b32.xlu1 %v2495_v33, %s4485_s16  ;;  %1526 = vrot.lane.b32.xlu0 %v1524_v43, %s4485_s16  ;;  %v384_v10 = vadd.f32 %v382_v51, %v374_v47  ;;  %v559_v43 = vmul.f32 %v558_v17, %v2823_v18 }
  0xfe   :  { %v508_v36 = vsel %vm360_vm6, %v507_v24, %v506_v0  ;;  %v519_v25 = vsel %vm360_vm6, %v518_v46, %v517_v38  ;;  %v1542_v33 = vmul.f32 %v3396_v62, %v442_v28 }
  0xff   :  { %v510_v6 = vadd.f32 %v508_v36, %v501_v56  ;;  %v526_v49 = vpop.permute.xlu1 %525  ;;  %v537_v45 = vpop.permute.xlu0 %536  ;;  %v395_v11 = vadd.f32 %v393_v3, %v384_v10  ;;  %v567_v0 = vadd.f32 %v2458_v54, %v559_v43 }
 0x100   :  { %v527_v27 = vrot.slane %v526_v49, 6  ;;  %v538_v9 = vrot.slane %v537_v45, 6 }
 0x101   :  { %v521_v20 = vadd.f32 %v519_v25, %v510_v6  ;;  %1657 = vrot.lane.b32.xlu1 %v1655_v2, %s4485_s16  ;;  %1536 = vrot.lane.b32.xlu0 %v2502_v40, %s4485_s16  ;;  %v403_v2 = vrot.slane %v395_v11, %v2785_v55 }
 0x102   :  { %v528_v21 = vsel %vm381_vm7, %v527_v27, %v526_v49  ;;  %v539_v15 = vsel %vm381_vm7, %v538_v9, %v537_v45 }
 0x103   :  { %v530_v61 = vadd.f32 %v528_v21, %v521_v20  ;;  %v583_v47 = vpop.permute.xlu1 %582  ;;  %v572_v4 = vpop.permute.xlu0 %571 }
 0x104   :  { %v584_v38 = vrot.slane %v583_v47, 2  ;;  %v573_v50 = vrot.slane %v572_v4, 2 }
 0x105   :  { %v541_v14 = vadd.f32 %v539_v15, %v530_v61  ;;  %1544 = vrot.lane.b32.xlu1 %v1542_v33, %s4488_s13  ;;  %1412 = vrot.lane.b32.xlu0 %v1410_v1, %s4488_s13  ;;  %v707_v61 = vstv %s3486_s3  ;;  %s4623_s3 = sld [smem:[#allocation73_spill]] }
 0x106   :  { %v574_v28 = vsel %vm275_vm2, %v572_v4, %v573_v50  ;;  %v585_v40 = vsel %vm275_vm2, %v583_v47, %v584_v38  ;;  %v708_v50 = vmul.f32 %v707_v61, %v2823_v18 }
 0x107   :  { %v576_v24 = vadd.f32 %v574_v28, %v567_v0  ;;  %v603_v12 = vpop.permute.xlu1 %602  ;;  %v592_v46 = vpop.permute.xlu0 %591  ;;  %v549_v56 = vrot.slane %v541_v14, %v2785_v55 }
 0x108   :  { %v604_v51 = vrot.slane %v603_v12, 2  ;;  %v593_v44 = vrot.slane %v592_v46, 2 }
 0x109   :  { %v587_v36 = vadd.f32 %v585_v40, %v576_v24  ;;  %550 = vrot.lane.b32.xlu1 %v549_v56, %s4454_s1  ;;  %404 = vrot.lane.b32.xlu0 %v403_v2, %s4452_s29  ;;  %s3518_s29 = sld [smem:[#allocation3 + $0x4]]  ;;  %s3544_s1 = sld [smem:[#allocation3 + $0x5]] }
 0x10a   :  { %v594_v10 = vsel %vm296_vm3, %v592_v46, %v593_v44  ;;  %v605_v54 = vsel %vm296_vm3, %v603_v12, %v604_v51  ;;  %v704_v12 = vstv %s3492_s8  ;;  %v2465_v44 = vrot.slane %v708_v50, 9 }
 0x10b   :  { %v596_v6 = vadd.f32 %v594_v10, %v587_v36  ;;  %v623_v49 = vpop.permute.xlu1 %622  ;;  %v612_v45 = vpop.permute.xlu0 %611  ;;  %v705_v36 = vmul.f32 %v704_v12, %v2823_v18 }
 0x10c   :  { %v624_v43 = vrot.slane %v623_v49, 2  ;;  %v613_v25 = vrot.slane %v612_v45, 2 }
 0x10d   :  { %v607_v27 = vadd.f32 %v605_v54, %v596_v6 }
 0x10e   :  { %v614_v9 = vsel %vm317_vm4, %v612_v45, %v613_v25  ;;  %v625_v3 = vsel %vm317_vm4, %v623_v49, %v624_v43 }
 0x10f   :  { %v616_v1 = vadd.f32 %v614_v9, %v607_v27  ;;  %v643_v20 = vpop.permute.xlu1 %642  ;;  %v632_v33 = vpop.permute.xlu0 %631  ;;  %v713_v27 = vadd.f32 %v2465_v44, %v705_v36  ;;  %4524 = sst [smem:[#allocation75_spill]] %s3518_s29 }
 0x110   :  { %v644_v21 = vrot.slane %v643_v20, 6  ;;  %v633_v11 = vrot.slane %v632_v33, 6  ;;  %4525 = sst [smem:[#allocation76_spill]] %s3544_s1 }
 0x111   :  { %v627_v47 = vadd.f32 %v625_v3, %v616_v1 }
 0x112   :  { %v634_v4 = vsel %vm339_vm5, %v633_v11, %v632_v33  ;;  %v645_v14 = vsel %vm339_vm5, %v644_v21, %v643_v20 }
 0x113   :  { %v636_v0 = vadd.f32 %v634_v4, %v627_v47  ;;  %v663_v15 = vpop.permute.xlu1 %662  ;;  %v652_v38 = vpop.permute.xlu0 %651 }
 0x114   :  { %v664_v28 = vrot.slane %v663_v15, 6  ;;  %v653_v24 = vrot.slane %v652_v38, 6 }
 0x115   :  { %v647_v46 = vadd.f32 %v645_v14, %v636_v0 }
 0x116   :  { %v654_v56 = vsel %vm360_vm6, %v653_v24, %v652_v38  ;;  %v665_v10 = vsel %vm360_vm6, %v664_v28, %v663_v15 }
 0x117   :  { %v656_v2 = vadd.f32 %v654_v56, %v647_v46  ;;  %v683_v40 = vpop.permute.xlu1 %682  ;;  %v672_v51 = vpop.permute.xlu0 %671 }
 0x118   :  { %v684_v6 = vrot.slane %v683_v40, 6  ;;  %v673_v49 = vrot.slane %v672_v51, 6 }
 0x119   :  { %v667_v45 = vadd.f32 %v665_v10, %v656_v2 }
 0x11a   :  { %v674_v54 = vsel %vm381_vm7, %v673_v49, %v672_v51  ;;  %v685_v1 = vsel %vm381_vm7, %v684_v6, %v683_v40 }
 0x11b   :  { %v676_v43 = vadd.f32 %v674_v54, %v667_v45  ;;  %v718_v25 = vpop.permute.xlu1 %717  ;;  %v729_v9 = vpop.permute.xlu0 %728 }
 0x11c   :  { %v719_v20 = vrot.slane %v718_v25, 2  ;;  %v730_v33 = vrot.slane %v729_v9, 2 }
 0x11d   :  { %v687_v3 = vadd.f32 %v685_v1, %v676_v43 }
 0x11e   :  { %v720_v21 = vsel %vm275_vm2, %v718_v25, %v719_v20  ;;  %v731_v15 = vsel %vm275_vm2, %v729_v9, %v730_v33  ;;  %v853_v25 = vstv %s3513_s11  ;;  %s4002_s11 = sld [smem:[#allocation3 + $0x61]] }
 0x11f   :  { %v722_v11 = vadd.f32 %v720_v21, %v713_v27  ;;  %v738_v47 = vpop.permute.xlu1 %737  ;;  %v749_v4 = vpop.permute.xlu0 %748  ;;  %v695_v0 = vrot.slane %v687_v3, %v2785_v55  ;;  %v854_v3 = vmul.f32 %v853_v25, %v2823_v18 }
 0x120   :  { %v739_v38 = vrot.slane %v738_v47, 2  ;;  %v750_v50 = vrot.slane %v749_v4, 2 }
 0x121   :  { %v733_v14 = vadd.f32 %v731_v15, %v722_v11  ;;  %696 = vrot.lane.b32.xlu0 %v695_v0, %s4453_s14  ;;  %s3539_s14 = sld [smem:[#allocation3 + $0x36]] }
 0x122   :  { %v740_v28 = vsel %vm296_vm3, %v738_v47, %v739_v38  ;;  %v751_v2 = vsel %vm296_vm3, %v749_v4, %v750_v50  ;;  %v850_v4 = vstv %s3518_s29  ;;  %s4456_s29 = smov 47  }
 0x123   :  { %v742_v24 = vadd.f32 %v740_v28, %v733_v14  ;;  %v759_v46 = vpop.permute.xlu1 %758  ;;  %v770_v56 = vpop.permute.xlu0 %769  ;;  %v2472_v28 = vrot.slane %v854_v3, 9 }
 0x124   :  { %v760_v40 = vrot.slane %v759_v46, 6  ;;  %v771_v51 = vrot.slane %v770_v56, 6 }
 0x125   :  { %v753_v44 = vadd.f32 %v751_v2, %v742_v24  ;;  %v851_v24 = vmul.f32 %v850_v4, %v2823_v18 }
 0x126   :  { %v761_v36 = vsel %vm317_vm4, %v760_v40, %v759_v46  ;;  %v772_v45 = vsel %vm317_vm4, %v771_v51, %v770_v56 }
 0x127   :  { %v763_v10 = vadd.f32 %v761_v36, %v753_v44  ;;  %v779_v6 = vpop.permute.xlu1 %778  ;;  %v790_v49 = vpop.permute.xlu0 %789 }
 0x128   :  { %v780_v54 = vrot.slane %v779_v6, 6  ;;  %v791_v43 = vrot.slane %v790_v49, 6 }
 0x129   :  { %v774_v27 = vadd.f32 %v772_v45, %v763_v10 }
 0x12a   :  { %v781_v9 = vsel %vm339_vm5, %v780_v54, %v779_v6  ;;  %v792_v21 = vsel %vm339_vm5, %v791_v43, %v790_v49  ;;  %v859_v6 = vadd.f32 %v2472_v28, %v851_v24 }
 0x12b   :  { %v783_v1 = vadd.f32 %v781_v9, %v774_v27  ;;  %v799_v20 = vpop.permute.xlu1 %798  ;;  %v810_v33 = vpop.permute.xlu0 %809 }
 0x12c   :  { %v800_v11 = vrot.slane %v799_v20, 6  ;;  %v811_v47 = vrot.slane %v810_v33, 6 }
 0x12d   :  { %v794_v0 = vadd.f32 %v792_v21, %v783_v1 }
 0x12e   :  { %v801_v15 = vsel %vm360_vm6, %v800_v11, %v799_v20  ;;  %v812_v46 = vsel %vm360_vm6, %v811_v47, %v810_v33 }
 0x12f   :  { %v803_v38 = vadd.f32 %v801_v15, %v794_v0  ;;  %v819_v50 = vpop.permute.xlu1 %818  ;;  %v830_v14 = vpop.permute.xlu0 %829 }
 0x130   :  { %v820_v56 = vrot.slane %v819_v50, 6  ;;  %v831_v2 = vrot.slane %v830_v14, 6 }
 0x131   :  { %v814_v40 = vadd.f32 %v812_v46, %v803_v38 }
 0x132   :  { %v821_v51 = vsel %vm381_vm7, %v820_v56, %v819_v50  ;;  %v832_v49 = vsel %vm381_vm7, %v831_v2, %v830_v14 }
 0x133   :  { %v823_v44 = vadd.f32 %v821_v51, %v814_v40  ;;  %v875_v36 = vpop.permute.xlu1 %874  ;;  %v864_v10 = vpop.permute.xlu0 %863 }
 0x134   :  { %v876_v45 = vrot.slane %v875_v36, 2  ;;  %v865_v54 = vrot.slane %v864_v10, 2 }
 0x135   :  { %v834_v43 = vadd.f32 %v832_v49, %v823_v44 }
 0x136   :  { %v866_v27 = vsel %vm275_vm2, %v864_v10, %v865_v54  ;;  %v877_v3 = vsel %vm275_vm2, %v875_v36, %v876_v45 }
 0x137   :  { %v868_v9 = vadd.f32 %v866_v27, %v859_v6  ;;  %v895_v1 = vpop.permute.xlu1 %894  ;;  %v884_v20 = vpop.permute.xlu0 %883  ;;  %v842_v33 = vrot.slane %v834_v43, %v2785_v55  ;;  %v999_v6 = vstv %s3539_s14 }
 0x138   :  { %v896_v21 = vrot.slane %v895_v1, 2  ;;  %v885_v11 = vrot.slane %v884_v20, 2 }
 0x139   :  { %v879_v47 = vadd.f32 %v877_v3, %v868_v9  ;;  %843 = vrot.lane.b32.xlu1 %v842_v33, %s4479_s4  ;;  %v1000_v9 = vmul.f32 %v999_v6, %v2823_v18  ;;  %v996_v3 = vstv %s3544_s1  ;;  %s4548_s1 = sld [smem:[#allocation29_spill]] }
 0x13a   :  { %v886_v0 = vsel %vm296_vm3, %v884_v20, %v885_v11  ;;  %v897_v14 = vsel %vm296_vm3, %v895_v1, %v896_v21 }
 0x13b   :  { %v888_v15 = vadd.f32 %v886_v0, %v879_v47  ;;  %v915_v38 = vpop.permute.xlu1 %914  ;;  %v904_v50 = vpop.permute.xlu0 %903 }
 0x13c   :  { %v916_v28 = vrot.slane %v915_v38, 6  ;;  %v905_v24 = vrot.slane %v904_v50, 6 }
 0x13d   :  { %v899_v46 = vadd.f32 %v897_v14, %v888_v15 }
 0x13e   :  { %v906_v56 = vsel %vm317_vm4, %v905_v24, %v904_v50  ;;  %v917_v44 = vsel %vm317_vm4, %v916_v28, %v915_v38  ;;  %v2479_v38 = vrot.slane %v1000_v9, 9  ;;  %v997_v50 = vmul.f32 %v996_v3, %v2823_v18 }
 0x13f   :  { %v908_v2 = vadd.f32 %v906_v56, %v899_v46  ;;  %v935_v40 = vpop.permute.xlu1 %934  ;;  %v924_v51 = vpop.permute.xlu0 %923 }
 0x140   :  { %v936_v36 = vrot.slane %v935_v40, 6  ;;  %v925_v10 = vrot.slane %v924_v51, 6 }
 0x141   :  { %v919_v49 = vadd.f32 %v917_v44, %v908_v2 }
 0x142   :  { %v926_v45 = vsel %vm339_vm5, %v925_v10, %v924_v51  ;;  %v937_v1 = vsel %vm339_vm5, %v936_v36, %v935_v40  ;;  %v1005_v51 = vadd.f32 %v2479_v38, %v997_v50 }
 0x143   :  { %v928_v54 = vadd.f32 %v926_v45, %v919_v49  ;;  %v955_v43 = vpop.permute.xlu1 %954  ;;  %v944_v27 = vpop.permute.xlu0 %943 }
 0x144   :  { %v956_v20 = vrot.slane %v955_v43, 6  ;;  %v945_v33 = vrot.slane %v944_v27, 6 }
 0x145   :  { %v939_v21 = vadd.f32 %v937_v1, %v928_v54  ;;  %v1663_v54 = vmul.f32 %v3396_v62, %v577_v16 }
 0x146   :  { %v946_v11 = vsel %vm360_vm6, %v945_v33, %v944_v27  ;;  %v957_v14 = vsel %vm360_vm6, %v956_v20, %v955_v43 }
 0x147   :  { %v948_v47 = vadd.f32 %v946_v11, %v939_v21  ;;  %v975_v0 = vpop.permute.xlu1 %974  ;;  %v964_v15 = vpop.permute.xlu0 %963 }
 0x148   :  { %v976_v28 = vrot.slane %v975_v0, 6  ;;  %v965_v24 = vrot.slane %v964_v15, 6 }
 0x149   :  { %v959_v46 = vadd.f32 %v957_v14, %v948_v47 }
 0x14a   :  { %v966_v56 = vsel %vm381_vm7, %v965_v24, %v964_v15  ;;  %v977_v36 = vsel %vm381_vm7, %v976_v28, %v975_v0  ;;  %v2509_v0 = vrot.slane %v1663_v54, 9  ;;  %v1418_v15 = vmul.f32 %v3396_v62, %v300_v34 }
 0x14b   :  { %v968_v2 = vadd.f32 %v966_v56, %v959_v46  ;;  %v1010_v40 = vpop.permute.xlu1 %1009  ;;  %v1021_v44 = vpop.permute.xlu0 %1020  ;;  %v1673_v54 = vmul.f32 %v3396_v62, %v588_v37 }
 0x14c   :  { %v1011_v10 = vrot.slane %v1010_v40, 2  ;;  %v1022_v49 = vrot.slane %v1021_v44, 2 }
 0x14d   :  { %v979_v45 = vadd.f32 %v977_v36, %v968_v2  ;;  %v2496_v2 = vrot.slane %v1418_v15, 9 }
 0x14e   :  { %v1012_v43 = vsel %vm275_vm2, %v1010_v40, %v1011_v10  ;;  %v1023_v33 = vsel %vm275_vm2, %v1021_v44, %v1022_v49 }
 0x14f   :  { %v1014_v27 = vadd.f32 %v1012_v43, %v1005_v51  ;;  %v1030_v9 = vpop.permute.xlu1 %1029  ;;  %v1041_v1 = vpop.permute.xlu0 %1040  ;;  %v987_v20 = vrot.slane %v979_v45, %v2785_v55 }
 0x150   :  { %v1031_v21 = vrot.slane %v1030_v9, 2  ;;  %v1042_v11 = vrot.slane %v1041_v1, 2 }
 0x151   :  { %v1025_v47 = vadd.f32 %v1023_v33, %v1014_v27  ;;  %988 = vrot.lane.b32.xlu0 %v987_v20, %s4456_s29  ;;  %s4552_s29 = sld [smem:[#allocation37_spill]] }
 0x152   :  { %v1032_v16 = vsel %vm296_vm3, %v1030_v9, %v1031_v21  ;;  %v1043_v28 = vsel %vm296_vm3, %v1041_v1, %v1042_v11 }
 0x153   :  { %v1034_v38 = vadd.f32 %v1032_v16, %v1025_v47  ;;  %v1050_v50 = vpop.permute.xlu1 %1049  ;;  %v1061_v14 = vpop.permute.xlu0 %1060  ;;  %v1918_v47 = vmul.f32 %v3396_v62, %v860_v57 }
 0x154   :  { %v1051_v24 = vrot.slane %v1050_v50, 6  ;;  %v1062_v46 = vrot.slane %v1061_v14, 6 }
 0x155   :  { %v1045_v56 = vadd.f32 %v1043_v28, %v1034_v38  ;;  %1667 = vrot.lane.b32.xlu0 %v2509_v0, %s4485_s16  ;;  %v1560_v28 = vmul.f32 %v3396_v62, %v462_v32 }
 0x156   :  { %v1052_v40 = vsel %vm317_vm4, %v1051_v24, %v1050_v50  ;;  %v1063_v34 = vsel %vm317_vm4, %v1062_v46, %v1061_v14 }
 0x157   :  { %v1054_v51 = vadd.f32 %v1052_v40, %v1045_v56  ;;  %v1070_v44 = vpop.permute.xlu1 %1069  ;;  %v1081_v36 = vpop.permute.xlu0 %1080 }
 0x158   :  { %v1071_v10 = vrot.slane %v1070_v44, 6  ;;  %v1082_v49 = vrot.slane %v1081_v36, 6 }
 0x159   :  { %v1065_v45 = vadd.f32 %v1063_v34, %v1054_v51  ;;  %1422 = vrot.lane.b32.xlu0 %v2496_v2, %s4488_s13  ;;  %v1804_v51 = vmul.f32 %v3396_v62, %v734_v35  ;;  %v1786_v35 = vmul.f32 %v3396_v62, %v714_v13  ;;  %v1794_v13 = vmul.f32 %v3396_v62, %v723_v7 }
 0x15a   :  { %v1072_v43 = vsel %vm339_vm5, %v1071_v10, %v1070_v44  ;;  %v1083_v20 = vsel %vm339_vm5, %v1082_v49, %v1081_v36  ;;  %v1568_v10 = vmul.f32 %v3396_v62, %v471_v59  ;;  %v2049_v49 = vmul.f32 %v3396_v62, %v1006_v58 }
 0x15b   :  { %v1074_v27 = vadd.f32 %v1072_v43, %v1065_v45  ;;  %v1090_v9 = vpop.permute.xlu1 %1089  ;;  %v1101_v1 = vpop.permute.xlu0 %1100  ;;  %v1550_v45 = vmul.f32 %v3396_v62, %v451_v52  ;;  %v1812_v58 = vmul.f32 %v3396_v62, %v743_v23  ;;  %v2516_v23 = vrot.slane %v1794_v13, 9 }
 0x15c   :  { %v1091_v33 = vrot.slane %v1090_v9, 6  ;;  %v1102_v21 = vrot.slane %v1101_v1, 6  ;;  %v2504_v59 = vrot.slane %v1568_v10, 9  ;;  %v1681_v7 = vmul.f32 %v3396_v62, %v597_v30 }
 0x15d   :  { %v1085_v11 = vadd.f32 %v1083_v20, %v1074_v27  ;;  %1675 = vrot.lane.b32.xlu0 %v1673_v54, %s4488_s13  ;;  %v2503_v27 = vrot.slane %v1550_v45, 9  ;;  %v2057_v20 = vmul.f32 %v3396_v62, %v1015_v8  ;;  %v1428_v8 = vmul.f32 %v3396_v62, %v311_v22  ;;  %v169_v22 = vld [vmem:[#allocation9 + $0x1] ss:$8 sm:$0x3] }
 0x15e   :  { %v1092_v0 = vsel %vm360_vm6, %v1091_v33, %v1090_v9  ;;  %v1103_v38 = vsel %vm360_vm6, %v1102_v21, %v1101_v1  ;;  %v2517_v1 = vrot.slane %v1812_v58, 9  ;;  %v1699_v30 = vmul.f32 %v3396_v62, %v617_v41 }
 0x15f   :  { %v1094_v37 = vadd.f32 %v1092_v0, %v1085_v11  ;;  %v1110_v15 = vpop.permute.xlu1 %1109  ;;  %v1121_v16 = vpop.permute.xlu0 %1120  ;;  %v2530_v11 = vrot.slane %v2057_v20, 9  ;;  %v4547_v58 = vstv %s4541_s0  ;;  %s4556_s0 = sld [smem:[#allocation23_spill]] }
 0x160   :  { %v1111_v50 = vrot.slane %v1110_v15, 6  ;;  %v1122_v14 = vrot.slane %v1121_v16, 6  ;;  %v2511_v41 = vrot.slane %v1699_v30, 9 }
 0x161   :  { %v1105_v24 = vadd.f32 %v1103_v38, %v1094_v37  ;;  %1920 = vrot.lane.b32.xlu0 %v1918_v47, %s4485_s16  ;;  %v3655_v47 = vld [vmem:[#allocation2 + $0x2] sm:$0x3f]  ;;  %v1926_v38 = vmul.f32 %v3396_v62, %v869_v42 }
 0x162   :  { %v1112_v57 = vsel %vm381_vm7, %v1111_v50, %v1110_v15  ;;  %v1123_v40 = vsel %vm381_vm7, %v1122_v14, %v1121_v16  ;;  %v1447_v15 = vmul.f32 %v3655_v47, %v333_v29  ;;  %v2510_v16 = vrot.slane %v1681_v7, 9  ;;  %v167_v29 = vld [vmem:[#allocation9] ss:$8 sm:$0x3] }
 0x163   :  { %v1114_v46 = vadd.f32 %v1112_v57, %v1105_v24  ;;  %v3594_v56 = vpop.permute.xlu1 %1166  ;;  %v3596_v2 = vpop.permute.xlu0 %1155  ;;  %v1436_v57 = vmul.f32 %v3396_v62, %v321_v39  ;;  %v2523_v42 = vrot.slane %v1926_v38, 9  ;;  %v2180_v38 = vmul.f32 %v3396_v62, %v1152_v31 }
 0x165   :  { %v1125_v44 = vadd.f32 %v1123_v40, %v1114_v46  ;;  %1562 = vrot.lane.b32.xlu0 %v1560_v28, %s4491_s22  ;;  %v1944_v46 = vmul.f32 %v3396_v62, %v889_v60  ;;  %v2497_v39 = vrot.slane %v1436_v57, 9  ;;  %v4546_v60 = vstv %s4540_s7  ;;  %s4553_s7 = sld [smem:[#allocation47_spill]] }
 0x167   :  { %v3603_v32 = vpop.permute.xlu1 %1186  ;;  %v3605_v36 = vpop.permute.xlu0 %1175  ;;  %v1133_v34 = vrot.slane %v1125_v44, %v2785_v55  ;;  %v2524_v10 = vrot.slane %v1944_v46, 9 }
 0x169   :  { %1134 = vrot.lane.b32.xlu1 %v1133_v34, %s2697_s24  ;;  %1806 = vrot.lane.b32.xlu0 %v1804_v51, %s4488_s13 }
 0x16b   :  { %v3622_v54 = vpop.permute.xlu1 %1394  ;;  %v3624_v43 = vpop.permute.xlu0 %1195  ;;  %v4560_v46 = vstv %s4553_s7  ;;  %s4577_s7 = sld [smem:[#allocation33_spill]] }
 0x16d   :  { %1788 = vrot.lane.b32.xlu1 %v1786_v35, %s4485_s16  ;;  %2051 = vrot.lane.b32.xlu0 %v2049_v49, %s4485_s16  ;;  %v4544_v49 = vstv %s3317_s2  ;;  %s4551_s2 = sld [smem:[#allocation20_spill]] }
 0x16e   :  { %v2188_v35 = vmul.f32 %v3396_v62, %v4544_v49 }
 0x16f   :  { %v3634_v9 = vpop.permute.xlu1 %1404  ;;  %v3636_v52 = vpop.permute.xlu0 %1526 }
 0x170   :  { %v2537_v13 = vrot.slane %v2188_v35, 9 }
 0x171   :  { %1554 = vrot.lane.b32.xlu1 %v2503_v27, %s4488_s13  ;;  %1572 = vrot.lane.b32.xlu0 %v2504_v59, %s4491_s22  ;;  %v1586_v59 = vmul.f32 %v3655_v47, %v4546_v60  ;;  %v1691_v27 = vmul.f32 %v3396_v62, %v4547_v58  ;;  %v4565_v60 = vstv %s3233_s18  ;;  %s3750_s18 = sld [smem:[#allocation3 + $0x4c]] }
 0x173   :  { %v3643_v33 = vpop.permute.xlu1 %1657  ;;  %v3645_v21 = vpop.permute.xlu0 %1536  ;;  %v2505_v20 = vrot.slane %v1586_v59, 9  ;;  %v4558_v31 = vstv %s4551_s2  ;;  %v2067_v59 = vmul.f32 %v3396_v62, %v4565_v60  ;;  %s4575_s2 = sld [smem:[#allocation49_spill]] }
 0x174   :  { %v1465_v57 = vmul.f32 %v3655_v47, %v4558_v31 }
 0x175   :  { %1798 = vrot.lane.b32.xlu1 %v2516_v23, %s4485_s16  ;;  %1816 = vrot.lane.b32.xlu0 %v2517_v1, %s4488_s13  ;;  %v1822_v1 = vld [vmem:[#allocation2 + $0x2] sm:$0xf]  ;;  %v4549_v23 = vstv %s4542_s12  ;;  %s4557_s12 = sld [smem:[#allocation57_spill]] }
 0x176   :  { %v1831_v7 = vmul.f32 %v1822_v1, %v4549_v23 }
 0x177   :  { %v3657_v0 = vpop.permute.xlu1 %1544  ;;  %v3659_v37 = vpop.permute.xlu0 %1412 }
 0x179   :  { %1430 = vrot.lane.b32.xlu1 %v1428_v8, %s4491_s22  ;;  %2061 = vrot.lane.b32.xlu0 %v2530_v11, %s4485_s16  ;;  %v4550_v11 = vstv %s4543_s26  ;;  %s4566_s26 = sld [smem:[#allocation48_spill]] }
 0x17a   :  { %v1936_v8 = vmul.f32 %v3396_v62, %v4550_v11 }
 0x17b   :  { %v551_v50 = vpop.permute.xlu1 %550  ;;  %v405_v14 = vpop.permute.xlu0 %404  ;;  %v4564_v49 = vstv %s4557_s12  ;;  %s4585_s12 = sld [smem:[#allocation60_spill]] }
 0x17c   :  { %v552_v28 = vrot.slane %v551_v50, 1  ;;  %v406_v24 = vrot.slane %v405_v14, 1  ;;  %v1962_v35 = vmul.f32 %v3655_v47, %v4564_v49 }
 0x17d   :  { %1685 = vrot.lane.b32.xlu1 %v2510_v16, %s4488_s13  ;;  %1449 = vrot.lane.b32.xlu0 %v1447_v15, %s4494_s10  ;;  %v2518_v15 = vrot.slane %v1831_v7, 9  ;;  %v4554_v16 = vstv %s4545_s5  ;;  %s4567_s5 = sld [smem:[#allocation58_spill]] }
 0x17e   :  { %v554_v40 = vsel %vm553_vm8, %v551_v50, %v552_v28  ;;  %v408_v51 = vsel %vm407_vm9, %v405_v14, %v406_v24  ;;  %v2075_v30 = vmul.f32 %v3396_v62, %v4554_v16 }
 0x17f   :  { %v556_v44 = vmul.f32 %v554_v40, %v169_v22  ;;  %v410_v34 = vmul.f32 %v408_v51, %v167_v29  ;;  %v4555_v22 = vstv %s4548_s1  ;;  %v171_v29 = vld [vmem:[#allocation9 + $0x2] ss:$8 sm:$0x3]  ;;  %v1823_v40 = vmul.f32 %v1822_v1, %v4560_v46  ;;  %s4568_s1 = sld [smem:[#allocation68_spill]] }
 0x180   :  { %v1578_v50 = vmul.f32 %v3655_v47, %v4555_v22  ;;  %v2531_v14 = vrot.slane %v2075_v30, 9  ;;  %v2206_v1 = vmul.f32 %v3396_v62, %v1181_v53 }
 0x181   :  { %v557_v45 = vadd.f32 %v556_v44, %v410_v34  ;;  %1930 = vrot.lane.b32.xlu1 %v2523_v42, %s4485_s16  ;;  %1703 = vrot.lane.b32.xlu0 %v2511_v41, %s4491_s22  ;;  %v4559_v41 = vstv %s4552_s29  ;;  %v4563_v34 = vstv %s4556_s0  ;;  %s4576_s29 = sld [smem:[#allocation24_spill]] }
 0x182   :  { %v1717_v42 = vmul.f32 %v3655_v47, %v4559_v41  ;;  %v2538_v11 = vrot.slane %v2206_v1, 9  ;;  %s4581_s0 = sld [smem:[#allocation40_spill]] }
 0x183   :  { %v4573_v16 = vstv %s4567_s5  ;;  %s4605_s5 = sld [smem:[#allocation41_spill]] }
 0x184   :  { %v1954_v30 = vmul.f32 %v3655_v47, %v4573_v16 }
 0x185   :  { %1440 = vrot.lane.b32.xlu1 %v2497_v39, %s4491_s22  ;;  %1948 = vrot.lane.b32.xlu0 %v2524_v10, %s4488_s13  ;;  %v1455_v39 = vmul.f32 %v3655_v47, %v4563_v34  ;;  %v2512_v10 = vrot.slane %v1717_v42, 9  ;;  %v4574_v22 = vstv %s4568_s1  ;;  %s4606_s1 = sld [smem:[#allocation69_spill]] }
 0x189   :  { %1693 = vrot.lane.b32.xlu1 %v1691_v27, %s4491_s22  ;;  %2192 = vrot.lane.b32.xlu0 %v2537_v13, %s4485_s16  ;;  %v2498_v27 = vrot.slane %v1455_v39, 9  ;;  %v2525_v13 = vrot.slane %v1962_v35, 9  ;;  %v4584_v35 = vstv %s4577_s7  ;;  %s3943_s7 = sld [smem:[#allocation3 + $0x5a]] }
 0x18a   :  { %v1614_v60 = vmul.f32 %v3655_v47, %v4584_v35 }
 0x18d   :  { %1938 = vrot.lane.b32.xlu1 %v1936_v8, %s4488_s13  ;;  %1590 = vrot.lane.b32.xlu0 %v2505_v20, %s4494_s10  ;;  %v4572_v8 = vstv %s4566_s26  ;;  %s4594_s26 = sld [smem:[#allocation39_spill]] }
 0x191   :  { %2182 = vrot.lane.b32.xlu1 %v2180_v38, %s4485_s16  ;;  %1835 = vrot.lane.b32.xlu0 %v2518_v15, %s4491_s22  ;;  %s4561_s16 = sld [smem:[#allocation30_spill]]  ;;  %v1849_v15 = vmul.f32 %v3655_v47, %v4572_v8 }
 0x193   :  { %v697_v28 = vpop.permute.xlu0 %696  ;;  %v2519_v38 = vrot.slane %v1849_v15, 9  ;;  %v4592_v15 = vstv %s4585_s12  ;;  %s4063_s12 = sld [smem:[#allocation3 + $0x6]] }
 0x194   :  { %v698_v24 = vrot.slane %v697_v28, 1  ;;  %v1972_v16 = vmul.f32 %v3655_v47, %v4592_v15 }
 0x195   :  { %1580 = vrot.lane.b32.xlu1 %v1578_v50, %s4494_s10  ;;  %2079 = vrot.lane.b32.xlu0 %v2531_v14, %s4488_s13  ;;  %v2093_v50 = vmul.f32 %v3655_v47, %v4574_v22  ;;  %v2198_v14 = vmul.f32 %v3396_v62, %v1172_v63 }
 0x196   :  { %v700_v51 = vsel %vm699_vm10, %v697_v28, %v698_v24  ;;  %v1201_v28 = vstv %s3750_s18  ;;  %v173_v24 = vld [vmem:[#allocation9 + $0x3] ss:$8 sm:$0x3]  ;;  %s4612_s18 = sld [smem:[#allocation70_spill]] }
 0x197   :  { %v702_v44 = vmul.f32 %v700_v51, %v171_v29  ;;  %v4569_v20 = vstv %s4561_s16  ;;  %v2532_v42 = vrot.slane %v2093_v50, 9  ;;  %v1202_v63 = vmul.f32 %v1201_v28, %v2825_v19  ;;  %s3794_s16 = sld [smem:[#allocation3 + $0x22]] }
 0x198   :  { %v1604_v23 = vmul.f32 %v3655_v47, %v4569_v20  ;;  %v4580_v51 = vstv %s4575_s2  ;;  %v4588_v20 = vstv %s4581_s0  ;;  %s4609_s2 = sld [smem:[#allocation42_spill]]  ;;  %s4631_s0 = sld [smem:[#allocation72_spill]] }
 0x199   :  { %v703_v58 = vadd.f32 %v702_v44, %v557_v45  ;;  %1825 = vrot.lane.b32.xlu1 %v1823_v40, %s4491_s22  ;;  %1467 = vrot.lane.b32.xlu0 %v1465_v57, %s4479_s4  ;;  %v4570_v45 = vstv %s4562_s17  ;;  %v4578_v57 = vstv %s4571_s6  ;;  %v1841_v44 = vmul.f32 %v3655_v47, %v4580_v51  ;;  %s4593_s17 = sld [smem:[#allocation21_spill]]  ;;  %s3877_s6 = sld [smem:[#allocation3 + $0x29]] }
 0x19a   :  { %v1709_v7 = vmul.f32 %v3655_v47, %v4570_v45  ;;  %v2506_v53 = vrot.slane %v1604_v23, 9  ;;  %v1596_v41 = vmul.f32 %v3655_v47, %v4578_v57  ;;  %v2489_v39 = vrot.slane %v1202_v63, 9  ;;  %v3832_v57 = vld [vmem:[#allocation2] sm:$0x3f] }
 0x19b   :  { %v1727_v23 = vmul.f32 %v3655_v47, %v4588_v20  ;;  %v4589_v45 = vstv %s3271_s21  ;;  %s3824_s21 = sld [smem:[#allocation3 + $0x53]] }
 0x19d   :  { %2069 = vrot.lane.b32.xlu1 %v2067_v59, %s4488_s13  ;;  %1721 = vrot.lane.b32.xlu0 %v2512_v10, %s4494_s10  ;;  %v4582_v10 = vstv %s4576_s29  ;;  %v4586_v59 = vstv %s3249_s23  ;;  %s4590_s23 = sld [smem:[#allocation50_spill]]  ;;  %s4616_s29 = sld [smem:[#allocation62_spill]] }
 0x19e   :  { %v1473_v49 = vmul.f32 %v3655_v47, %v4582_v10 }
 0x19f   :  { %v4597_v51 = vstv %s4593_s17  ;;  %s4638_s17 = smov 47  }
 0x1a1   :  { %1459 = vrot.lane.b32.xlu1 %v2498_v27, %s4494_s10  ;;  %1966 = vrot.lane.b32.xlu0 %v2525_v13, %s4491_s22  ;;  %v2085_v27 = vmul.f32 %v3655_v47, %v4586_v59  ;;  %v4587_v13 = vstv %s4579_s19  ;;  %s4629_s19 = sld [smem:[#allocation52_spill]] }
 0x1a2   :  { %v1859_v1 = vmul.f32 %v3655_v47, %v4587_v13 }
 0x1a5   :  { %1711 = vrot.lane.b32.xlu1 %v1709_v7, %s4494_s10  ;;  %2210 = vrot.lane.b32.xlu0 %v2538_v11, %s4488_s13  ;;  %v2103_v7 = vmul.f32 %v3655_v47, %v4589_v45  ;;  %v1212_v11 = vstv %s3794_s16  ;;  %s4633_s16 = sld [smem:[#allocation74_spill]] }
 0x1a9   :  { %1956 = vrot.lane.b32.xlu1 %v1954_v30, %s4491_s22  ;;  %1608 = vrot.lane.b32.xlu0 %v2506_v53, %s4479_s4  ;;  %v1649_v30 = vmul.f32 %v3396_v62, %v561_v48  ;;  %v2216_v48 = vmul.f32 %v3655_v47, %v1192_v5  ;;  %v1483_v5 = vmul.f32 %v3655_v47, %v4597_v51  ;;  %v4611_v51 = vstv %s4605_s5 }
 0x1ab   :  { %v844_v29 = vpop.permute.xlu1 %843 }
 0x1ac   :  { %v845_v31 = vrot.slane %v844_v29, 1 }
 0x1ad   :  { %2200 = vrot.lane.b32.xlu1 %v2198_v14, %s4488_s13  ;;  %1853 = vrot.lane.b32.xlu0 %v2519_v38, %s4494_s10  ;;  %s4583_s13 = sld [smem:[#allocation32_spill]]  ;;  %v1213_v38 = vmul.f32 %v1212_v11, %v2825_v19  ;;  %v175_v14 = vld [vmem:[#allocation9 + $0x4] ss:$8 sm:$0x3] }
 0x1ae   :  { %v846_v46 = vsel %vm360_vm6, %v844_v29, %v845_v31  ;;  %v2508_v31 = vrot.slane %v1649_v30, 9 }
 0x1af   :  { %v848_v40 = vmul.f32 %v846_v46, %v173_v24  ;;  %v4595_v24 = vstv %s4590_s23  ;;  %s4636_s23 = smov 51  }
 0x1b0   :  { %v1867_v62 = vmul.f32 %v3655_v47, %v4595_v24 }
 0x1b1   :  { %v849_v34 = vadd.f32 %v848_v40, %v703_v58  ;;  %1598 = vrot.lane.b32.xlu1 %v1596_v41, %s4479_s4  ;;  %2097 = vrot.lane.b32.xlu0 %v2532_v42, %s4491_s22  ;;  %v2499_v58 = vrot.slane %v1473_v49, 9  ;;  %v1647_v41 = vmul.f32 %v3832_v57, %v558_v17  ;;  %v1659_v42 = vrot.slane %v3643_v33, 2 }
 0x1b2   :  { %v2520_v10 = vrot.slane %v1867_v62, 9  ;;  %v4599_v17 = vstv %s3251_s25  ;;  %s4602_s25 = sld [smem:[#allocation26_spill]] }
 0x1b3   :  { %v4591_v53 = vstv %s4583_s13  ;;  %v2111_v49 = vmul.f32 %v3655_v47, %v4599_v17  ;;  %v1654_v35 = vadd.f32 %v2508_v31, %v1647_v41  ;;  %v1660_v59 = vsel %vm275_vm2, %v3643_v33, %v1659_v42  ;;  %s4052_s13 = sld [smem:[#allocation3 + $0x37]] }
 0x1b4   :  { %v1622_v8 = vmul.f32 %v3655_v47, %v4591_v53  ;;  %v4608_v31 = vstv %s4603_s27 }
 0x1b5   :  { %1843 = vrot.lane.b32.xlu1 %v1841_v44, %s4494_s10  ;;  %1206 = vrot.lane.b32.xlu0 %v2489_v39, %s4491_s22  ;;  %v4598_v44 = vstv %s4594_s26  ;;  %v2533_v45 = vrot.slane %v2111_v49, 9  ;;  %v1877_v41 = vmul.f32 %v3655_v47, %v4608_v31  ;;  %v4614_v49 = vstv %s3292_s28  ;;  %s4619_s28 = sld [smem:[#allocation63_spill]]  ;;  %s4298_s26 = sld [smem:[#allocation8 + $0x1]] }
 0x1b6   :  { %v2507_v50 = vrot.slane %v1622_v8, 9  ;;  %v1735_v39 = vmul.f32 %v3655_v47, %v4598_v44  ;;  %v4613_v44 = vstv %s4606_s1 }
 0x1b8   :  { %v4607_v62 = vstv %s4602_s25 }
 0x1b9   :  { %2087 = vrot.lane.b32.xlu1 %v2085_v27, %s4491_s22  ;;  %1616 = vrot.lane.b32.xlu0 %v1614_v60, %s4482_s9 }
 0x1bd   :  { %1477 = vrot.lane.b32.xlu1 %v2499_v58, %s4479_s4  ;;  %1861 = vrot.lane.b32.xlu0 %v1859_v1, %s4479_s4  ;;  %v1221_v58 = vstv %s3824_s21  ;;  %v4601_v1 = vstv %s4596_s20  ;;  %s4637_s21 = smov 49   ;;  %s2699_s20 = smov [#allocation12]  }
 0x1be   :  { %v1980_v20 = vmul.f32 %v3655_v47, %v4601_v1  ;;  %v4617_v1 = vstv %s4609_s2 }
 0x1c0   :  { %v2526_v8 = vrot.slane %v1980_v20, 9  ;;  %v1745_v20 = vmul.f32 %v3655_v47, %v4617_v1  ;;  %v1406_v1 = vrot.slane %v3634_v9, 2 }
 0x1c1   :  { %1729 = vrot.lane.b32.xlu1 %v1727_v23, %s4479_s4  ;;  %2105 = vrot.lane.b32.xlu0 %v2103_v7, %s4494_s10  ;;  %v2513_v23 = vrot.slane %v1735_v39, 9  ;;  %v1222_v7 = vmul.f32 %v1221_v58, %v2825_v19  ;;  %v1386_v39 = vmul.f32 %v3832_v57, %v4613_v44 }
 0x1c3   :  { %v989_v22 = vpop.permute.xlu0 %988 }
 0x1c4   :  { %v990_v29 = vrot.slane %v989_v22, 1 }
 0x1c5   :  { %1974 = vrot.lane.b32.xlu1 %v1972_v16, %s4494_s10  ;;  %1215 = vrot.lane.b32.xlu0 %v1213_v38, %s4494_s10  ;;  %v4604_v16 = vstv %s4600_s15  ;;  %s2331_s15 = sshll.u32 %s2699_s20, 4  ;;  %s2332_s15 = int_to_ptr.vmem [resolvable:$true] %s2331_s15 }
 0x1c6   :  { %v992_v63 = vsel %vm991_vm11, %v989_v22, %v990_v29  ;;  %v1518_v30 = vmul.f32 %v3832_v57, %v4604_v16  ;;  %v2490_v22 = vrot.slane %v1222_v7, 9  ;;  %s2647_s25 = scalar_lea.vmem %s2332_s15, 256  ;;  %p2652_p11 = scmp.lt.s32.totalorder %s2332_s15, %s2332_s15 }
 0x1c7   :  { %v994_v46 = vmul.f32 %v992_v63, %v175_v14  ;;  %v1668_v40 = vpop.permute.xlu0 %1667  ;;  %v4610_v63 = vstv %s3280_s30  ;;  %s4615_s30 = sld [smem:[#allocation61_spill]]  ;;  %p2648_p10 = scmp.ne.s32.totalorder %s2332_s15, %s2647_s25 }
 0x1c8   :  { %v1669_v27 = vrot.slane %v1668_v40, 2  ;;  %v2501_v42 = vrot.slane %v1518_v30, 9  ;;  %p2653_p12 = scmp.lt.s32.totalorder %s2647_s25, %s2647_s25 }
 0x1c9   :  { %v3850_v60 = vadd.f32 %v994_v46, %v849_v34  ;;  %2218 = vrot.lane.b32.xlu1 %v2216_v48, %s4491_s22  ;;  %1626 = vrot.lane.b32.xlu0 %v2507_v50, %s4482_s9  ;;  %v1662_v34 = vadd.f32 %v1660_v59, %v1654_v35  ;;  %v2224_v50 = vmul.f32 %v3655_v47, %v1201_v28 }
 0x1ca   :  { %v1670_v33 = vsel %vm275_vm2, %v1668_v40, %v1669_v27  ;;  %v1491_v48 = vmul.f32 %v3655_v47, %v4607_v62  ;;  %v1516_v28 = vmul.f32 %v3832_v57, %v4610_v63  ;;  %v1528_v40 = vrot.slane %v3636_v52, 2  ;;  %p2654_p13 = por %p2653_p12, %p2652_p11 }
 0x1cb   :  { %v3857_v13 = vpop.permute.xlu0 %1422  ;;  %v1672_v38 = vadd.f32 %v1670_v33, %v1662_v34  ;;  %v2539_v46 = vrot.slane %v2224_v50, 9  ;;  %v2121_v35 = vmul.f32 %v3655_v47, %v4614_v49  ;;  %v1780_v27 = vmul.f32 %v3832_v57, %v707_v61  ;;  %v3935_v50 = vld [vmem:[#allocation9 + $0x5] ss:$8 sm:$0x3] }
 0x1cc   :  { %v2500_v17 = vrot.slane %v1491_v48, 9  ;;  %v1523_v59 = vadd.f32 %v2501_v42, %v1516_v28  ;;  %v1232_v34 = vstv %s3877_s6  ;;  %v2494_v33 = vrot.slane %v1386_v39, 9  ;;  %p2655_p0 = pnand %p2654_p13, %p2648_p10 }
 0x1cd   :  { %1485 = vrot.lane.b32.xlu1 %v1483_v5, %s4482_s9  ;;  %1871 = vrot.lane.b32.xlu0 %v2520_v10, %s4479_s4  ;;  %v3898_v5 = vmul.f32 %v3655_v47, %v4611_v51  ;;  %v4620_v16 = vstv %s4615_s30  ;;  %v1778_v48 = vmul.f32 %v3832_v57, %v704_v12  ;;  %v2515_v31 = vrot.slane %v1780_v27, 9 }
 0x1ce   :  { %v3929_v30 = vmul.f32 %v3655_v47, %v4620_v16  ;;  %v4624_v42 = vstv %s4619_s28  ;;  %v2043_v49 = vmul.f32 %v3832_v57, %v999_v6 }
 0x1cf   :  { %v1676_v53 = vpop.permute.xlu0 %1675  ;;  %v2514_v7 = vrot.slane %v3898_v5, 9  ;;  %v3948_v63 = vmul.f32 %v3655_v47, %v4624_v42  ;;  %v1424_v42 = vrot.slane %v3857_v13, 2 }
 0x1d0   :  { %v1677_v15 = vrot.slane %v1676_v53, 2 }
 0x1d1   :  { %1739 = vrot.lane.b32.xlu1 %v2513_v23, %s4479_s4  ;;  %2115 = vrot.lane.b32.xlu0 %v2533_v45, %s4494_s10  ;;  %v1529_v23 = vsel %vm275_vm2, %v3636_v52, %v1528_v40  ;;  %v1538_v45 = vrot.slane %v3645_v21, 2  ;;  %v4621_v52 = vstv %s4616_s29 }
 0x1d2   :  { %v1678_v14 = vsel %vm296_vm3, %v1676_v53, %v1677_v15  ;;  %v4618_v53 = vstv %s4612_s18  ;;  %v1531_v62 = vadd.f32 %v1529_v23, %v1523_v59  ;;  %v4627_v59 = vstv %s4623_s3 }
 0x1d3   :  { %v3879_v29 = vadd.f32 %v1678_v14, %v1672_v38  ;;  %v3881_v24 = vpop.permute.xlu0 %1920  ;;  %v1990_v38 = vmul.f32 %v3655_v47, %v4621_v52  ;;  %v1539_v28 = vsel %vm275_vm2, %v3645_v21, %v1538_v45  ;;  %v3964_v27 = vmul.f32 %v3655_v47, %v4627_v59 }
 0x1d4   :  { %v3972_v23 = vmul.f32 %v3832_v57, %v853_v25  ;;  %v2527_v45 = vrot.slane %v3929_v30, 9  ;;  %v2041_v25 = vmul.f32 %v3832_v57, %v996_v3  ;;  %v1414_v52 = vrot.slane %v3659_v37, 2 }
 0x1d5   :  { %1984 = vrot.lane.b32.xlu1 %v2526_v8, %s4494_s10  ;;  %1226 = vrot.lane.b32.xlu0 %v2490_v22, %s4494_s10  ;;  %v1384_v8 = vmul.f32 %v3832_v57, %v4618_v53  ;;  %v1396_v22 = vrot.slane %v3622_v54, 2  ;;  %v1785_v53 = vadd.f32 %v2515_v31, %v1778_v48  ;;  %v2252_v3 = vmul.f32 %v3655_v47, %v1232_v34 }
 0x1d7   :  { %v3903_v10 = vpop.permute.xlu0 %1562  ;;  %v1391_v44 = vadd.f32 %v2494_v33, %v1384_v8  ;;  %v1397_v21 = vsel %vm275_vm2, %v3622_v54, %v1396_v22  ;;  %v1541_v33 = vadd.f32 %v1539_v28, %v1531_v62  ;;  %v1407_v62 = vsel %vm275_vm2, %v3634_v9, %v1406_v1 }
 0x1d8   :  { %v1564_v8 = vrot.slane %v3903_v10, 2  ;;  %v1241_v28 = vstv %s3943_s7 }
 0x1d9   :  { %2228 = vrot.lane.b32.xlu1 %v2539_v46, %s4491_s22  ;;  %1879 = vrot.lane.b32.xlu0 %v1877_v41, %s4482_s9  ;;  %s4622_s22 = sld [smem:[#allocation64_spill]]  ;;  %v1233_v41 = vmul.f32 %v1232_v34, %v2825_v19  ;;  %v1546_v46 = vrot.slane %v3657_v0, 2  ;;  %v1399_v16 = vadd.f32 %v1397_v21, %v1391_v44  ;;  %v2528_v21 = vrot.slane %v3948_v63, 9 }
 0x1db   :  { %v1135_v15 = vpop.permute.xlu1 %1134  ;;  %v3924_v61 = vpop.permute.xlu0 %1806  ;;  %v1547_v54 = vsel %vm296_vm3, %v3657_v0, %v1546_v46  ;;  %v1565_v46 = vsel %vm317_vm4, %v3903_v10, %v1564_v8 }
 0x1dc   :  { %v1136_v14 = vrot.slane %v1135_v15, 1 }
 0x1dd   :  { %1495 = vrot.lane.b32.xlu1 %v2500_v17, %s4482_s9  ;;  %2123 = vrot.lane.b32.xlu0 %v2121_v35, %s4479_s4 }
 0x1de   :  { %v1138_v40 = vsel %vm1137_vm12, %v1135_v15, %v1136_v14 }
 0x1df   :  { %v4625_v51 = vstv %s4622_s22  ;;  %v1140_v39 = vmul.f32 %v1138_v40, %v3935_v50  ;;  %v1789_v17 = vpop.permute.xlu1 %1788  ;;  %v2052_v35 = vpop.permute.xlu0 %2051 }
 0x1e0   :  { %v2008_v12 = vmul.f32 %v3655_v47, %v4625_v51  ;;  %v1790_v15 = vrot.slane %v1789_v17, 2  ;;  %v2053_v0 = vrot.slane %v2052_v35, 2  ;;  %v1409_v51 = vadd.f32 %v1407_v62, %v1399_v16 }
 0x1e1   :  { %v3976_v6 = vadd.f32 %v1140_v39, %v3850_v60  ;;  %1747 = vrot.lane.b32.xlu1 %v1745_v20, %s4482_s9  ;;  %1235 = vrot.lane.b32.xlu0 %v1233_v41, %s4479_s4  ;;  %v2529_v60 = vrot.slane %v2043_v49, 9  ;;  %v2234_v20 = vmul.f32 %v3655_v47, %v1212_v11  ;;  %v1549_v41 = vadd.f32 %v1547_v54, %v1541_v33 }
 0x1e2   :  { %v1808_v11 = vrot.slane %v3924_v61, 2  ;;  %v1791_v9 = vsel %vm275_vm2, %v1789_v17, %v1790_v15  ;;  %v2054_v10 = vsel %vm275_vm2, %v2052_v35, %v2053_v0  ;;  %v1425_v54 = vsel %vm296_vm3, %v3857_v13, %v1424_v42 }
 0x1e3   :  { %v1555_v22 = vpop.permute.xlu1 %1554  ;;  %v1573_v14 = vpop.permute.xlu0 %1572  ;;  %v1793_v1 = vadd.f32 %v1791_v9, %v1785_v53  ;;  %v1910_v35 = vmul.f32 %v3832_v57, %v850_v4 }
 0x1e4   :  { %v1556_v48 = vrot.slane %v1555_v22, 2  ;;  %v1574_v31 = vrot.slane %v1573_v14, 2  ;;  %v1809_v8 = vsel %vm296_vm3, %v3924_v61, %v1808_v11  ;;  %v2242_v61 = vmul.f32 %v3655_v47, %v1221_v58 }
 0x1e5   :  { %1992 = vrot.lane.b32.xlu1 %v1990_v38, %s4479_s4  ;;  %2010 = vrot.lane.b32.xlu0 %v2008_v12, %s4482_s9  ;;  %v1415_v38 = vsel %vm296_vm3, %v3659_v37, %v1414_v52  ;;  %v2048_v12 = vadd.f32 %v2529_v60, %v2041_v25  ;;  %v2260_v37 = vmul.f32 %v3655_v47, %v1241_v28  ;;  %v4630_v11 = vstv %s4629_s19 }
 0x1e6   :  { %v1557_v40 = vsel %vm296_vm3, %v1555_v22, %v1556_v48  ;;  %v1575_v49 = vsel %vm317_vm4, %v1573_v14, %v1574_v31  ;;  %v1417_v53 = vadd.f32 %v1415_v38, %v1409_v51  ;;  %v2522_v22 = vrot.slane %v3972_v23, 9 }
 0x1e7   :  { %v1559_v34 = vadd.f32 %v1557_v40, %v1549_v41  ;;  %v1799_v44 = vpop.permute.xlu1 %1798  ;;  %v1817_v39 = vpop.permute.xlu0 %1816  ;;  %v2056_v15 = vadd.f32 %v2054_v10, %v2048_v12  ;;  %v2541_v0 = vrot.slane %v2260_v37, 9  ;;  %v1922_v48 = vrot.slane %v3881_v24, 2 }
 0x1e8   :  { %v1800_v59 = vrot.slane %v1799_v44, 2  ;;  %v1818_v17 = vrot.slane %v1817_v39, 2  ;;  %v1261_v41 = vstv %s4002_s11  ;;  %v1885_v58 = vmul.f32 %v3655_v47, %v4630_v11 }
 0x1e9   :  { %v1567_v33 = vadd.f32 %v1565_v46, %v1559_v34  ;;  %2236 = vrot.lane.b32.xlu1 %v2234_v20, %s4494_s10  ;;  %2254 = vrot.lane.b32.xlu0 %v2252_v3, %s4479_s4  ;;  %v1427_v20 = vadd.f32 %v1425_v54, %v1417_v53  ;;  %v2535_v40 = vrot.slane %v3964_v27, 9  ;;  %v1917_v51 = vadd.f32 %v2522_v22, %v1910_v35 }
 0x1ea   :  { %v1801_v63 = vsel %vm275_vm2, %v1799_v44, %v1800_v59  ;;  %v1819_v13 = vsel %vm296_vm3, %v1817_v39, %v1818_v17  ;;  %v2540_v38 = vrot.slane %v2242_v61, 9  ;;  %v1262_v12 = vmul.f32 %v1261_v41, %v2825_v19 }
 0x1eb   :  { %v4022_v25 = vadd.f32 %v1575_v49, %v1567_v33  ;;  %v1803_v16 = vadd.f32 %v1801_v63, %v1793_v1  ;;  %v1431_v52 = vpop.permute.xlu1 %1430  ;;  %v2062_v60 = vpop.permute.xlu0 %2061  ;;  %v1923_v34 = vsel %vm275_vm2, %v3881_v24, %v1922_v48  ;;  %v2521_v30 = vrot.slane %v1885_v58, 9 }
 0x1ec   :  { %v1432_v14 = vrot.slane %v1431_v52, 2  ;;  %v2063_v4 = vrot.slane %v2062_v60, 2  ;;  %v1925_v17 = vadd.f32 %v1923_v34, %v1917_v51  ;;  %v1145_v63 = vstv %s4052_s13 }
 0x1ed   :  { %v1811_v62 = vadd.f32 %v1809_v8, %v1803_v16  ;;  %1757 = vrot.lane.b32.xlu1 %v2514_v7, %s4482_s9  ;;  %2020 = vrot.lane.b32.xlu0 %v2528_v21, %s4482_s9  ;;  %v2492_v21 = vrot.slane %v1262_v12, 9  ;;  %v1242_v8 = vmul.f32 %v1241_v28, %v2825_v19  ;;  %v4634_v11 = vstv %s4633_s16 }
 0x1ee   :  { %v1433_v23 = vsel %vm317_vm4, %v1431_v52, %v1432_v14  ;;  %v2064_v31 = vsel %vm275_vm2, %v2062_v60, %v2063_v4  ;;  %v2139_v58 = vmul.f32 %v3655_v47, %v4634_v11 }
 0x1ef   :  { %v4037_v42 = vadd.f32 %v1819_v13, %v1811_v62  ;;  %v1435_v3 = vadd.f32 %v1433_v23, %v1427_v20  ;;  %v4039_v46 = vadd.f32 %v2064_v31, %v2056_v15  ;;  %v1686_v5 = vpop.permute.xlu1 %1685  ;;  %v1450_v7 = vpop.permute.xlu0 %1449  ;;  %v2174_v13 = vmul.f32 %v3832_v57, %v1145_v63 }
 0x1f0   :  { %v1687_v9 = vrot.slane %v1686_v5, 2  ;;  %v1451_v24 = vrot.slane %v1450_v7, 6  ;;  %v2491_v28 = vrot.slane %v1242_v8, 9  ;;  %v1142_v20 = vstv %s4063_s12 }
 0x1f1   :  { %2002 = vrot.lane.b32.xlu1 %v2527_v45, %s4479_s4  ;;  %2264 = vrot.lane.b32.xlu0 %v2541_v0, %s4479_s4  ;;  %v4632_v45 = vstv %s4631_s0 }
 0x1f2   :  { %v1688_v44 = vsel %vm296_vm3, %v1686_v5, %v1687_v9  ;;  %v2129_v59 = vmul.f32 %v3655_v47, %v4632_v45  ;;  %v1452_v53 = vsel %vm339_vm5, %v1451_v24, %v1450_v7  ;;  %v2536_v5 = vrot.slane %v2174_v13, 9 }
 0x1f3   :  { %v1690_v27 = vadd.f32 %v1688_v44, %v3879_v29  ;;  %v1931_v39 = vpop.permute.xlu1 %1930  ;;  %v1704_v10 = vpop.permute.xlu0 %1703 }
 0x1f4   :  { %v1932_v49 = vrot.slane %v1931_v39, 2  ;;  %v2534_v35 = vrot.slane %v2129_v59, 9  ;;  %v1705_v15 = vrot.slane %v1704_v10, 2 }
 0x1f5   :  { %2246 = vrot.lane.b32.xlu1 %v2540_v38, %s4494_s10  ;;  %2151 = vrot.lane.b32.xlu0 %v2535_v40, %s4482_s9  ;;  %s4074_s10 = sld [smem:[#allocation3 + $0x30]] }
 0x1f6   :  { %v1933_v29 = vsel %vm275_vm2, %v1931_v39, %v1932_v49  ;;  %v1706_v62 = vsel %vm317_vm4, %v1704_v10, %v1705_v15 }
 0x1f7   :  { %v1935_v1 = vadd.f32 %v1933_v29, %v1925_v17  ;;  %v1441_v33 = vpop.permute.xlu1 %1440  ;;  %v1949_v37 = vpop.permute.xlu0 %1948  ;;  %v2278_v29 = vmul.f32 %v3655_v47, %v1261_v41 }
 0x1f8   :  { %v1442_v54 = vrot.slane %v1441_v33, 2  ;;  %v1950_v61 = vrot.slane %v1949_v37, 2 }
 0x1f9   :  { %1889 = vrot.lane.b32.xlu1 %v2521_v30, %s4482_s9  ;;  %1266 = vrot.lane.b32.xlu0 %v2492_v21, %s4482_s9 }
 0x1fa   :  { %v1443_v16 = vsel %vm317_vm4, %v1441_v33, %v1442_v54  ;;  %v1951_v40 = vsel %vm296_vm3, %v1949_v37, %v1950_v61 }
 0x1fb   :  { %v1445_v52 = vadd.f32 %v1443_v16, %v1435_v3  ;;  %v1694_v60 = vpop.permute.xlu1 %1693  ;;  %v2193_v22 = vpop.permute.xlu0 %2192  ;;  %v2172_v3 = vmul.f32 %v3832_v57, %v1142_v20  ;;  %v1252_v12 = vstv %s4074_s10 }
 0x1fc   :  { %v1695_v14 = vrot.slane %v1694_v60, 2  ;;  %v2194_v51 = vrot.slane %v2193_v22, 2  ;;  %v1253_v10 = vmul.f32 %v1252_v12, %v2825_v19  ;;  %v2270_v24 = vmul.f32 %v3655_v47, %v1252_v12 }
 0x1fd   :  { %2133 = vrot.lane.b32.xlu1 %v2534_v35, %s4479_s4  ;;  %v1454_v4 = vadd.f32 %v1452_v53, %v1445_v52  ;;  %v2179_v44 = vadd.f32 %v2536_v5, %v2172_v3  ;;  %v2542_v35 = vrot.slane %v2278_v29, 9 }
 0x1fe   :  { %v1696_v0 = vsel %vm317_vm4, %v1694_v60, %v1695_v14  ;;  %v2195_v30 = vsel %vm275_vm2, %v2193_v22, %v2194_v51 }
 0x1ff   :  { %v1698_v48 = vadd.f32 %v1696_v0, %v1690_v27  ;;  %v1939_v23 = vpop.permute.xlu1 %1938  ;;  %v4083_v31 = vpop.permute.xlu0 %1590 }
 0x200   :  { %v1940_v7 = vrot.slane %v1939_v23, 2 }
 0x201   :  { %1246 = vrot.lane.b32.xlu1 %v2491_v28, %s4479_s4  ;;  %v1708_v9 = vadd.f32 %v1706_v62, %v1698_v48 }
 0x202   :  { %v1941_v38 = vsel %vm296_vm3, %v1939_v23, %v1940_v7 }
 0x203   :  { %v1943_v34 = vadd.f32 %v1941_v38, %v1935_v1  ;;  %v2183_v27 = vpop.permute.xlu1 %2182  ;;  %v1836_v39 = vpop.permute.xlu0 %1835 }
 0x204   :  { %v2184_v57 = vrot.slane %v2183_v27, 2  ;;  %v1837_v33 = vrot.slane %v1836_v39, 6 }
 0x205   :  { %2141 = vrot.lane.b32.xlu1 %v2139_v58, %s4482_s9  ;;  %v1953_v49 = vadd.f32 %v1951_v40, %v1943_v34 }
 0x206   :  { %v2185_v45 = vsel %vm275_vm2, %v2183_v27, %v2184_v57  ;;  %v1838_v8 = vsel %vm317_vm4, %v1837_v33, %v1836_v39 }
 0x207   :  { %v2187_v59 = vadd.f32 %v2185_v45, %v2179_v44  ;;  %v4099_v17 = vpop.permute.xlu1 %1580  ;;  %v2080_v21 = vpop.permute.xlu0 %2079 }
 0x208   :  { %v2081_v53 = vrot.slane %v2080_v21, 2 }
 0x209   :  { %1255 = vrot.lane.b32.xlu1 %v1253_v10, %s4482_s9  ;;  %v2197_v1 = vadd.f32 %v2195_v30, %v2187_v59 }
 0x20a   :  { %v2082_v41 = vsel %vm296_vm3, %v2080_v21, %v2081_v53 }
 0x20b   :  { %v1826_v37 = vpop.permute.xlu1 %1825  ;;  %v1468_v19 = vpop.permute.xlu0 %1467 }
 0x20c   :  { %v1827_v54 = vrot.slane %v1826_v37, 6  ;;  %v1469_v13 = vrot.slane %v1468_v19, 6 }
 0x20d   :  { %2272 = vrot.lane.b32.xlu1 %v2270_v24, %s4482_s9 }
 0x20e   :  { %v1828_v15 = vsel %vm317_vm4, %v1827_v54, %v1826_v37  ;;  %v1470_v23 = vsel %vm360_vm6, %v1469_v13, %v1468_v19 }
 0x20f   :  { %v1830_v16 = vadd.f32 %v1828_v15, %v4037_v42  ;;  %v2070_v52 = vpop.permute.xlu1 %2069  ;;  %v1722_v60 = vpop.permute.xlu0 %1721 }
 0x210   :  { %v2071_v22 = vrot.slane %v2070_v52, 2  ;;  %v1723_v42 = vrot.slane %v1722_v60, 6 }
 0x211   :  { %2282 = vrot.lane.b32.xlu1 %v2542_v35, %s4482_s9  ;;  %v1840_v47 = vadd.f32 %v1838_v8, %v1830_v16  ;;  %s4635_s9 = smov 50  }
 0x212   :  { %v2072_v14 = vsel %vm296_vm3, %v2070_v52, %v2071_v22  ;;  %v1724_v51 = vsel %vm339_vm5, %v1723_v42, %v1722_v60 }
 0x213   :  { %v2074_v28 = vadd.f32 %v2072_v14, %v4039_v46  ;;  %v1460_v62 = vpop.permute.xlu1 %1459  ;;  %v1967_v61 = vpop.permute.xlu0 %1966 }
 0x214   :  { %v1461_v0 = vrot.slane %v1460_v62, 6  ;;  %v1968_v38 = vrot.slane %v1967_v61, 6 }
 0x215   :  { %v2084_v48 = vadd.f32 %v2082_v41, %v2074_v28  ;;  %v1592_v28 = vrot.slane %v4083_v31, 6 }
 0x216   :  { %v1462_v3 = vsel %vm339_vm5, %v1461_v0, %v1460_v62  ;;  %v1969_v57 = vsel %vm317_vm4, %v1968_v38, %v1967_v61 }
 0x217   :  { %v1464_v5 = vadd.f32 %v1462_v3, %v1454_v4  ;;  %v1712_v7 = vpop.permute.xlu1 %1711  ;;  %v2211_v11 = vpop.permute.xlu0 %2210 }
 0x218   :  { %v1713_v58 = vrot.slane %v1712_v7, 6  ;;  %v2212_v10 = vrot.slane %v2211_v11, 2 }
 0x219   :  { %v4116_v40 = vadd.f32 %v1470_v23, %v1464_v5 }
 0x21a   :  { %v1714_v46 = vsel %vm339_vm5, %v1713_v58, %v1712_v7  ;;  %v2213_v29 = vsel %vm296_vm3, %v2211_v11, %v2212_v10  ;;  %v1593_v11 = vsel %vm339_vm5, %v1592_v28, %v4083_v31 }
 0x21b   :  { %v1716_v12 = vadd.f32 %v1714_v46, %v1708_v9  ;;  %v1957_v34 = vpop.permute.xlu1 %1956  ;;  %v1609_v44 = vpop.permute.xlu0 %1608 }
 0x21c   :  { %v1958_v27 = vrot.slane %v1957_v34, 6 }
 0x21d   :  { %v4120_v39 = vadd.f32 %v1724_v51, %v1716_v12 }
 0x21e   :  { %v1959_v4 = vsel %vm317_vm4, %v1958_v27, %v1957_v34 }
 0x21f   :  { %v1961_v30 = vadd.f32 %v1959_v4, %v1953_v49  ;;  %v2201_v45 = vpop.permute.xlu1 %2200  ;;  %v1854_v59 = vpop.permute.xlu0 %1853  ;;  %v1582_v49 = vrot.slane %v4099_v17, 6 }
 0x220   :  { %v2202_v21 = vrot.slane %v2201_v45, 2  ;;  %v1855_v35 = vrot.slane %v1854_v59, 6 }
 0x221   :  { %v4124_v24 = vadd.f32 %v1969_v57, %v1961_v30  ;;  %v1583_v62 = vsel %vm339_vm5, %v1582_v49, %v4099_v17  ;;  %v1610_v17 = vrot.slane %v1609_v44, 6 }
 0x222   :  { %v2203_v9 = vsel %vm296_vm3, %v2201_v45, %v2202_v21  ;;  %v1856_v16 = vsel %vm339_vm5, %v1855_v35, %v1854_v59 }
 0x223   :  { %v2205_v33 = vadd.f32 %v2203_v9, %v2197_v1  ;;  %v1599_v37 = vpop.permute.xlu1 %1598  ;;  %v2098_v19 = vpop.permute.xlu0 %2097  ;;  %v1611_v57 = vsel %vm360_vm6, %v1610_v17, %v1609_v44 }
 0x224   :  { %v2099_v52 = vrot.slane %v2098_v19, 6  ;;  %v1600_v5 = vrot.slane %v1599_v37, 6 }
 0x225   :  { %v4128_v54 = vadd.f32 %v2213_v29, %v2205_v33 }
 0x226   :  { %v2100_v61 = vsel %vm317_vm4, %v2099_v52, %v2098_v19  ;;  %v1601_v38 = vsel %vm360_vm6, %v1600_v5, %v1599_v37 }
 0x227   :  { %v1844_v8 = vpop.permute.xlu1 %1843  ;;  %v4130_v53 = vpop.permute.xlu0 %1206 }
 0x228   :  { %v1845_v15 = vrot.slane %v1844_v8, 6 }
 0x22a   :  { %v1846_v60 = vsel %vm339_vm5, %v1845_v15, %v1844_v8 }
 0x22b   :  { %v1848_v22 = vadd.f32 %v1846_v60, %v1840_v47  ;;  %v2088_v41 = vpop.permute.xlu1 %2087  ;;  %v1617_v13 = vpop.permute.xlu0 %1616  ;;  %v1585_v47 = vadd.f32 %v1583_v62, %v4022_v25 }
 0x22c   :  { %v2089_v1 = vrot.slane %v2088_v41, 6  ;;  %v1618_v12 = vrot.slane %v1617_v13, 6 }
 0x22d   :  { %v4135_v14 = vadd.f32 %v1856_v16, %v1848_v22  ;;  %v1595_v46 = vadd.f32 %v1593_v11, %v1585_v47 }
 0x22e   :  { %v2090_v0 = vsel %vm317_vm4, %v2089_v1, %v2088_v41  ;;  %v1619_v25 = vsel %vm381_vm7, %v1618_v12, %v1617_v13 }
 0x22f   :  { %v2092_v23 = vadd.f32 %v2090_v0, %v2084_v48  ;;  %v1478_v42 = vpop.permute.xlu1 %1477  ;;  %v4142_v3 = vpop.permute.xlu0 %1861  ;;  %v1603_v48 = vadd.f32 %v1601_v38, %v1595_v46 }
 0x230   :  { %v1479_v8 = vrot.slane %v1478_v42, 6 }
 0x231   :  { %v4145_v7 = vadd.f32 %v2100_v61, %v2092_v23  ;;  %v1613_v10 = vadd.f32 %v1611_v57, %v1603_v48  ;;  %v1143_v57 = vmul.f32 %v1142_v20, %v2823_v18 }
 0x232   :  { %v1480_v52 = vsel %vm360_vm6, %v1479_v8, %v1478_v42  ;;  %v1146_v42 = vmul.f32 %v1145_v63, %v2823_v18 }
 0x233   :  { %v1730_v58 = vpop.permute.xlu1 %1729  ;;  %v4149_v51 = vpop.permute.xlu0 %2105  ;;  %v1621_v45 = vadd.f32 %v1619_v25, %v1613_v10  ;;  %v1482_v22 = vadd.f32 %v1480_v52, %v4116_v40 }
 0x234   :  { %v1731_v47 = vrot.slane %v1730_v58, 6  ;;  %v2486_v48 = vrot.slane %v1146_v42, 9 }
 0x236   :  { %v1732_v38 = vsel %vm360_vm6, %v1731_v47, %v1730_v58 }
 0x237   :  { %v1975_v34 = vpop.permute.xlu1 %1974  ;;  %v4152_v27 = vpop.permute.xlu0 %1215 }
 0x238   :  { %v1976_v46 = vrot.slane %v1975_v34, 6 }
 0x23b   :  { %v4156_v4 = vpop.permute.xlu1 %2218  ;;  %v1627_v31 = vpop.permute.xlu0 %1626 }
 0x23c   :  { %v1628_v30 = vrot.slane %v1627_v31, 6 }
 0x23e   :  { %v1629_v59 = vsel %vm381_vm7, %v1628_v30, %v1627_v31  ;;  %v1157_v31 = vrot.slane %v3596_v2, 2 }
 0x23f   :  { %v1631_v21 = vadd.f32 %v1629_v59, %v1621_v45  ;;  %v1486_v29 = vpop.permute.xlu1 %1485  ;;  %v4159_v9 = vpop.permute.xlu0 %1871  ;;  %v1734_v45 = vadd.f32 %v1732_v38, %v4120_v39  ;;  %v1977_v59 = vsel %vm339_vm5, %v1976_v46, %v1975_v34  ;;  %v1863_v34 = vrot.slane %v4142_v3, 6 }
 0x240   :  { %v1487_v15 = vrot.slane %v1486_v29, 6  ;;  %v1158_v8 = vsel %vm275_vm2, %v3596_v2, %v1157_v31  ;;  %v1188_v31 = vrot.slane %v3603_v32, 2 }
 0x241   :  { %v1639_v33 = vrot.slane %v1631_v21, %v2785_v55 }
 0x242   :  { %v1488_v60 = vsel %vm381_vm7, %v1487_v15, %v1486_v29  ;;  %v1168_v29 = vrot.slane %v3594_v56, 2 }
 0x243   :  { %v1740_v37 = vpop.permute.xlu1 %1739  ;;  %1640 = vrot.lane.b32.xlu1 %v1639_v33, %s4635_s9  ;;  %v4163_v44 = vpop.permute.xlu0 %2115  ;;  %v1490_v28 = vadd.f32 %v1488_v60, %v1482_v22  ;;  %v1151_v33 = vadd.f32 %v2486_v48, %v1143_v57 }
 0x244   :  { %v1741_v17 = vrot.slane %v1740_v37, 6 }
 0x246   :  { %v1742_v63 = vsel %vm360_vm6, %v1741_v17, %v1740_v37  ;;  %v1979_v37 = vadd.f32 %v1977_v59, %v4124_v24  ;;  %v1873_v24 = vrot.slane %v4159_v9, 6 }
 0x247   :  { %v1985_v19 = vpop.permute.xlu1 %1984  ;;  %v4165_v35 = vpop.permute.xlu0 %1226  ;;  %v1744_v18 = vadd.f32 %v1742_v63, %v1734_v45 }
 0x248   :  { %v1986_v30 = vrot.slane %v1985_v19, 6 }
 0x24a   :  { %v1987_v15 = vsel %vm339_vm5, %v1986_v30, %v1985_v19  ;;  %v1177_v19 = vrot.slane %v3605_v36, 2 }
 0x24b   :  { %v4167_v49 = vpop.permute.xlu1 %2228  ;;  %v4169_v16 = vpop.permute.xlu0 %1879 }
 0x24c   :  { %v1881_v38 = vrot.slane %v4169_v16, 6  ;;  %v1178_v63 = vsel %vm296_vm3, %v3605_v36, %v1177_v19  ;;  %v1197_v36 = vrot.slane %v3624_v43, 6 }
 0x24e   :  { %v1882_v59 = vsel %vm381_vm7, %v1881_v38, %v4169_v16  ;;  %v2220_v16 = vrot.slane %v4156_v4, 6 }
 0x24f   :  { %v1496_v41 = vpop.permute.xlu1 %1495  ;;  %v4174_v13 = vpop.permute.xlu0 %2123 }
 0x250   :  { %v1497_v1 = vrot.slane %v1496_v41, 6 }
 0x252   :  { %v1498_v62 = vsel %vm381_vm7, %v1497_v1, %v1496_v41 }
 0x253   :  { %v1500_v61 = vadd.f32 %v1498_v62, %v1490_v28  ;;  %v1748_v0 = vpop.permute.xlu1 %1747  ;;  %v4177_v23 = vpop.permute.xlu0 %1235  ;;  %v1169_v28 = vsel %vm275_vm2, %v3594_v56, %v1168_v29  ;;  %v1160_v62 = vadd.f32 %v1158_v8, %v1151_v33  ;;  %v1208_v8 = vrot.slane %v4130_v53, 6 }
 0x254   :  { %v1749_v12 = vrot.slane %v1748_v0, 6 }
 0x255   :  { %v1508_v5 = vrot.slane %v1500_v61, %v2785_v55  ;;  %v1989_v61 = vadd.f32 %v1987_v15, %v1979_v37  ;;  %v2117_v37 = vrot.slane %v4163_v44, 6 }
 0x256   :  { %v1750_v58 = vsel %vm381_vm7, %v1749_v12, %v1748_v0  ;;  %v1171_v12 = vadd.f32 %v1169_v28, %v1160_v62  ;;  %v2230_v28 = vrot.slane %v4167_v49, 6  ;;  %v2125_v62 = vrot.slane %v4174_v13, 6 }
 0x257   :  { %v1993_v11 = vpop.permute.xlu1 %1992  ;;  %1509 = vrot.lane.b32.xlu0 %v1508_v5, %s4636_s23  ;;  %v2011_v40 = vpop.permute.xlu0 %2010  ;;  %v1752_v60 = vadd.f32 %v1750_v58, %v1744_v18  ;;  %v1189_v18 = vsel %vm296_vm3, %v3603_v32, %v1188_v31  ;;  %v1217_v32 = vrot.slane %v4152_v27, 6 }
 0x258   :  { %v1994_v21 = vrot.slane %v1993_v11, 6  ;;  %v2012_v1 = vrot.slane %v2011_v40, 6  ;;  %v1180_v58 = vadd.f32 %v1178_v63, %v1171_v12 }
 0x25a   :  { %v1995_v22 = vsel %vm360_vm6, %v1994_v21, %v1993_v11  ;;  %v1864_v11 = vsel %vm360_vm6, %v1863_v34, %v4142_v3  ;;  %v2013_v56 = vsel %vm381_vm7, %v2012_v1, %v2011_v40  ;;  %v1874_v3 = vsel %vm360_vm6, %v1873_v24, %v4159_v9 }
 0x25b   :  { %v4188_v25 = vpop.permute.xlu1 %2236  ;;  %v4190_v10 = vpop.permute.xlu0 %2254  ;;  %v1997_v42 = vadd.f32 %v1995_v22, %v1989_v61  ;;  %v1866_v40 = vadd.f32 %v1864_v11, %v4135_v14  ;;  %v1209_v61 = vsel %vm317_vm4, %v1208_v8, %v4130_v53  ;;  %v2221_v24 = vsel %vm317_vm4, %v2220_v16, %v4156_v4 }
 0x25c   :  { %v1218_v53 = vsel %vm339_vm5, %v1217_v32, %v4152_v27  ;;  %v2231_v11 = vsel %vm317_vm4, %v2230_v28, %v4167_v49  ;;  %v2126_v4 = vsel %vm360_vm6, %v2125_v62, %v4174_v13 }
 0x25d   :  { %v1876_v21 = vadd.f32 %v1874_v3, %v1866_v40 }
 0x25f   :  { %v1758_v20 = vpop.permute.xlu1 %1757  ;;  %v2021_v39 = vpop.permute.xlu0 %2020  ;;  %v1884_v15 = vadd.f32 %v1882_v59, %v1876_v21 }
 0x260   :  { %v1759_v52 = vrot.slane %v1758_v20, 6  ;;  %v2022_v47 = vrot.slane %v2021_v39, 6 }
 0x262   :  { %v1760_v41 = vsel %vm381_vm7, %v1759_v52, %v1758_v20  ;;  %v2023_v30 = vsel %vm381_vm7, %v2022_v47, %v2021_v39  ;;  %v2107_v20 = vrot.slane %v4149_v51, 6  ;;  %v1191_v39 = vadd.f32 %v1189_v18, %v1180_v58 }
 0x263   :  { %v1762_v2 = vadd.f32 %v1760_v41, %v1752_v60  ;;  %v2003_v0 = vpop.permute.xlu1 %2002  ;;  %v4233_v52 = vpop.permute.xlu0 %2264  ;;  %v1198_v41 = vsel %vm317_vm4, %v1197_v36, %v3624_v43  ;;  %v2118_v43 = vsel %vm339_vm5, %v2117_v37, %v4163_v44  ;;  %v1237_v44 = vrot.slane %v4177_v23, 6 }
 0x264   :  { %v2004_v5 = vrot.slane %v2003_v0, 6  ;;  %v2108_v1 = vsel %vm339_vm5, %v2107_v20, %v4149_v51  ;;  %v2238_v51 = vrot.slane %v4188_v25, 6  ;;  %v1200_v47 = vadd.f32 %v1198_v41, %v1191_v39 }
 0x265   :  { %v1770_v17 = vrot.slane %v1762_v2, %v2785_v55  ;;  %v1228_v2 = vrot.slane %v4165_v35, 6 }
 0x266   :  { %v2005_v46 = vsel %vm360_vm6, %v2004_v5, %v2003_v0  ;;  %v2239_v12 = vsel %vm339_vm5, %v2238_v51, %v4188_v25 }
 0x267   :  { %v2007_v48 = vadd.f32 %v2005_v46, %v1997_v42  ;;  %v4215_v57 = vpop.permute.xlu1 %2246  ;;  %1771 = vrot.lane.b32.xlu0 %v1770_v17, %s4637_s21  ;;  %v2152_v19 = vpop.permute.xlu0 %2151  ;;  %v2110_v42 = vadd.f32 %v2108_v1, %v4145_v7  ;;  %v2223_v46 = vadd.f32 %v2221_v24, %v4128_v54  ;;  %v1229_v27 = vsel %vm339_vm5, %v1228_v2, %v4165_v35 }
 0x268   :  { %v2248_v38 = vrot.slane %v4215_v57, 6  ;;  %v2153_v31 = vrot.slane %v2152_v19, 6  ;;  %v2256_v54 = vrot.slane %v4190_v10, 6 }
 0x269   :  { %v2015_v45 = vadd.f32 %v2013_v56, %v2007_v48  ;;  %v1211_v56 = vadd.f32 %v1209_v61, %v1200_v47  ;;  %v2120_v7 = vadd.f32 %v2118_v43, %v2110_v42  ;;  %v2233_v13 = vadd.f32 %v2231_v11, %v2223_v46 }
 0x26a   :  { %v2249_v35 = vsel %vm339_vm5, %v2248_v38, %v4215_v57  ;;  %v2154_v18 = vsel %vm381_vm7, %v2153_v31, %v2152_v19  ;;  %v2266_v57 = vrot.slane %v4233_v52, 6 }
 0x26b   :  { %v2025_v29 = vadd.f32 %v2023_v30, %v2015_v45  ;;  %v1890_v33 = vpop.permute.xlu1 %1889  ;;  %v1220_v63 = vadd.f32 %v1218_v53, %v1211_v56  ;;  %v2128_v3 = vadd.f32 %v2126_v4, %v2120_v7  ;;  %v1267_v40 = vpop.permute.xlu0 %1266  ;;  %v1238_v45 = vsel %vm360_vm6, %v1237_v44, %v4177_v23  ;;  %v2576_v7 = vld [vmem:[#allocation9] ss:$8 sm:$0x3] }
 0x26c   :  { %v1891_v9 = vrot.slane %v1890_v33, 6  ;;  %v2241_v25 = vadd.f32 %v2239_v12, %v2233_v13  ;;  %v1268_v36 = vrot.slane %v1267_v40, 6  ;;  %v2267_v1 = vsel %vm360_vm6, %v2266_v57, %v4233_v52 }
 0x26d   :  { %v2033_v14 = vrot.slane %v2025_v29, %v2785_v55  ;;  %v1231_v58 = vadd.f32 %v1229_v27, %v1220_v63  ;;  %v2578_v63 = vld [vmem:[#allocation9 + $0x2] ss:$8 sm:$0x3] }
 0x26e   :  { %v1892_v60 = vsel %vm381_vm7, %v1891_v9, %v1890_v33  ;;  %v2251_v9 = vadd.f32 %v2249_v35, %v2241_v25  ;;  %v1269_v39 = vsel %vm381_vm7, %v1268_v36, %v1267_v40 }
 0x26f   :  { %v1894_v34 = vadd.f32 %v1892_v60, %v1884_v15  ;;  %v2134_v22 = vpop.permute.xlu1 %2133  ;;  %2034 = vrot.lane.b32.xlu0 %v2033_v14, %s4638_s17  ;;  %v1240_v20 = vadd.f32 %v1238_v45, %v1231_v58  ;;  %v2257_v15 = vsel %vm360_vm6, %v2256_v54, %v4190_v10  ;;  %v2579_v45 = vld [vmem:[#allocation9 + $0x3] ss:$8 sm:$0x3] }
 0x270   :  { %v2135_v5 = vrot.slane %v2134_v22, 6  ;;  %v2259_v32 = vadd.f32 %v2257_v15, %v2251_v9  ;;  %v2580_v9 = vld [vmem:[#allocation9 + $0x4] ss:$8 sm:$0x3] }
 0x271   :  { %v1902_v0 = vrot.slane %v1894_v34, %v2785_v55 }
 0x272   :  { %v2136_v48 = vsel %vm360_vm6, %v2135_v5, %v2134_v22  ;;  %v2269_v61 = vadd.f32 %v2267_v1, %v2259_v32 }
 0x273   :  { %v1247_v17 = vpop.permute.xlu1 %1246  ;;  %1903 = vrot.lane.b32.xlu1 %v1902_v0, %s4479_s4  ;;  %v2138_v21 = vadd.f32 %v2136_v48, %v2128_v3  ;;  %s2698_s4 = smov 45  }
 0x274   :  { %v1248_v49 = vrot.slane %v1247_v17, 6 }
 0x276   :  { %v1249_v29 = vsel %vm360_vm6, %v1248_v49, %v1247_v17  ;;  %v2577_v49 = vld [vmem:[#allocation9 + $0x1] ss:$8 sm:$0x3] }
 0x277   :  { %v2142_v30 = vpop.permute.xlu1 %2141  ;;  %v1251_v16 = vadd.f32 %v1249_v29, %v1240_v20 }
 0x278   :  { %v2143_v59 = vrot.slane %v2142_v30, 6 }
 0x27a   :  { %v2144_v33 = vsel %vm381_vm7, %v2143_v59, %v2142_v30  ;;  %v179_v59 = vld [vmem:[#allocation9 + $0x6] ss:$8 sm:$0x3] }
 0x27b   :  { %v2146_v8 = vadd.f32 %v2144_v33, %v2138_v21  ;;  %v1256_v23 = vpop.permute.xlu1 %1255 }
 0x27c   :  { %v1257_v14 = vrot.slane %v1256_v23, 6 }
 0x27d   :  { %v2156_v37 = vadd.f32 %v2154_v18, %v2146_v8 }
 0x27e   :  { %v1258_v60 = vsel %vm381_vm7, %v1257_v14, %v1256_v23  ;;  %v1290_v14 = vstv %s4298_s26 }
 0x27f   :  { %v2164_v34 = vrot.slane %v2156_v37, %v2785_v55  ;;  %v1260_v22 = vadd.f32 %v1258_v60, %v1251_v16  ;;  %v2273_v41 = vpop.permute.xlu1 %2272 }
 0x280   :  { %v2274_v28 = vrot.slane %v2273_v41, 6 }
 0x281   :  { %v1271_v62 = vadd.f32 %v1269_v39, %v1260_v22  ;;  %2165 = vrot.lane.b32.xlu1 %v2164_v34, %s2697_s24  ;;  %s4296_s24 = sld [smem:[#allocation8]] }
 0x282   :  { %v2275_v10 = vsel %vm381_vm7, %v2274_v28, %v2273_v41 }
 0x283   :  { %v1279_v2 = vrot.slane %v1271_v62, %v2785_v55  ;;  %v2283_v0 = vpop.permute.xlu1 %2282  ;;  %v2277_v24 = vadd.f32 %v2275_v10, %v2269_v61 }
 0x284   :  { %v2284_v19 = vrot.slane %v2283_v0, 6 }
 0x285   :  { %1280 = vrot.lane.b32.xlu0 %v1279_v2, %s2698_s4 }
 0x286   :  { %v2285_v43 = vsel %vm381_vm7, %v2284_v19, %v2283_v0  ;;  %v1302_v0 = vsub.s32 0, %v2781_v26  ;;  %v1306_v19 = vsub.s32 1, %v2781_v26 }
 0x287   :  { %v2287_v51 = vadd.f32 %v2285_v43, %v2277_v24  ;;  %v1288_v20 = vstv %s4296_s24 }
 0x289   :  { %v2295_v5 = vrot.slane %v2287_v51, %v2785_v55 }
 0x28b   :  { %2296 = vrot.lane.b32.xlu1 %v2295_v5, %s2698_s4  ;;  %v1298_v5 = vld [vmem:[#allocation10] sm:$0xff] }
 0x2b5   :  { %v1641_v47 = vpop.permute.xlu1 %1640 }
 0x2b6   :  { %v1642_v11 = vrot.slane %v1641_v47, 1 }
 0x2b8   :  { %v1643_v56 = vsel %vm553_vm8, %v1641_v47, %v1642_v11  ;;  %v2311_v11 = vld [vmem:[#allocation10 + $0x8] sm:$0xff] }
 0x2b9   :  { %v1645_v31 = vmul.f32 %v2577_v49, %v1643_v56 }
 0x2c9   :  { %v1510_v52 = vpop.permute.xlu0 %1509 }
 0x2ca   :  { %v1511_v53 = vrot.slane %v1510_v52, 1 }
 0x2cc   :  { %v1512_v44 = vsel %vm407_vm9, %v1510_v52, %v1511_v53 }
 0x2cd   :  { %v1514_v27 = vmul.f32 %v2576_v7, %v1512_v44 }
 0x2cf   :  { %v1646_v40 = vadd.f32 %v1645_v31, %v1514_v27 }
 0x2d9   :  { %v1772_v42 = vpop.permute.xlu0 %1771 }
 0x2da   :  { %v1773_v4 = vrot.slane %v1772_v42, 1 }
 0x2dc   :  { %v1774_v46 = vsel %vm699_vm10, %v1772_v42, %v1773_v4 }
 0x2dd   :  { %v1776_v13 = vmul.f32 %v2578_v63, %v1774_v46 }
 0x2df   :  { %v1777_v25 = vadd.f32 %v1776_v13, %v1646_v40 }
 0x2e1   :  { %v2035_v12 = vpop.permute.xlu0 %2034 }
 0x2e2   :  { %v2036_v3 = vrot.slane %v2035_v12, 1 }
 0x2e4   :  { %v2037_v21 = vsel %vm991_vm11, %v2035_v12, %v2036_v3 }
 0x2e5   :  { %v1904_v17 = vpop.permute.xlu1 %1903  ;;  %v2039_v8 = vmul.f32 %v2580_v9, %v2037_v21 }
 0x2e6   :  { %v1905_v38 = vrot.slane %v1904_v17, 1 }
 0x2e8   :  { %v1906_v55 = vsel %vm360_vm6, %v1904_v17, %v1905_v38 }
 0x2e9   :  { %v1908_v54 = vmul.f32 %v2579_v45, %v1906_v55 }
 0x2eb   :  { %v1909_v18 = vadd.f32 %v1908_v54, %v1777_v25 }
 0x2ed   :  { %v2040_v37 = vadd.f32 %v2039_v8, %v1909_v18 }
 0x2f3   :  { %v2166_v48 = vpop.permute.xlu1 %2165 }
 0x2f4   :  { %v2167_v30 = vrot.slane %v2166_v48, 1 }
 0x2f6   :  { %v2168_v29 = vsel %vm1137_vm12, %v2166_v48, %v2167_v30 }
 0x2f7   :  { %v1281_v35 = vpop.permute.xlu0 %1280  ;;  %v2170_v23 = vmul.f32 %v2168_v29, %v3935_v50 }
 0x2f8   :  { %v1282_v58 = vrot.slane %v1281_v35, 1 }
 0x2f9   :  { %v2171_v32 = vadd.f32 %v2170_v23, %v2040_v37 }
 0x2fa   :  { %v1284_v33 = vsel %vm1283_vm13, %v1281_v35, %v1282_v58 }
 0x2fb   :  { %v1286_v36 = vmul.f32 %v1284_v33, %v179_v59 }
 0x2fd   :  { %v1287_v15 = vadd.f32 %v1286_v36, %v3976_v6  ;;  %v2297_v57 = vpop.permute.xlu1 %2296 }
 0x2fe   :  { %v2298_v16 = vrot.slane %v2297_v57, 1 }
 0x2ff   :  { %v1289_v60 = vmul.f32 %v1288_v20, %v1287_v15 }
 0x300   :  { %v2299_v39 = vsel %vm1283_vm13, %v2297_v57, %v2298_v16 }
 0x301   :  { %v1291_v34 = vadd.f32 %v1290_v14, %v1289_v60  ;;  %v2301_v22 = vmul.f32 %v2299_v39, %v179_v59 }
 0x303   :  { %v2493_v41 = vmul.f32 -1.442695, %v1291_v34  ;;  %v2302_v1 = vadd.f32 %v2301_v22, %v2171_v32 }
 0x305   :  { %2567 = vpow2.f32 %v2493_v41  ;;  %v2303_v28 = vmul.f32 %v2302_v1, %v1288_v20 }
 0x307   :  { %v2304_v62 = vadd.f32 %v2303_v28, %v1290_v14 }
 0x309   :  { %v2543_v10 = vmul.f32 -1.442695, %v2304_v62 }
 0x30b   :  { %2569 = vpow2.f32 %v2543_v10 }
 0x30f   :  { %v2568_v50 = vpop.eup %2567 }
 0x310   :  { %v1295_v61 = vadd.f32 1.0, %v2568_v50 }
 0x312   :  { %2571 = vrcp.f32 %v1295_v61 }
 0x315   :  { %v2570_v6 = vpop.eup %2569 }
 0x316   :  { %v2308_v2 = vadd.f32 1.0, %v2570_v6 }
 0x318   :  { %2573 = vrcp.f32 %v2308_v2 }
 0x31c   :  { %v2572_v24 = vpop.eup %2571 }
 0x31d   :  { %v1303_v43 = vrot.slane %v2572_v24, %v1302_v0  ;;  %v1307_v51 = vrot.slane %v2572_v24, %v1306_v19 }
 0x31f   :  { %v1308_v52 = vcombine.low %v1303_v43, %v1307_v51 }
 0x321   :  { %v1310_v47 = vmul.f32 %v1308_v52, %v1298_v5 }
 0x322   :  { %v2574_v42 = vpop.eup %2573 }
 0x323   :  { %1311 = vst [vmem:[#allocation12] sm:$0xff] %v1310_v47  ;;  %v2316_v53 = vrot.slane %v2574_v42, %v1302_v0  ;;  %v2320_v17 = vrot.slane %v2574_v42, %v1306_v19 }
 0x325   :  { %v2321_v4 = vcombine.low %v2316_v53, %v2320_v17 }
 0x327   :  { %v2323_v44 = vmul.f32 %v2321_v4, %v2311_v11 }
 0x329   :  { %2325 = vst [vmem:[#allocation12 + $0x8] sm:$0xff] %v2323_v44 }
 0x32a   :  { %2658 = shalt.err (!%p2655_p0)
}
 0x32b   :  { %s4639_s1 = sld [smem:[#allocation77_spill]] }
 0x331   :  { %s2659_s6 = scalar_lea.hbm %s4639_s1, 256 }
 0x332   :  { %p2660_p1 = scmp.ne.s32.totalorder %s4639_s1, %s2659_s6  ;;  %p2663_p2 = scmp.lt.u32.totalorder %s2659_s6, %s4639_s1 }
 0x334   :  { %p2665_p3 = pnand %p2663_p2, %p2660_p1 }
 0x336   :  { %2668 = shalt.err (!%p2665_p3)
}
 0x337   :  { %s4640_s28 = smov 8   ;;  %s4641_s22 = smov 128  }
 0x338   :  { %2337 = dma.vmem_to_hbm [thread:$0]  %s2332_s15, 256, %s4639_s1, [#allocation5], %s4641_s22, %s4641_s22, %s4640_s28  }
 0x339   :  { %2677 = dma.done.wait [#allocation5], 256  }
 0x33a   :  { %2678 = vsyncadd [#allocation5], 4294967040 }
 0x33b   :  { %2341 = vsyncpa [#allocation4], 1 }
 0x33c   :  { %2342 = vsyncpa [#allocation11], 1 }
 0x33d   :  { %2343 = vsyncpa [#allocation5], 1 }
 0x33e   :  { %2344 = vsyncpa [#allocation6], 1 }
 0x33f   :  { %2345 = vsyncpa [#allocation7], 1 }

</bundles_post_ra>
